<compile_context>
chip_gen: v6e
topology: v6e:2x2x1
jax: 0.10.0
libtpu: 0.0.40
codegen_flags: <defaults>
</compile_context>

<pallas_src>
import functools

import jax
import jax.numpy as jnp
from jax.experimental import pallas as pl
from jax.experimental.pallas import tpu as pltpu

LRELU_SLOPE = 0.01   # torch.nn.LeakyReLU default
BN_EPS = 1e-5        # torch.nn.BatchNorm1d default


def _leaky_relu(x):
    return jnp.where(x >= 0, x, LRELU_SLOPE * x)


def _batch_norm(x, gamma, beta):
    # training-mode batch statistics over the node axis, biased variance,
    # single-pass var = E[x^2] - mean^2
    inv_n = 1.0 / x.shape[0]
    mean = jnp.sum(x, axis=0, keepdims=True) * inv_n
    mean_sq = jnp.sum(x * x, axis=0, keepdims=True) * inv_n
    var = jnp.maximum(mean_sq - mean * mean, 0.0)
    return (x - mean) * jax.lax.rsqrt(var + BN_EPS) * gamma + beta


# ---------------------------------------------------------------------------
# One fused kernel for the whole M4 forward pass.
# ---------------------------------------------------------------------------
def _m4_fused_kernel(*args, num_layers, num_degrees, c_out):
    out_ref = args[-1]
    refs = args[:-1]
    x_ref, a_ref, deg_ref = refs[0], refs[1], refs[2]
    pos = 3
    conv_refs = []
    for _ in range(num_layers):
        conv_refs.append((refs[pos], refs[pos + 1]))   # (W_stacked, bias)
        pos += 2
    bn_refs = []
    for _ in range(num_layers - 1):
        bn_refs.append((refs[pos], refs[pos + 1]))
        pos += 2
    (w1_ref, b1_ref, g1_ref, bb1_ref,
     w2_ref, b2_ref, g2_ref, bb2_ref,
     w3_ref, b3_ref) = refs[pos:pos + 10]

    a_bf = a_ref[...]        # (N, N) bf16 adjacency (small integer counts -> exact)
    deg_oh = deg_ref[...]    # (N, num_degrees) f32 one-hot of clamped degree
    h = x_ref[...]           # (N, F0) f32

    for i in range(num_layers):
        w_ref, b_ref = conv_refs[i]
        h_bf = h.astype(jnp.bfloat16)
        # neighbor sum: agg_i = sum_{j in N(i)} h_j  ==  A @ h
        agg = jnp.dot(a_bf, h_bf, preferred_element_type=jnp.float32)
        # ONE merged stacked matmul over all (max_degree + 1) degree-specific linears:
        #   z[:, d*C:(d+1)*C] = [agg | h] @ [Wl_d ; Wr_d] + bl_d
        cat = jnp.concatenate([agg.astype(jnp.bfloat16), h_bf], axis=1)
        z = jnp.dot(cat, w_ref[...], preferred_element_type=jnp.float32) + b_ref[...]
        # fused degree-mask + block reduce (lane-aligned 128-wide slices, no full-width
        # masked tensor is materialized)
        out = z[:, 0:c_out] * deg_oh[:, 0:1]
        for d in range(1, num_degrees):
            out = out + z[:, d * c_out:(d + 1) * c_out] * deg_oh[:, d:d + 1]
        if i != num_layers - 1:                # BatchNorm skipped after last conv
            g_ref, bt_ref = bn_refs[i]
            out = _batch_norm(out, g_ref[...], bt_ref[...])
        h = _leaky_relu(out)

    # classifier: Linear -> BN -> LeakyReLU -> (Dropout) -> Linear -> BN -> LeakyReLU
    #             -> (Dropout) -> Linear(., 1)
    t = (jnp.dot(h.astype(jnp.bfloat16), w1_ref[...],
                 preferred_element_type=jnp.float32) + b1_ref[...])
    t = _leaky_relu(_batch_norm(t, g1_ref[...], bb1_ref[...]))
    # TODO(synk): Dropout(0.2) treated as inference-mode identity.
    t = (jnp.dot(t.astype(jnp.bfloat16), w2_ref[...],
                 preferred_element_type=jnp.float32) + b2_ref[...])
    t = _leaky_relu(_batch_norm(t, g2_ref[...], bb2_ref[...]))
    # final Linear(., 1): VPU multiply + lane reduction (no width-1 MXU matmul)
    out_ref[...] = jnp.sum(t * w3_ref[...], axis=1, keepdims=True) + b3_ref[...]


def m4_forward(x, edge_index, params):
    n_nodes = x.shape[0]
    num_layers = len(params["convs"])
    num_degrees = params["max_degree"] + 1
    c_out = params["convs"][0]["w"].shape[1] // num_degrees

    # dense adjacency: A[i, j] = #edges j -> i   (aggr='add', flow source->target)
    src, dst = edge_index[0], edge_index[1]
    adj = jnp.zeros((n_nodes, n_nodes), jnp.float32).at[dst, src].add(1.0)
    deg = jnp.minimum(jnp.sum(adj, axis=1), float(params["max_degree"]))
    # compact (N, num_degrees) one-hot of each node's clamped degree; the kernel
    # broadcasts one column per 128-lane block (no pre-repeated (N, D*C) mask).
    deg_onehot = jax.nn.one_hot(deg.astype(jnp.int32), num_degrees, dtype=jnp.float32)

    inputs = [x.astype(jnp.float32), adj.astype(jnp.bfloat16), deg_onehot]
    for lp in params["convs"]:
        inputs += [lp["w"].astype(jnp.bfloat16), lp["b"]]
    for bp in params["bns"]:
        inputs += [bp["g"], bp["b"]]
    cp = params["clf"]
    inputs += [cp["w1"].astype(jnp.bfloat16), cp["b1"], cp["g1"], cp["bb1"],
               cp["w2"].astype(jnp.bfloat16), cp["b2"], cp["g2"], cp["bb2"],
               cp["w3"], cp["b3"]]

    vmem = pl.BlockSpec(memory_space=pltpu.MemorySpace.VMEM)
    out = pl.pallas_call(
        functools.partial(_m4_fused_kernel, num_layers=num_layers,
                          num_degrees=num_degrees, c_out=c_out),
        out_shape=jax.ShapeDtypeStruct((n_nodes, 1), jnp.float32),
        in_specs=[vmem] * len(inputs),
        out_specs=vmem,
        compiler_params=pltpu.CompilerParams(
            # explicit so the fully-resident design is planned against v7x's
            # smaller (64 MiB physical / 32 MiB default-scoped) VMEM as well
            vmem_limit_bytes=32 * 1024 * 1024),
    )(*inputs)
    return out.reshape(-1)  # torch.flatten(x)


# ---------------------------------------------------------------------------
# Parameter init (mimics torch.nn.Linear default init, deterministic)
# ---------------------------------------------------------------------------
def _uniform(key, shape, bound):
    return jax.random.uniform(key, shape, jnp.float32, -bound, bound)


def init_params(key, num_node_features, num_conv_layers, size_conv,
                size_mlp, max_degree):
    num_degrees = max_degree + 1
    params = {"convs": [], "bns": [], "clf": {}, "max_degree": max_degree}
    c_in = num_node_features
    for i in range(num_conv_layers):
        key, kl, kr, kb = jax.random.split(key, 4)
        bound = 1.0 / float(c_in) ** 0.5
        # degree-stacked weights, Wl over Wr vertically:
        #   rows [0, c_in)        -> lins_l (with bias), applied to agg
        #   rows [c_in, 2*c_in)   -> lins_r (no bias),   applied to x
        #   columns [d*C, (d+1)*C) -> degree-d linear pair
        wl = _uniform(kl, (c_in, num_degrees * size_conv), bound)
        wr = _uniform(kr, (c_in, num_degrees * size_conv), bound)
        params["convs"].append(dict(
            w=jnp.concatenate([wl, wr], axis=0),          # (2*c_in, D*size_conv)
            b=_uniform(kb, (1, num_degrees * size_conv), bound),
        ))
        c_in = size_conv
        if i != num_conv_layers - 1:   # last BatchNorm exists in torch but is never applied
            params["bns"].append(dict(
                g=jnp.ones((1, size_conv), jnp.float32),
                b=jnp.zeros((1, size_conv), jnp.float32),
            ))
    key, k1, k2, k3, kb1, kb2, kb3 = jax.random.split(key, 7)
    bd1 = 1.0 / float(size_conv) ** 0.5
    bd2 = 1.0 / float(size_mlp) ** 0.5
    params["clf"] = dict(
        w1=_uniform(k1, (size_conv, size_mlp), bd1), b1=_uniform(kb1, (1, size_mlp), bd1),
        g1=jnp.ones((1, size_mlp), jnp.float32), bb1=jnp.zeros((1, size_mlp), jnp.float32),
        w2=_uniform(k2, (size_mlp, size_mlp), bd2), b2=_uniform(kb2, (1, size_mlp), bd2),
        g2=jnp.ones((1, size_mlp), jnp.float32), bb2=jnp.zeros((1, size_mlp), jnp.float32),
        w3=_uniform(k3, (1, size_mlp), bd2), b3=_uniform(kb3, (1, 1), bd2),
    )
    return params


if __name__ == "__main__":
    # small synthetic molecular-style graph
    N_NODES = 64
    N_EDGES = 256
    NUM_NODE_FEATURES = 16
    NUM_CONV_LAYERS = 3
    SIZE_CONV = 128       # lane-aligned (multiple of 128)
    SIZE_MLP = 128        # lane-aligned (multiple of 128)
    MAX_DEGREE = 4

    key = jax.random.PRNGKey(0)
    kx, ki, kp = jax.random.split(key, 3)
    x = jax.random.normal(kx, (N_NODES, NUM_NODE_FEATURES), jnp.float32)
    edge_index = jax.random.randint(ki, (2, N_EDGES), 0, N_NODES, jnp.int32)

    params = init_params(kp, NUM_NODE_FEATURES, NUM_CONV_LAYERS,
                         SIZE_CONV, SIZE_MLP, MAX_DEGREE)

    out = m4_forward(x, edge_index, params)
    out = jax.block_until_ready(out)
    assert out.shape == (N_NODES,)
    assert bool(jnp.all(jnp.isfinite(out)))
    print("KERNEL_OK")
</pallas_src>

<mosaic_0001>
module attributes {stable_mosaic.version = 11 : i64} {
  func.func @_m4_fused_kernel(%arg0: memref<64x16xf32, #tpu.memory_space<vmem>>, %arg1: memref<64x64xbf16, #tpu.memory_space<vmem>>, %arg2: memref<64x5xf32, #tpu.memory_space<vmem>>, %arg3: memref<32x640xbf16, #tpu.memory_space<vmem>>, %arg4: memref<1x640xf32, #tpu.memory_space<vmem>>, %arg5: memref<256x640xbf16, #tpu.memory_space<vmem>>, %arg6: memref<1x640xf32, #tpu.memory_space<vmem>>, %arg7: memref<256x640xbf16, #tpu.memory_space<vmem>>, %arg8: memref<1x640xf32, #tpu.memory_space<vmem>>, %arg9: memref<1x128xf32, #tpu.memory_space<vmem>>, %arg10: memref<1x128xf32, #tpu.memory_space<vmem>>, %arg11: memref<1x128xf32, #tpu.memory_space<vmem>>, %arg12: memref<1x128xf32, #tpu.memory_space<vmem>>, %arg13: memref<128x128xbf16, #tpu.memory_space<vmem>>, %arg14: memref<1x128xf32, #tpu.memory_space<vmem>>, %arg15: memref<1x128xf32, #tpu.memory_space<vmem>>, %arg16: memref<1x128xf32, #tpu.memory_space<vmem>>, %arg17: memref<128x128xbf16, #tpu.memory_space<vmem>>, %arg18: memref<1x128xf32, #tpu.memory_space<vmem>>, %arg19: memref<1x128xf32, #tpu.memory_space<vmem>>, %arg20: memref<1x128xf32, #tpu.memory_space<vmem>>, %arg21: memref<1x128xf32, #tpu.memory_space<vmem>>, %arg22: memref<1x1xf32, #tpu.memory_space<vmem>>, %arg23: memref<64x1xf32, #tpu.memory_space<vmem>>) attributes {dimension_semantics = [], scalar_prefetch = 0 : i64, scratch_operands = 0 : i64, tpu.core_type = #tpu.core_type<tc>} {
    %c0 = arith.constant 0 : index
    %c0_0 = arith.constant 0 : index
    %0 = vector.load %arg1[%c0, %c0_0] : memref<64x64xbf16, #tpu.memory_space<vmem>>, vector<64x64xbf16>
    %c0_1 = arith.constant 0 : index
    %c0_2 = arith.constant 0 : index
    %1 = vector.load %arg2[%c0_1, %c0_2] : memref<64x5xf32, #tpu.memory_space<vmem>>, vector<64x5xf32>
    %c0_3 = arith.constant 0 : index
    %c0_4 = arith.constant 0 : index
    %2 = vector.load %arg0[%c0_3, %c0_4] : memref<64x16xf32, #tpu.memory_space<vmem>>, vector<64x16xf32>
    %3 = arith.truncf %2 : vector<64x16xf32> to vector<64x16xbf16>
    %cst = arith.constant dense<0.000000e+00> : vector<64x16xf32>
    %4 = tpu.matmul %0, %3, %cst {dimension_numbers = #tpu.dot_dimension_numbers<[1], [0], [0], [1], [0, 0, 1, 1], [], []>} : vector<64x64xbf16>, vector<64x16xbf16>, vector<64x16xf32> -> vector<64x16xf32>
    %5 = arith.truncf %4 : vector<64x16xf32> to vector<64x16xbf16>
    %6 = tpu.concatenate %5, %3 in 1 : vector<64x16xbf16>, vector<64x16xbf16> -> vector<64x32xbf16>
    %c0_5 = arith.constant 0 : index
    %c0_6 = arith.constant 0 : index
    %7 = vector.load %arg3[%c0_5, %c0_6] : memref<32x640xbf16, #tpu.memory_space<vmem>>, vector<32x640xbf16>
    %cst_7 = arith.constant dense<0.000000e+00> : vector<64x640xf32>
    %8 = tpu.matmul %6, %7, %cst_7 {dimension_numbers = #tpu.dot_dimension_numbers<[1], [0], [0], [1], [0, 0, 1, 1], [], []>} : vector<64x32xbf16>, vector<32x640xbf16>, vector<64x640xf32> -> vector<64x640xf32>
    %c0_8 = arith.constant 0 : index
    %c0_9 = arith.constant 0 : index
    %9 = vector.load %arg4[%c0_8, %c0_9] : memref<1x640xf32, #tpu.memory_space<vmem>>, vector<1x640xf32>
    %10 = vector.broadcast %9 : vector<1x640xf32> to vector<64x640xf32>
    %11 = arith.addf %8, %10 : vector<64x640xf32>
    %12 = vector.extract_strided_slice %11 {offsets = [0, 0], sizes = [64, 128], strides = [1, 1]} : vector<64x640xf32> to vector<64x128xf32>
    %13 = vector.extract_strided_slice %1 {offsets = [0, 0], sizes = [64, 1], strides = [1, 1]} : vector<64x5xf32> to vector<64x1xf32>
    %14 = vector.broadcast %13 : vector<64x1xf32> to vector<64x128xf32>
    %15 = arith.mulf %12, %14 : vector<64x128xf32>
    %16 = vector.extract_strided_slice %11 {offsets = [0, 128], sizes = [64, 128], strides = [1, 1]} : vector<64x640xf32> to vector<64x128xf32>
    %17 = vector.extract_strided_slice %1 {offsets = [0, 1], sizes = [64, 1], strides = [1, 1]} : vector<64x5xf32> to vector<64x1xf32>
    %18 = vector.broadcast %17 : vector<64x1xf32> to vector<64x128xf32>
    %19 = arith.mulf %16, %18 : vector<64x128xf32>
    %20 = arith.addf %15, %19 : vector<64x128xf32>
    %21 = vector.extract_strided_slice %11 {offsets = [0, 256], sizes = [64, 128], strides = [1, 1]} : vector<64x640xf32> to vector<64x128xf32>
    %22 = vector.extract_strided_slice %1 {offsets = [0, 2], sizes = [64, 1], strides = [1, 1]} : vector<64x5xf32> to vector<64x1xf32>
    %23 = vector.broadcast %22 : vector<64x1xf32> to vector<64x128xf32>
    %24 = arith.mulf %21, %23 : vector<64x128xf32>
    %25 = arith.addf %20, %24 : vector<64x128xf32>
    %26 = vector.extract_strided_slice %11 {offsets = [0, 384], sizes = [64, 128], strides = [1, 1]} : vector<64x640xf32> to vector<64x128xf32>
    %27 = vector.extract_strided_slice %1 {offsets = [0, 3], sizes = [64, 1], strides = [1, 1]} : vector<64x5xf32> to vector<64x1xf32>
    %28 = vector.broadcast %27 : vector<64x1xf32> to vector<64x128xf32>
    %29 = arith.mulf %26, %28 : vector<64x128xf32>
    %30 = arith.addf %25, %29 : vector<64x128xf32>
    %31 = vector.extract_strided_slice %11 {offsets = [0, 512], sizes = [64, 128], strides = [1, 1]} : vector<64x640xf32> to vector<64x128xf32>
    %32 = vector.extract_strided_slice %1 {offsets = [0, 4], sizes = [64, 1], strides = [1, 1]} : vector<64x5xf32> to vector<64x1xf32>
    %33 = vector.broadcast %32 : vector<64x1xf32> to vector<64x128xf32>
    %34 = arith.mulf %31, %33 : vector<64x128xf32>
    %35 = arith.addf %30, %34 : vector<64x128xf32>
    %c0_10 = arith.constant 0 : index
    %c0_11 = arith.constant 0 : index
    %36 = vector.load %arg9[%c0_10, %c0_11] : memref<1x128xf32, #tpu.memory_space<vmem>>, vector<1x128xf32>
    %c0_12 = arith.constant 0 : index
    %c0_13 = arith.constant 0 : index
    %37 = vector.load %arg10[%c0_12, %c0_13] : memref<1x128xf32, #tpu.memory_space<vmem>>, vector<1x128xf32>
    %cst_14 = arith.constant dense<0.000000e+00> : vector<128xf32>
    %38 = vector.multi_reduction <add>, %35, %cst_14 [0] : vector<64x128xf32> to vector<128xf32>
    %39 = vector.shape_cast %38 : vector<128xf32> to vector<1x128xf32>
    %cst_15 = arith.constant 1.562500e-02 : f32
    %40 = vector.broadcast %cst_15 : f32 to vector<1x128xf32>
    %41 = arith.mulf %39, %40 : vector<1x128xf32>
    %42 = arith.mulf %35, %35 : vector<64x128xf32>
    %cst_16 = arith.constant dense<0.000000e+00> : vector<128xf32>
    %43 = vector.multi_reduction <add>, %42, %cst_16 [0] : vector<64x128xf32> to vector<128xf32>
    %44 = vector.shape_cast %43 : vector<128xf32> to vector<1x128xf32>
    %cst_17 = arith.constant 1.562500e-02 : f32
    %45 = vector.broadcast %cst_17 : f32 to vector<1x128xf32>
    %46 = arith.mulf %44, %45 : vector<1x128xf32>
    %47 = arith.mulf %41, %41 : vector<1x128xf32>
    %48 = arith.subf %46, %47 : vector<1x128xf32>
    %cst_18 = arith.constant 0.000000e+00 : f32
    %49 = vector.broadcast %cst_18 : f32 to vector<1x128xf32>
    %50 = arith.maximumf %48, %49 : vector<1x128xf32>
    %51 = vector.broadcast %41 : vector<1x128xf32> to vector<64x128xf32>
    %52 = arith.subf %35, %51 : vector<64x128xf32>
    %cst_19 = arith.constant 9.99999974E-6 : f32
    %53 = vector.broadcast %cst_19 : f32 to vector<1x128xf32>
    %54 = arith.addf %50, %53 : vector<1x128xf32>
    %55 = math.rsqrt %54 : vector<1x128xf32>
    %56 = vector.broadcast %55 : vector<1x128xf32> to vector<64x128xf32>
    %57 = arith.mulf %52, %56 : vector<64x128xf32>
    %58 = vector.broadcast %36 : vector<1x128xf32> to vector<64x128xf32>
    %59 = arith.mulf %57, %58 : vector<64x128xf32>
    %60 = vector.broadcast %37 : vector<1x128xf32> to vector<64x128xf32>
    %61 = arith.addf %59, %60 : vector<64x128xf32>
    %cst_20 = arith.constant 0.000000e+00 : f32
    %62 = vector.broadcast %cst_20 : f32 to vector<64x128xf32>
    %63 = arith.cmpf oge, %61, %62 : vector<64x128xf32>
    %cst_21 = arith.constant 0.00999999977 : f32
    %64 = vector.broadcast %cst_21 : f32 to vector<64x128xf32>
    %65 = arith.mulf %64, %61 : vector<64x128xf32>
    %66 = arith.select %63, %61, %65 : vector<64x128xi1>, vector<64x128xf32>
    %67 = arith.truncf %66 : vector<64x128xf32> to vector<64x128xbf16>
    %cst_22 = arith.constant dense<0.000000e+00> : vector<64x128xf32>
    %68 = tpu.matmul %0, %67, %cst_22 {dimension_numbers = #tpu.dot_dimension_numbers<[1], [0], [0], [1], [0, 0, 1, 1], [], []>} : vector<64x64xbf16>, vector<64x128xbf16>, vector<64x128xf32> -> vector<64x128xf32>
    %69 = arith.truncf %68 : vector<64x128xf32> to vector<64x128xbf16>
    %70 = tpu.concatenate %69, %67 in 1 : vector<64x128xbf16>, vector<64x128xbf16> -> vector<64x256xbf16>
    %c0_23 = arith.constant 0 : index
    %c0_24 = arith.constant 0 : index
    %71 = vector.load %arg5[%c0_23, %c0_24] : memref<256x640xbf16, #tpu.memory_space<vmem>>, vector<256x640xbf16>
    %cst_25 = arith.constant dense<0.000000e+00> : vector<64x640xf32>
    %72 = tpu.matmul %70, %71, %cst_25 {dimension_numbers = #tpu.dot_dimension_numbers<[1], [0], [0], [1], [0, 0, 1, 1], [], []>} : vector<64x256xbf16>, vector<256x640xbf16>, vector<64x640xf32> -> vector<64x640xf32>
    %c0_26 = arith.constant 0 : index
    %c0_27 = arith.constant 0 : index
    %73 = vector.load %arg6[%c0_26, %c0_27] : memref<1x640xf32, #tpu.memory_space<vmem>>, vector<1x640xf32>
    %74 = vector.broadcast %73 : vector<1x640xf32> to vector<64x640xf32>
    %75 = arith.addf %72, %74 : vector<64x640xf32>
    %76 = vector.extract_strided_slice %75 {offsets = [0, 0], sizes = [64, 128], strides = [1, 1]} : vector<64x640xf32> to vector<64x128xf32>
    %77 = vector.extract_strided_slice %1 {offsets = [0, 0], sizes = [64, 1], strides = [1, 1]} : vector<64x5xf32> to vector<64x1xf32>
    %78 = vector.broadcast %77 : vector<64x1xf32> to vector<64x128xf32>
    %79 = arith.mulf %76, %78 : vector<64x128xf32>
    %80 = vector.extract_strided_slice %75 {offsets = [0, 128], sizes = [64, 128], strides = [1, 1]} : vector<64x640xf32> to vector<64x128xf32>
    %81 = vector.extract_strided_slice %1 {offsets = [0, 1], sizes = [64, 1], strides = [1, 1]} : vector<64x5xf32> to vector<64x1xf32>
    %82 = vector.broadcast %81 : vector<64x1xf32> to vector<64x128xf32>
    %83 = arith.mulf %80, %82 : vector<64x128xf32>
    %84 = arith.addf %79, %83 : vector<64x128xf32>
    %85 = vector.extract_strided_slice %75 {offsets = [0, 256], sizes = [64, 128], strides = [1, 1]} : vector<64x640xf32> to vector<64x128xf32>
    %86 = vector.extract_strided_slice %1 {offsets = [0, 2], sizes = [64, 1], strides = [1, 1]} : vector<64x5xf32> to vector<64x1xf32>
    %87 = vector.broadcast %86 : vector<64x1xf32> to vector<64x128xf32>
    %88 = arith.mulf %85, %87 : vector<64x128xf32>
    %89 = arith.addf %84, %88 : vector<64x128xf32>
    %90 = vector.extract_strided_slice %75 {offsets = [0, 384], sizes = [64, 128], strides = [1, 1]} : vector<64x640xf32> to vector<64x128xf32>
    %91 = vector.extract_strided_slice %1 {offsets = [0, 3], sizes = [64, 1], strides = [1, 1]} : vector<64x5xf32> to vector<64x1xf32>
    %92 = vector.broadcast %91 : vector<64x1xf32> to vector<64x128xf32>
    %93 = arith.mulf %90, %92 : vector<64x128xf32>
    %94 = arith.addf %89, %93 : vector<64x128xf32>
    %95 = vector.extract_strided_slice %75 {offsets = [0, 512], sizes = [64, 128], strides = [1, 1]} : vector<64x640xf32> to vector<64x128xf32>
    %96 = vector.extract_strided_slice %1 {offsets = [0, 4], sizes = [64, 1], strides = [1, 1]} : vector<64x5xf32> to vector<64x1xf32>
    %97 = vector.broadcast %96 : vector<64x1xf32> to vector<64x128xf32>
    %98 = arith.mulf %95, %97 : vector<64x128xf32>
    %99 = arith.addf %94, %98 : vector<64x128xf32>
    %c0_28 = arith.constant 0 : index
    %c0_29 = arith.constant 0 : index
    %100 = vector.load %arg11[%c0_28, %c0_29] : memref<1x128xf32, #tpu.memory_space<vmem>>, vector<1x128xf32>
    %c0_30 = arith.constant 0 : index
    %c0_31 = arith.constant 0 : index
    %101 = vector.load %arg12[%c0_30, %c0_31] : memref<1x128xf32, #tpu.memory_space<vmem>>, vector<1x128xf32>
    %cst_32 = arith.constant dense<0.000000e+00> : vector<128xf32>
    %102 = vector.multi_reduction <add>, %99, %cst_32 [0] : vector<64x128xf32> to vector<128xf32>
    %103 = vector.shape_cast %102 : vector<128xf32> to vector<1x128xf32>
    %cst_33 = arith.constant 1.562500e-02 : f32
    %104 = vector.broadcast %cst_33 : f32 to vector<1x128xf32>
    %105 = arith.mulf %103, %104 : vector<1x128xf32>
    %106 = arith.mulf %99, %99 : vector<64x128xf32>
    %cst_34 = arith.constant dense<0.000000e+00> : vector<128xf32>
    %107 = vector.multi_reduction <add>, %106, %cst_34 [0] : vector<64x128xf32> to vector<128xf32>
    %108 = vector.shape_cast %107 : vector<128xf32> to vector<1x128xf32>
    %cst_35 = arith.constant 1.562500e-02 : f32
    %109 = vector.broadcast %cst_35 : f32 to vector<1x128xf32>
    %110 = arith.mulf %108, %109 : vector<1x128xf32>
    %111 = arith.mulf %105, %105 : vector<1x128xf32>
    %112 = arith.subf %110, %111 : vector<1x128xf32>
    %cst_36 = arith.constant 0.000000e+00 : f32
    %113 = vector.broadcast %cst_36 : f32 to vector<1x128xf32>
    %114 = arith.maximumf %112, %113 : vector<1x128xf32>
    %115 = vector.broadcast %105 : vector<1x128xf32> to vector<64x128xf32>
    %116 = arith.subf %99, %115 : vector<64x128xf32>
    %cst_37 = arith.constant 9.99999974E-6 : f32
    %117 = vector.broadcast %cst_37 : f32 to vector<1x128xf32>
    %118 = arith.addf %114, %117 : vector<1x128xf32>
    %119 = math.rsqrt %118 : vector<1x128xf32>
    %120 = vector.broadcast %119 : vector<1x128xf32> to vector<64x128xf32>
    %121 = arith.mulf %116, %120 : vector<64x128xf32>
    %122 = vector.broadcast %100 : vector<1x128xf32> to vector<64x128xf32>
    %123 = arith.mulf %121, %122 : vector<64x128xf32>
    %124 = vector.broadcast %101 : vector<1x128xf32> to vector<64x128xf32>
    %125 = arith.addf %123, %124 : vector<64x128xf32>
    %cst_38 = arith.constant 0.000000e+00 : f32
    %126 = vector.broadcast %cst_38 : f32 to vector<64x128xf32>
    %127 = arith.cmpf oge, %125, %126 : vector<64x128xf32>
    %cst_39 = arith.constant 0.00999999977 : f32
    %128 = vector.broadcast %cst_39 : f32 to vector<64x128xf32>
    %129 = arith.mulf %128, %125 : vector<64x128xf32>
    %130 = arith.select %127, %125, %129 : vector<64x128xi1>, vector<64x128xf32>
    %131 = arith.truncf %130 : vector<64x128xf32> to vector<64x128xbf16>
    %cst_40 = arith.constant dense<0.000000e+00> : vector<64x128xf32>
    %132 = tpu.matmul %0, %131, %cst_40 {dimension_numbers = #tpu.dot_dimension_numbers<[1], [0], [0], [1], [0, 0, 1, 1], [], []>} : vector<64x64xbf16>, vector<64x128xbf16>, vector<64x128xf32> -> vector<64x128xf32>
    %133 = arith.truncf %132 : vector<64x128xf32> to vector<64x128xbf16>
    %134 = tpu.concatenate %133, %131 in 1 : vector<64x128xbf16>, vector<64x128xbf16> -> vector<64x256xbf16>
    %c0_41 = arith.constant 0 : index
    %c0_42 = arith.constant 0 : index
    %135 = vector.load %arg7[%c0_41, %c0_42] : memref<256x640xbf16, #tpu.memory_space<vmem>>, vector<256x640xbf16>
    %cst_43 = arith.constant dense<0.000000e+00> : vector<64x640xf32>
    %136 = tpu.matmul %134, %135, %cst_43 {dimension_numbers = #tpu.dot_dimension_numbers<[1], [0], [0], [1], [0, 0, 1, 1], [], []>} : vector<64x256xbf16>, vector<256x640xbf16>, vector<64x640xf32> -> vector<64x640xf32>
    %c0_44 = arith.constant 0 : index
    %c0_45 = arith.constant 0 : index
    %137 = vector.load %arg8[%c0_44, %c0_45] : memref<1x640xf32, #tpu.memory_space<vmem>>, vector<1x640xf32>
    %138 = vector.broadcast %137 : vector<1x640xf32> to vector<64x640xf32>
    %139 = arith.addf %136, %138 : vector<64x640xf32>
    %140 = vector.extract_strided_slice %139 {offsets = [0, 0], sizes = [64, 128], strides = [1, 1]} : vector<64x640xf32> to vector<64x128xf32>
    %141 = vector.extract_strided_slice %1 {offsets = [0, 0], sizes = [64, 1], strides = [1, 1]} : vector<64x5xf32> to vector<64x1xf32>
    %142 = vector.broadcast %141 : vector<64x1xf32> to vector<64x128xf32>
    %143 = arith.mulf %140, %142 : vector<64x128xf32>
    %144 = vector.extract_strided_slice %139 {offsets = [0, 128], sizes = [64, 128], strides = [1, 1]} : vector<64x640xf32> to vector<64x128xf32>
    %145 = vector.extract_strided_slice %1 {offsets = [0, 1], sizes = [64, 1], strides = [1, 1]} : vector<64x5xf32> to vector<64x1xf32>
    %146 = vector.broadcast %145 : vector<64x1xf32> to vector<64x128xf32>
    %147 = arith.mulf %144, %146 : vector<64x128xf32>
    %148 = arith.addf %143, %147 : vector<64x128xf32>
    %149 = vector.extract_strided_slice %139 {offsets = [0, 256], sizes = [64, 128], strides = [1, 1]} : vector<64x640xf32> to vector<64x128xf32>
    %150 = vector.extract_strided_slice %1 {offsets = [0, 2], sizes = [64, 1], strides = [1, 1]} : vector<64x5xf32> to vector<64x1xf32>
    %151 = vector.broadcast %150 : vector<64x1xf32> to vector<64x128xf32>
    %152 = arith.mulf %149, %151 : vector<64x128xf32>
    %153 = arith.addf %148, %152 : vector<64x128xf32>
    %154 = vector.extract_strided_slice %139 {offsets = [0, 384], sizes = [64, 128], strides = [1, 1]} : vector<64x640xf32> to vector<64x128xf32>
    %155 = vector.extract_strided_slice %1 {offsets = [0, 3], sizes = [64, 1], strides = [1, 1]} : vector<64x5xf32> to vector<64x1xf32>
    %156 = vector.broadcast %155 : vector<64x1xf32> to vector<64x128xf32>
    %157 = arith.mulf %154, %156 : vector<64x128xf32>
    %158 = arith.addf %153, %157 : vector<64x128xf32>
    %159 = vector.extract_strided_slice %139 {offsets = [0, 512], sizes = [64, 128], strides = [1, 1]} : vector<64x640xf32> to vector<64x128xf32>
    %160 = vector.extract_strided_slice %1 {offsets = [0, 4], sizes = [64, 1], strides = [1, 1]} : vector<64x5xf32> to vector<64x1xf32>
    %161 = vector.broadcast %160 : vector<64x1xf32> to vector<64x128xf32>
    %162 = arith.mulf %159, %161 : vector<64x128xf32>
    %163 = arith.addf %158, %162 : vector<64x128xf32>
    %cst_46 = arith.constant 0.000000e+00 : f32
    %164 = vector.broadcast %cst_46 : f32 to vector<64x128xf32>
    %165 = arith.cmpf oge, %163, %164 : vector<64x128xf32>
    %cst_47 = arith.constant 0.00999999977 : f32
    %166 = vector.broadcast %cst_47 : f32 to vector<64x128xf32>
    %167 = arith.mulf %166, %163 : vector<64x128xf32>
    %168 = arith.select %165, %163, %167 : vector<64x128xi1>, vector<64x128xf32>
    %169 = arith.truncf %168 : vector<64x128xf32> to vector<64x128xbf16>
    %c0_48 = arith.constant 0 : index
    %c0_49 = arith.constant 0 : index
    %170 = vector.load %arg13[%c0_48, %c0_49] : memref<128x128xbf16, #tpu.memory_space<vmem>>, vector<128x128xbf16>
    %cst_50 = arith.constant dense<0.000000e+00> : vector<64x128xf32>
    %171 = tpu.matmul %169, %170, %cst_50 {dimension_numbers = #tpu.dot_dimension_numbers<[1], [0], [0], [1], [0, 0, 1, 1], [], []>} : vector<64x128xbf16>, vector<128x128xbf16>, vector<64x128xf32> -> vector<64x128xf32>
    %c0_51 = arith.constant 0 : index
    %c0_52 = arith.constant 0 : index
    %172 = vector.load %arg14[%c0_51, %c0_52] : memref<1x128xf32, #tpu.memory_space<vmem>>, vector<1x128xf32>
    %173 = vector.broadcast %172 : vector<1x128xf32> to vector<64x128xf32>
    %174 = arith.addf %171, %173 : vector<64x128xf32>
    %c0_53 = arith.constant 0 : index
    %c0_54 = arith.constant 0 : index
    %175 = vector.load %arg15[%c0_53, %c0_54] : memref<1x128xf32, #tpu.memory_space<vmem>>, vector<1x128xf32>
    %c0_55 = arith.constant 0 : index
    %c0_56 = arith.constant 0 : index
    %176 = vector.load %arg16[%c0_55, %c0_56] : memref<1x128xf32, #tpu.memory_space<vmem>>, vector<1x128xf32>
    %cst_57 = arith.constant dense<0.000000e+00> : vector<128xf32>
    %177 = vector.multi_reduction <add>, %174, %cst_57 [0] : vector<64x128xf32> to vector<128xf32>
    %178 = vector.shape_cast %177 : vector<128xf32> to vector<1x128xf32>
    %cst_58 = arith.constant 1.562500e-02 : f32
    %179 = vector.broadcast %cst_58 : f32 to vector<1x128xf32>
    %180 = arith.mulf %178, %179 : vector<1x128xf32>
    %181 = arith.mulf %174, %174 : vector<64x128xf32>
    %cst_59 = arith.constant dense<0.000000e+00> : vector<128xf32>
    %182 = vector.multi_reduction <add>, %181, %cst_59 [0] : vector<64x128xf32> to vector<128xf32>
    %183 = vector.shape_cast %182 : vector<128xf32> to vector<1x128xf32>
    %cst_60 = arith.constant 1.562500e-02 : f32
    %184 = vector.broadcast %cst_60 : f32 to vector<1x128xf32>
    %185 = arith.mulf %183, %184 : vector<1x128xf32>
    %186 = arith.mulf %180, %180 : vector<1x128xf32>
    %187 = arith.subf %185, %186 : vector<1x128xf32>
    %cst_61 = arith.constant 0.000000e+00 : f32
    %188 = vector.broadcast %cst_61 : f32 to vector<1x128xf32>
    %189 = arith.maximumf %187, %188 : vector<1x128xf32>
    %190 = vector.broadcast %180 : vector<1x128xf32> to vector<64x128xf32>
    %191 = arith.subf %174, %190 : vector<64x128xf32>
    %cst_62 = arith.constant 9.99999974E-6 : f32
    %192 = vector.broadcast %cst_62 : f32 to vector<1x128xf32>
    %193 = arith.addf %189, %192 : vector<1x128xf32>
    %194 = math.rsqrt %193 : vector<1x128xf32>
    %195 = vector.broadcast %194 : vector<1x128xf32> to vector<64x128xf32>
    %196 = arith.mulf %191, %195 : vector<64x128xf32>
    %197 = vector.broadcast %175 : vector<1x128xf32> to vector<64x128xf32>
    %198 = arith.mulf %196, %197 : vector<64x128xf32>
    %199 = vector.broadcast %176 : vector<1x128xf32> to vector<64x128xf32>
    %200 = arith.addf %198, %199 : vector<64x128xf32>
    %cst_63 = arith.constant 0.000000e+00 : f32
    %201 = vector.broadcast %cst_63 : f32 to vector<64x128xf32>
    %202 = arith.cmpf oge, %200, %201 : vector<64x128xf32>
    %cst_64 = arith.constant 0.00999999977 : f32
    %203 = vector.broadcast %cst_64 : f32 to vector<64x128xf32>
    %204 = arith.mulf %203, %200 : vector<64x128xf32>
    %205 = arith.select %202, %200, %204 : vector<64x128xi1>, vector<64x128xf32>
    %206 = arith.truncf %205 : vector<64x128xf32> to vector<64x128xbf16>
    %c0_65 = arith.constant 0 : index
    %c0_66 = arith.constant 0 : index
    %207 = vector.load %arg17[%c0_65, %c0_66] : memref<128x128xbf16, #tpu.memory_space<vmem>>, vector<128x128xbf16>
    %cst_67 = arith.constant dense<0.000000e+00> : vector<64x128xf32>
    %208 = tpu.matmul %206, %207, %cst_67 {dimension_numbers = #tpu.dot_dimension_numbers<[1], [0], [0], [1], [0, 0, 1, 1], [], []>} : vector<64x128xbf16>, vector<128x128xbf16>, vector<64x128xf32> -> vector<64x128xf32>
    %c0_68 = arith.constant 0 : index
    %c0_69 = arith.constant 0 : index
    %209 = vector.load %arg18[%c0_68, %c0_69] : memref<1x128xf32, #tpu.memory_space<vmem>>, vector<1x128xf32>
    %210 = vector.broadcast %209 : vector<1x128xf32> to vector<64x128xf32>
    %211 = arith.addf %208, %210 : vector<64x128xf32>
    %c0_70 = arith.constant 0 : index
    %c0_71 = arith.constant 0 : index
    %212 = vector.load %arg19[%c0_70, %c0_71] : memref<1x128xf32, #tpu.memory_space<vmem>>, vector<1x128xf32>
    %c0_72 = arith.constant 0 : index
    %c0_73 = arith.constant 0 : index
    %213 = vector.load %arg20[%c0_72, %c0_73] : memref<1x128xf32, #tpu.memory_space<vmem>>, vector<1x128xf32>
    %cst_74 = arith.constant dense<0.000000e+00> : vector<128xf32>
    %214 = vector.multi_reduction <add>, %211, %cst_74 [0] : vector<64x128xf32> to vector<128xf32>
    %215 = vector.shape_cast %214 : vector<128xf32> to vector<1x128xf32>
    %cst_75 = arith.constant 1.562500e-02 : f32
    %216 = vector.broadcast %cst_75 : f32 to vector<1x128xf32>
    %217 = arith.mulf %215, %216 : vector<1x128xf32>
    %218 = arith.mulf %211, %211 : vector<64x128xf32>
    %cst_76 = arith.constant dense<0.000000e+00> : vector<128xf32>
    %219 = vector.multi_reduction <add>, %218, %cst_76 [0] : vector<64x128xf32> to vector<128xf32>
    %220 = vector.shape_cast %219 : vector<128xf32> to vector<1x128xf32>
    %cst_77 = arith.constant 1.562500e-02 : f32
    %221 = vector.broadcast %cst_77 : f32 to vector<1x128xf32>
    %222 = arith.mulf %220, %221 : vector<1x128xf32>
    %223 = arith.mulf %217, %217 : vector<1x128xf32>
    %224 = arith.subf %222, %223 : vector<1x128xf32>
    %cst_78 = arith.constant 0.000000e+00 : f32
    %225 = vector.broadcast %cst_78 : f32 to vector<1x128xf32>
    %226 = arith.maximumf %224, %225 : vector<1x128xf32>
    %227 = vector.broadcast %217 : vector<1x128xf32> to vector<64x128xf32>
    %228 = arith.subf %211, %227 : vector<64x128xf32>
    %cst_79 = arith.constant 9.99999974E-6 : f32
    %229 = vector.broadcast %cst_79 : f32 to vector<1x128xf32>
    %230 = arith.addf %226, %229 : vector<1x128xf32>
    %231 = math.rsqrt %230 : vector<1x128xf32>
    %232 = vector.broadcast %231 : vector<1x128xf32> to vector<64x128xf32>
    %233 = arith.mulf %228, %232 : vector<64x128xf32>
    %234 = vector.broadcast %212 : vector<1x128xf32> to vector<64x128xf32>
    %235 = arith.mulf %233, %234 : vector<64x128xf32>
    %236 = vector.broadcast %213 : vector<1x128xf32> to vector<64x128xf32>
    %237 = arith.addf %235, %236 : vector<64x128xf32>
    %cst_80 = arith.constant 0.000000e+00 : f32
    %238 = vector.broadcast %cst_80 : f32 to vector<64x128xf32>
    %239 = arith.cmpf oge, %237, %238 : vector<64x128xf32>
    %cst_81 = arith.constant 0.00999999977 : f32
    %240 = vector.broadcast %cst_81 : f32 to vector<64x128xf32>
    %241 = arith.mulf %240, %237 : vector<64x128xf32>
    %242 = arith.select %239, %237, %241 : vector<64x128xi1>, vector<64x128xf32>
    %c0_82 = arith.constant 0 : index
    %c0_83 = arith.constant 0 : index
    %243 = vector.load %arg21[%c0_82, %c0_83] : memref<1x128xf32, #tpu.memory_space<vmem>>, vector<1x128xf32>
    %244 = vector.broadcast %243 : vector<1x128xf32> to vector<64x128xf32>
    %245 = arith.mulf %242, %244 : vector<64x128xf32>
    %cst_84 = arith.constant dense<0.000000e+00> : vector<64xf32>
    %246 = vector.multi_reduction <add>, %245, %cst_84 [1] : vector<64x128xf32> to vector<64xf32>
    %247 = vector.shape_cast %246 : vector<64xf32> to vector<64x1xf32>
    %c0_85 = arith.constant 0 : index
    %c0_86 = arith.constant 0 : index
    %248 = vector.load %arg22[%c0_85, %c0_86] : memref<1x1xf32, #tpu.memory_space<vmem>>, vector<1x1xf32>
    %249 = vector.broadcast %248 : vector<1x1xf32> to vector<64x1xf32>
    %250 = arith.addf %247, %249 : vector<64x1xf32>
    %c0_87 = arith.constant 0 : index
    %c0_88 = arith.constant 0 : index
    %251 = vector.load %arg23[%c0_87, %c0_88] : memref<64x1xf32, #tpu.memory_space<vmem>>, vector<64x1xf32>
    tpu.vector_store %arg23[%c0_87, %c0_88], %250 {strides = array<i32>} : memref<64x1xf32, #tpu.memory_space<vmem>>, vector<64x1xf32>,
    return
  }
}

</mosaic_0001>

<bundles_post_ra>
// kernel: tpu_custom_call.1
= control target key start
LH: loop header
LB: loop body
LE: loop exit
PB: predicated region body
PF: predicated region fallthrough
CT: control target
= control target key end

     0   :  { %s5378_s0 = inlined_call_operand.vmem [shape: f32[64,16], index: 0, kind: input, shape index: {}]   ;;  %s5379_s1 = inlined_call_operand.hbm [shape: bf16[64,64], index: 1, kind: input, shape index: {}]   ;;  %s5380_s2 = inlined_call_operand.vmem [shape: f32[64,5], index: 2, kind: input, shape index: {}]   ;;  %s5381_s3 = inlined_call_operand.vmem [shape: bf16[32,640], index: 3, kind: input, shape index: {}]   ;;  %s5382_s4 = inlined_call_operand.vmem [shape: f32[1,640], index: 4, kind: input, shape index: {}]   ;;  %s5383_s5 = inlined_call_operand.hbm [shape: bf16[256,640], index: 5, kind: input, shape index: {}]   ;;  %s5384_s6 = inlined_call_operand.vmem [shape: f32[1,640], index: 6, kind: input, shape index: {}]   ;;  %s5385_s7 = inlined_call_operand.hbm [shape: bf16[256,640], index: 7, kind: input, shape index: {}]   ;;  %s5386_s8 = inlined_call_operand.vmem [shape: f32[1,640], index: 8, kind: input, shape index: {}]   ;;  %s5387_s9 = inlined_call_operand.vmem [shape: f32[1,128], index: 9, kind: input, shape index: {}]   ;;  %s5388_s10 = inlined_call_operand.vmem [shape: f32[1,128], index: 10, kind: input, shape index: {}]   ;;  %s5389_s11 = inlined_call_operand.vmem [shape: f32[1,128], index: 11, kind: input, shape index: {}]   ;;  %s5390_s12 = inlined_call_operand.vmem [shape: f32[1,128], index: 12, kind: input, shape index: {}]   ;;  %s5391_s13 = inlined_call_operand.vmem [shape: bf16[128,128], index: 13, kind: input, shape index: {}]   ;;  %s5392_s14 = inlined_call_operand.vmem [shape: f32[1,128], index: 14, kind: input, shape index: {}]   ;;  %s5393_s15 = inlined_call_operand.vmem [shape: f32[1,128], index: 15, kind: input, shape index: {}]   ;;  %s5394_s16 = inlined_call_operand.vmem [shape: f32[1,128], index: 16, kind: input, shape index: {}]   ;;  %s5395_s17 = inlined_call_operand.hbm [shape: bf16[128,128], index: 17, kind: input, shape index: {}]   ;;  %s5396_s18 = inlined_call_operand.vmem [shape: f32[1,128], index: 18, kind: input, shape index: {}]   ;;  %s5397_s19 = inlined_call_operand.vmem [shape: f32[1,128], index: 19, kind: input, shape index: {}]   ;;  %s5398_s20 = inlined_call_operand.vmem [shape: f32[1,128], index: 20, kind: input, shape index: {}]   ;;  %s5399_s21 = inlined_call_operand.vmem [shape: f32[1,128], index: 21, kind: input, shape index: {}]   ;;  %s5400_s22 = inlined_call_operand.<no memory space> [shape: f32[1,1], index: 22, kind: input, shape index: {}]   ;;  %s5401_s23 = inlined_call_operand.vmem [shape: f32[64,1], index: 23, kind: output, shape index: {}]  }
   0x1   :  { %5461 = sst [smem:[#allocation46_spill]] %s5378_s0  ;;  %v28_v0 = vstv %s5400_s22 }
   0x2   :  { %5462 = sst [smem:[#allocation47_spill]] %s5379_s1  ;;  %29 = vst [vmem:[#allocation2] sm:$0x1] %v28_v0 }
   0x3   :  { %5463 = sst [smem:[#allocation48_spill]] %s5380_s2 }
   0x4   :  { %5464 = sst [smem:[#allocation49_spill]] %s5381_s3 }
   0x5   :  { %5465 = sst [smem:[#allocation50_spill]] %s5382_s4 }
   0x6   :  { %5466 = sst [smem:[#allocation51_spill]] %s5383_s5 }
   0x7   :  { %5467 = sst [smem:[#allocation52_spill]] %s5384_s6 }
   0x8   :  { %5468 = sst [smem:[#allocation53_spill]] %s5385_s7 }
   0x9   :  { %30 = vsyncpa [#allocation4], 0 }
   0xa   :  { %31 = vsyncpa [#allocation6], 0 }
   0xb   :  { %32 = vsyncpa [#allocation9], 0  ;;  %s4306_s24 = smov [#allocation5]  }
   0xc   :  { %s58_s25 = sshll.u32 %s4306_s24, 4  ;;  %s59_s25 = int_to_ptr.vmem [resolvable:$true] %s58_s25 }
   0xd   :  { %s4228_s5 = scalar_lea.vmem %s59_s25, 10240  ;;  %p4233_p1 = scmp.lt.s32.totalorder %s59_s25, %s59_s25 }
   0xe   :  { %p4229_p0 = scmp.ne.s32.totalorder %s59_s25, %s4228_s5  ;;  %p4234_p2 = scmp.lt.s32.totalorder %s4228_s5, %s4228_s5 }
  0x10   :  { %p4235_p3 = por %p4234_p2, %p4233_p1 }
  0x12   :  { %p4236_p4 = pnand %p4235_p3, %p4229_p0 }
  0x14   :  { %4239 = shalt.err (!%p4236_p4)
}
  0x15   :  { %s4307_s1 = smov 320   ;;  %s4308_s26 = smov 20  }
  0x16   :  { %s5469_s6 = sld [smem:[#allocation51_spill]]  ;;  %s4309_s27 = smov [#allocation3]  }
  0x17   :  { %s40_s7 = sshll.u32 %s4309_s27, 4  ;;  %s41_s7 = int_to_ptr.vmem [resolvable:$true] %s40_s7 }
  0x18   :  { %s4248_s28 = scalar_lea.vmem %s41_s7, 512  ;;  %p4253_p6 = scmp.lt.s32.totalorder %s41_s7, %s41_s7 }
  0x19   :  { %p4249_p5 = scmp.ne.s32.totalorder %s41_s7, %s4248_s28  ;;  %p4254_p7 = scmp.lt.s32.totalorder %s4248_s28, %s4248_s28 }
  0x1b   :  { %p4255_p8 = por %p4254_p7, %p4253_p6 }
  0x1c   :  { %64 = dma.hbm_to_vmem [thread:$0]  %s5469_s6, 10240, %s59_s25, [#allocation6], %s4307_s1, %s4307_s1, %s4308_s26  }
  0x1d   :  { %p4256_p9 = pnand %p4255_p8, %p4249_p5 }
  0x1f   :  { %4259 = shalt.err (!%p4256_p9)
}
  0x20   :  { %s4310_s29 = smov 64   ;;  %s4311_s3 = smov 4  }
  0x21   :  { %s5470_s30 = sld [smem:[#allocation47_spill]]  ;;  %s4312_s24 = smov [#allocation7]  }
  0x22   :  { %s72_s5 = sshll.u32 %s4312_s24, 4  ;;  %s4313_s22 = smov [#allocation8]   ;;  %s73_s5 = int_to_ptr.vmem [resolvable:$true] %s72_s5 }
  0x23   :  { %s102_s25 = sshll.u32 %s4313_s22, 4  ;;  %s4268_s2 = scalar_lea.vmem %s73_s5, 10240  ;;  %s103_s25 = int_to_ptr.vmem [resolvable:$true] %s102_s25 }
  0x24   :  { %p4269_p10 = scmp.ne.s32.totalorder %s73_s5, %s4268_s2  ;;  %p4273_p11 = scmp.lt.s32.totalorder %s73_s5, %s73_s5 }
  0x25   :  { %p4274_p12 = scmp.lt.s32.totalorder %s4268_s2, %s4268_s2 }
  0x27   :  { %46 = dma.hbm_to_vmem [thread:$0]  %s5470_s30, 512, %s41_s7, [#allocation4], %s4310_s29, %s4310_s29, %s4311_s3  }
  0x28   :  { %p4275_p13 = por %p4274_p12, %p4273_p11 }
  0x2a   :  { %p4276_p0 = pnand %p4275_p13, %p4269_p10 }
  0x2c   :  { %4279 = shalt.err (!%p4276_p0)
}
  0x2d   :  { %s5471_s28 = sld [smem:[#allocation53_spill]]  ;;  %s4288_s7 = scalar_lea.vmem %s103_s25, 1024 }
  0x2e   :  { %p4289_p1 = scmp.ne.s32.totalorder %s103_s25, %s4288_s7  ;;  %p4293_p2 = scmp.lt.s32.totalorder %s103_s25, %s103_s25 }
  0x2f   :  { %p4294_p3 = scmp.lt.s32.totalorder %s4288_s7, %s4288_s7 }
  0x31   :  { %p4295_p4 = por %p4294_p3, %p4293_p2 }
  0x33   :  { %78 = dma.hbm_to_vmem [thread:$0]  %s5471_s28, 10240, %s73_s5, [#allocation6], %s4307_s1, %s4307_s1, %s4308_s26  }
  0x34   :  { %p4296_p5 = pnand %p4295_p4, %p4289_p1 }
  0x36   :  { %4299 = shalt.err (!%p4296_p5)
}
  0x37   :  { %108 = dma.hbm_to_vmem [thread:$0]  %s5395_s17, 1024, %s103_s25, [#allocation9], %s4310_s29, %s4310_s29, %s4311_s3  }
  0x38   :  { %4300 = dma.done.wait [#allocation4], 512  }
  0x39   :  { %4301 = vsyncadd [#allocation4], 4294966784 }
  0x3a   :  { %4302 = dma.done.wait [#allocation6], 20480  }
  0x3b   :  { %4303 = vsyncadd [#allocation6], 4294946816 }
  0x3c   :  { %4304 = dma.done.wait [#allocation9], 1024  }
  0x3d   :  { %4305 = vsyncadd [#allocation9], 4294966272  ;;  %v4314_v1 = vmov 0   ;;  %s5472_s30 = sld [smem:[#allocation46_spill]]  ;;  %vm180_vm0 = vcmask 523264   ;;  %v4487_v12 = vld [vmem:[#allocation3] sm:$0xff]  }
  0x3e   :  { %3920 = vset.pattern.permute.xlu1 %v4314_v1  ;;  %419 = vmatprep.mubr.bf16.mxu1 %v4314_v1  ;;  %s4315_s1 = smov 16   ;;  %s5473_s5 = sld [smem:[#allocation48_spill]]  ;;  %v3951_v17 = vld [vmem:[#allocation3 + $0x8] sm:$0xff]   ;;  %v3952_v18 = vld [vmem:[#allocation3 + $0x10] sm:$0xff]   ;;  %v4316_v19 = vmov 1   ;;  %v3953_v20 = vld [vmem:[#allocation3 + $0x18] sm:$0xff]  }
  0x3f   :  { %3806 = vmatprep.mubr.msk.bf16.mxu0 %vm180_vm0, %v4487_v12  ;;  %s5474_s22 = sld [smem:[#allocation49_spill]]  ;;  %v4317_v30 = vmov 2   ;;  %v4318_v34 = vmov 3   ;;  %v4319_v35 = vmov 4   ;;  %vm378_vm1 = vcmask 261120  }
  0x40   :  { %3924 = vset.pattern.permute.xlu0 %v4317_v30  ;;  %vm274_vm2 = vcmask 130048   ;;  %s5491_s25 = sld [smem:[#allocation50_spill]] }
  0x41   :  { %s5514_s7 = sld [smem:[#allocation52_spill]] }
  0x43   :  { %v154_v2 = vld [vmem:[%s5472_s30 + $0x30] sm:$0xff]  ;;  %v155_v3 = vld [vmem:[%s5472_s30 + $0x38] sm:$0xff]  ;;  %v152_v4 = vld [vmem:[%s5472_s30 + $0x20] sm:$0xff] }
  0x44   :  { %v159_v5 = vpack.c.bf16 %v155_v3, %v154_v2  ;;  %v153_v6 = vld [vmem:[%s5472_s30 + $0x28] sm:$0xff]  ;;  %v150_v7 = vld [vmem:[%s5472_s30 + $0x10] sm:$0xff]  ;;  %v151_v8 = vld [vmem:[%s5472_s30 + $0x18] sm:$0xff] }
  0x45   :  { %v158_v9 = vpack.c.bf16 %v153_v6, %v152_v4  ;;  %v148_v10 = vld [vmem:[%s5472_s30] sm:$0xff]  ;;  %v149_v11 = vld [vmem:[%s5472_s30 + $0x8] sm:$0xff]  ;;  %v157_v14 = vpack.c.bf16 %v151_v8, %v150_v7  ;;  %v142_v24 = vld [vmem:[%s5473_s5 + $0x10] sm:$0xff] }
  0x46   :  { %3798 = vmatprep.subr.bf16.mxu0 %v159_v5  ;;  %v156_v13 = vpack.c.bf16 %v149_v11, %v148_v10  ;;  %v4494_v15 = vld [vmem:[%s5473_s5 + $0x8] sm:$0xff]  ;;  %v140_v16 = vld [vmem:[%s5473_s5] sm:$0xff]  ;;  %v143_v31 = vld [vmem:[%s5473_s5 + $0x18] sm:$0xff] }
  0x47   :  { %3799 = vmatpush3.bf16.msra.mxu0 %v159_v5  ;;  %270 = vrot.lane.b32.xlu1 %v158_v9, %s4315_s1  ;;  %v3954_v21 = vld [vmem:[%s5474_s22 + $0x2c] ss:$20 sps:$4 sm:$0xff]   ;;  %v3956_v22 = vld [vmem:[%s5474_s22 + $0x30] ss:$20 sps:$4 sm:$0xff]   ;;  %v3958_v23 = vld [vmem:[%s5474_s22 + $0x34] ss:$20 sps:$4 sm:$0xff]  }
  0x48   :  { %3800 = vmatprep.subr.bf16.mxu0 %v158_v9  ;;  %266 = vrot.lane.b32.xlu0 %v156_v13, %s4315_s1  ;;  %v3959_v25 = vld [vmem:[%s5474_s22 + $0x28] ss:$20 sps:$4 sm:$0xff]   ;;  %v3960_v26 = vld [vmem:[%s5474_s22 + $0x4] ss:$20 sps:$4 sm:$0xff]   ;;  %v3964_v27 = vld [vmem:[%s5474_s22 + $0xc] ss:$20 sps:$4 sm:$0xff]  }
  0x49   :  { %399 = vmatprep.subr.bf16.mxu1 %v3954_v21  ;;  %v3962_v28 = vld [vmem:[%s5474_s22 + $0x8] ss:$20 sps:$4 sm:$0xff]   ;;  %v3965_v29 = vld [vmem:[%s5474_s22] ss:$20 sps:$4 sm:$0xff]   ;;  %v4544_v32 = vld [vmem:[%s5474_s22 + $0x38] ss:$20 sps:$4 sm:$0xff]  }
  0x4a   :  { %400 = vmatpush1.bf16.msra.mxu1 %v3959_v25  ;;  %v144_v33 = vld [vmem:[%s5473_s5 + $0x20] sm:$0xff]  ;;  %v145_v36 = vld [vmem:[%s5473_s5 + $0x28] sm:$0xff]  ;;  %v146_v37 = vld [vmem:[%s5473_s5 + $0x30] sm:$0xff] }
  0x4b   :  { %3801 = vmatpush3.bf16.msra.mxu0 %v158_v9  ;;  %272 = vrot.lane.b32.xlu1 %v159_v5, %s4315_s1  ;;  %v147_v38 = vld [vmem:[%s5473_s5 + $0x38] sm:$0xff]  ;;  %v3967_v47 = vld [vmem:[%s5474_s22 + $0x10] ss:$20 sps:$4 sm:$0xff]  }
  0x4c   :  { %3802 = vmatprep.subr.bf16.mxu0 %v157_v14  ;;  %268 = vrot.lane.b32.xlu0 %v157_v14, %s4315_s1 }
  0x4d   :  { %401 = vmatprep.subr.bf16.mxu1 %v3960_v26 }
  0x4e   :  { %402 = vmatpush1.bf16.msra.mxu1 %v3965_v29 }
  0x4f   :  { %3803 = vmatpush3.bf16.msra.mxu0 %v157_v14  ;;  %605 = vperm.xlu1 %3920, %v4494_v15  }
  0x50   :  { %3804 = vmatprep.subr.bf16.mxu0 %v156_v13  ;;  %695 = vperm.xlu0 %3924, %v140_v16  }
  0x51   :  { %3814 = vmatprep.subr.bf16.mxu1 %v4544_v32 }
  0x53   :  { %3805 = vmatpush3.bf16.msra.mxu0 %v156_v13  ;;  %3921 = vset.pattern.permute.xlu1 %v4316_v19 }
  0x54   :  { %647 = vperm.xlu1 %3921, %v140_v16   ;;  %472 = vmatprep.subr.bf16.mxu0 %v3958_v23 }
  0x55   :  { %707 = vperm.xlu0 %3924, %v143_v31  }
  0x56   :  { %3807 = vmatmul.mubr.msk.bf16.vlgmr.msra.gmra.mxu0 %vm180_vm0, %v3951_v17 }
  0x57   :  { %3810 = vmatprep.mubr.msk.bf16.mxu0 %vm180_vm0, %v3952_v18  ;;  %473 = vmatpush1.bf16.msra.mxu0 %v3956_v22 }
  0x58   :  { %3922 = vset.pattern.permute.xlu1 %v4314_v1  ;;  %474 = vmatprep.subr.bf16.mxu0 %v3964_v27  ;;  %v3968_v27 = vld [vmem:[#allocation5 + $0x118] ss:$20 sps:$4 sm:$0xff]  }
  0x59   :  { %610 = vperm.xlu1 %3922, %v142_v24   ;;  %711 = vperm.xlu0 %3924, %v144_v33  }
  0x5b   :  { %475 = vmatpush1.bf16.msra.mxu0 %v3962_v28  ;;  %v3970_v28 = vld [vmem:[#allocation5 + $0x11c] ss:$20 sps:$4 sm:$0xff]  }
  0x5c   :  { %1561 = vmatprep.subr.bf16.mxu0 %v3970_v28 }
  0x5d   :  { %3923 = vset.pattern.permute.xlu1 %v4316_v19  ;;  %3935 = vset.pattern.permute.xlu0 %v4314_v1 }
  0x5e   :  { %3811 = vmatmul.mubr.msk.bf16.gmra.mxu0 %vm180_vm0, %v3953_v20  ;;  %655 = vperm.xlu1 %3923, %v142_v24   ;;  %v301_v20 = vlaneseq }
  0x5f   :  { %492 = vmatprep.mubr.bf16.mxu0 %v4314_v1  ;;  %600 = vperm.xlu0 %3935, %v140_v16  }
  0x60   :  { %v4656_v29 = vshrl.u32 %v301_v20, 7  ;;  %v3994_v20 = vld [vmem:[#allocation5 + $0x7c] ss:$20 sps:$4 sm:$0xff]  }
  0x62   :  { %3925 = vset.pattern.permute.xlu1 %v4317_v30 }
  0x63   :  { %699 = vperm.xlu1 %3925, %v4494_v15   ;;  %630 = vperm.xlu0 %3935, %v146_v37  }
  0x67   :  { %3926 = vset.pattern.permute.xlu1 %v4314_v1  ;;  %3938 = vset.pattern.permute.xlu0 %v4318_v34 }
  0x68   :  { %615 = vperm.xlu1 %3926, %v143_v31   ;;  %747 = vperm.xlu0 %3938, %v4494_v15  }
  0x6c   :  { %3927 = vset.pattern.permute.xlu1 %v4317_v30  ;;  %759 = vperm.xlu0 %3938, %v144_v33  }
  0x6d   :  { %703 = vperm.xlu1 %3927, %v142_v24  }
  0x70   :  { %3941 = vset.pattern.permute.xlu0 %v4316_v19 }
  0x71   :  { %3928 = vset.pattern.permute.xlu1 %v4318_v34  ;;  %651 = vperm.xlu0 %3941, %v4494_v15  }
  0x72   :  { %743 = vperm.xlu1 %3928, %v140_v16  }
  0x75   :  { %659 = vperm.xlu0 %3941, %v143_v31  }
  0x76   :  { %3929 = vset.pattern.permute.xlu1 %v4314_v1 }
  0x77   :  { %620 = vperm.xlu1 %3929, %v144_v33  }
  0x79   :  { %675 = vperm.xlu0 %3941, %v147_v38  }
  0x7b   :  { %3930 = vset.pattern.permute.xlu1 %v4316_v19 }
  0x7c   :  { %663 = vperm.xlu1 %3930, %v144_v33  }
  0x7d   :  { %3944 = vset.pattern.permute.xlu0 %v4319_v35 }
  0x7e   :  { %795 = vperm.xlu0 %3944, %v4494_v15  }
  0x80   :  { %3931 = vset.pattern.permute.xlu1 %v4318_v34 }
  0x81   :  { %751 = vperm.xlu1 %3931, %v142_v24  }
  0x82   :  { %807 = vperm.xlu0 %3944, %v144_v33   ;;  %v4661_v33 = vsub.s32 1, %v4656_v29 }
  0x84   :  { %5487 = vst [vmem:[#allocation25_spill] sm:$0xff] %v4661_v33 }
  0x85   :  { %3932 = vset.pattern.permute.xlu1 %v4319_v35 }
  0x86   :  { %791 = vperm.xlu1 %3932, %v140_v16   ;;  %811 = vperm.xlu0 %3944, %v145_v36  }
  0x8a   :  { %3933 = vset.pattern.permute.xlu1 %v4314_v1  ;;  %815 = vperm.xlu0 %3944, %v146_v37  }
  0x8b   :  { %625 = vperm.xlu1 %3933, %v145_v36  }
  0x8f   :  { %3934 = vset.pattern.permute.xlu1 %v4316_v19 }
  0x90   :  { %667 = vperm.xlu1 %3934, %v145_v36  }
  0x94   :  { %3936 = vset.pattern.permute.xlu1 %v4318_v34 }
  0x95   :  { %755 = vperm.xlu1 %3936, %v143_v31  }
  0x99   :  { %3937 = vset.pattern.permute.xlu1 %v4319_v35 }
  0x9a   :  { %799 = vperm.xlu1 %3937, %v142_v24  }
  0x9e   :  { %3939 = vset.pattern.permute.xlu1 %v4316_v19 }
  0x9f   :  { %671 = vperm.xlu1 %3939, %v146_v37  }
  0xa3   :  { %3940 = vset.pattern.permute.xlu1 %v4317_v30 }
  0xa4   :  { %715 = vperm.xlu1 %3940, %v145_v36  }
  0xa8   :  { %3942 = vset.pattern.permute.xlu1 %v4319_v35 }
  0xa9   :  { %803 = vperm.xlu1 %3942, %v143_v31  }
  0xad   :  { %3943 = vset.pattern.permute.xlu1 %v4314_v1 }
  0xae   :  { %635 = vperm.xlu1 %3943, %v147_v38  }
  0xb2   :  { %3945 = vset.pattern.permute.xlu1 %v4317_v30 }
  0xb3   :  { %719 = vperm.xlu1 %3945, %v146_v37  }
  0xb7   :  { %3946 = vset.pattern.permute.xlu1 %v4318_v34 }
  0xb8   :  { %763 = vperm.xlu1 %3946, %v145_v36  }
  0xb9   :  { %v271_v55 = vpop.permute.xlu1 %270 }
  0xba   :  { %v267_v44 = vpop.permute.xlu0 %266 }
  0xbc   :  { %3947 = vset.pattern.permute.xlu1 %v4317_v30  ;;  %v3976_v30 = vld [vmem:[#allocation5 + $0xf4] ss:$20 sps:$4 sm:$0xff]  }
  0xbd   :  { %723 = vperm.xlu1 %3947, %v147_v38   ;;  %v273_v58 = vpop.permute.xlu1 %272 }
  0xbe   :  { %v269_v50 = vpop.permute.xlu0 %268 }
  0xc1   :  { %3948 = vset.pattern.permute.xlu1 %v4318_v34 }
  0xc2   :  { %767 = vperm.xlu1 %3948, %v146_v37  }
  0xc6   :  { %771 = vperm.xlu1 %3948, %v147_v38  }
  0xca   :  { %3949 = vset.pattern.permute.xlu1 %v4319_v35  ;;  %v4602_v60 = vpop.permute.xlu1 %605  ;;  %v3974_v35 = vld [vmem:[#allocation5 + $0xf0] ss:$20 sps:$4 sm:$0xff]  }
  0xcb   :  { %819 = vperm.xlu1 %3949, %v147_v38   ;;  %5475 = vst [vmem:[#allocation13_spill] sm:$0xff] %v4602_v60  ;;  %v4628_v9 = vpop.permute.xlu0 %695  ;;  %v3982_v38 = vld [vmem:[#allocation5 + $0xcc] ss:$20 sps:$4 sm:$0xff]  }
  0xcc   :  { %5481 = vst [vmem:[#allocation19_spill] sm:$0xff] %v4628_v9 }
  0xcf   :  { %v4604_v61 = vpop.permute.xlu1 %647 }
  0xd0   :  { %5476 = vst [vmem:[#allocation14_spill] sm:$0xff] %v4604_v61  ;;  %v4632_v11 = vpop.permute.xlu0 %707 }
  0xd4   :  { %v4606_v62 = vpop.permute.xlu1 %610  ;;  %v4636_v13 = vpop.permute.xlu0 %711 }
  0xd5   :  { %5477 = vst [vmem:[#allocation15_spill] sm:$0xff] %v4606_v62 }
  0xd9   :  { %v4608_v63 = vpop.permute.xlu1 %655 }
  0xda   :  { %5478 = vst [vmem:[#allocation16_spill] sm:$0xff] %v4608_v63  ;;  %v4640_v15 = vpop.permute.xlu0 %600 }
  0xdb   :  { %5483 = vst [vmem:[#allocation21_spill] sm:$0xff] %v4640_v15 }
  0xde   :  { %v4610_v0 = vpop.permute.xlu1 %699  ;;  %v4644_v17 = vpop.permute.xlu0 %630 }
  0xdf   :  { %5479 = vst [vmem:[#allocation17_spill] sm:$0xff] %v4610_v0  ;;  %5485 = vst [vmem:[#allocation23_spill] sm:$0xff] %v4644_v17 }
  0xe3   :  { %v4652_v24 = vpop.permute.xlu0 %747 }
 0x116   :  { %v3808_v39 = vpop.f32.mrf.mxu0 }
 0x118   :  { %v227_v40 = vpop.f32.mrf.mxu0 }
 0x11a   :  { %v3809_v41 = vpop.f32.mrf.mxu0 }
 0x11b   :  { %v259_v49 = vpack.c.bf16 %v3809_v41, %v3808_v39  ;;  %v4668_v39 = vsub.s32 0, %v4656_v29  ;;  %v4675_v41 = vld [vmem:[%s5491_s25] sm:$0x1f] }
 0x11c   :  { %v230_v42 = vpop.f32.mrf.mxu0 }
 0x11d   :  { %v258_v43 = vpack.c.bf16 %v230_v42, %v227_v40  ;;  %v280_v52 = vsel %vm274_vm2, %v259_v49, %v269_v50  ;;  %5489 = vst [vmem:[#allocation27_spill] sm:$0xff] %v4668_v39  ;;  %v4670_v40 = vpop.permute.xlu0 %759  ;;  %v4687_v49 = vrot.slane %v4675_v41, %v4668_v39  ;;  %v4690_v50 = vsub.s32 2, %v4656_v29 }
 0x11e   :  { %v3812_v45 = vpop.f32.mrf.mxu0  ;;  %5490 = vst [vmem:[#allocation28_spill] sm:$0xff] %v4670_v40 }
 0x11f   :  { %v277_v46 = vsel %vm274_vm2, %v258_v43, %v267_v44  ;;  %v4681_v44 = vrot.slane %v4675_v41, %v4661_v33  ;;  %5492 = vst [vmem:[#allocation29_spill] sm:$0xff] %v4690_v50  ;;  %v4707_v28 = vrot.slane %v4675_v41, %v4690_v50 }
 0x120   :  { %3456 = vmatmul.mubr.msk.bf16.vlgmr.msra.gmra.mxu1 %vm378_vm1, %v277_v46  ;;  %3460 = vmatmul.mubr.msk.bf16.vlgmr.msra.gmra.mxu0 %vm378_vm1, %v277_v46  ;;  %v243_v48 = vpop.f32.mrf.mxu0 }
 0x121   :  { %429 = vmatprep.mubr.bf16.mxu1 %v4314_v1  ;;  %502 = vmatprep.mubr.bf16.mxu0 %v4314_v1 }
 0x122   :  { %3815 = vmatpush3.bf16.msra.mxu1 %v4544_v32  ;;  %v3813_v51 = vpop.f32.mrf.mxu0  ;;  %1562 = vmatpush1.bf16.msra.mxu0 %v3968_v27 }
 0x123   :  { %3816 = vmatprep.subr.bf16.mxu1 %v3967_v47  ;;  %v261_v57 = vpack.c.bf16 %v3813_v51, %v3812_v45  ;;  %1563 = vmatprep.subr.bf16.mxu0 %v3976_v30  ;;  %v3980_v45 = vld [vmem:[#allocation5 + $0xc8] ss:$20 sps:$4 sm:$0xff]  }
 0x124   :  { %v246_v53 = vpop.f32.mrf.mxu0 }
 0x125   :  { %v260_v54 = vpack.c.bf16 %v246_v53, %v243_v48  ;;  %v286_v59 = vsel %vm274_vm2, %v261_v57, %v273_v58  ;;  %v3988_v48 = vld [vmem:[#allocation5 + $0xa4] ss:$20 sps:$4 sm:$0xff]   ;;  %v4700_v57 = vsub.s32 3, %v4656_v29 }
 0x126   :  { %3817 = vmatpush3.bf16.msra.mxu1 %v3967_v47  ;;  %1564 = vmatpush1.bf16.msra.mxu0 %v3974_v35 }
 0x127   :  { %v283_v56 = vsel %vm274_vm2, %v260_v54, %v271_v55  ;;  %1565 = vmatprep.subr.bf16.mxu0 %v3982_v38  ;;  %v4697_v55 = vpop.permute.xlu0 %651  ;;  %5495 = vst [vmem:[#allocation32_spill] sm:$0xff] %v4700_v57  ;;  %v4721_v50 = vrot.slane %v4675_v41, %v4700_v57 }
 0x128   :  { %3457 = vmatmul.mubr.msk.bf16.gmra.mxu1 %vm378_vm1, %v280_v52  ;;  %3461 = vmatmul.mubr.msk.bf16.gmra.mxu0 %vm378_vm1, %v280_v52  ;;  %5494 = vst [vmem:[#allocation31_spill] sm:$0xff] %v4697_v55 }
 0x129   :  { %439 = vmatprep.mubr.bf16.mxu1 %v4314_v1  ;;  %512 = vmatprep.mubr.bf16.mxu0 %v4314_v1 }
 0x12a   :  { %1566 = vmatpush1.bf16.msra.mxu0 %v3980_v45 }
 0x12b   :  { %1567 = vmatprep.subr.bf16.mxu0 %v3988_v48  ;;  %v4715_v33 = vpop.permute.xlu0 %659 }
 0x12f   :  { %v4736_v17 = vpop.permute.xlu0 %675 }
 0x130   :  { %3458 = vmatmul.mubr.msk.bf16.gmra.mxu1 %vm378_vm1, %v283_v56  ;;  %3462 = vmatmul.mubr.msk.bf16.gmra.mxu0 %vm378_vm1, %v283_v56  ;;  %5497 = vst [vmem:[#allocation34_spill] sm:$0xff] %v4736_v17 }
 0x131   :  { %449 = vmatprep.mubr.bf16.mxu1 %v4314_v1  ;;  %522 = vmatprep.mubr.bf16.mxu0 %v4314_v1  ;;  %v4612_v1 = vpop.permute.xlu1 %615 }
 0x135   :  { %v4614_v2 = vpop.permute.xlu1 %703 }
 0x138   :  { %3459 = vmatmul.mubr.msk.bf16.gmra.mxu1 %vm378_vm1, %v286_v59  ;;  %3463 = vmatmul.mubr.msk.bf16.gmra.mxu0 %vm378_vm1, %v286_v59 }
 0x139   :  { %3818 = vmatprep.mubr.msk.bf16.mxu1 %vm378_vm1, %v277_v46  ;;  %v4616_v3 = vpop.permute.xlu1 %743 }
 0x13d   :  { %v4618_v4 = vpop.permute.xlu1 %620 }
 0x140   :  { %3819 = vmatmul.mubr.msk.bf16.vlgmr.msra.gmra.mxu1 %vm378_vm1, %v280_v52 }
 0x141   :  { %3822 = vmatprep.mubr.msk.bf16.mxu1 %vm378_vm1, %v283_v56  ;;  %v4620_v5 = vpop.permute.xlu1 %663  ;;  %v3986_v56 = vld [vmem:[#allocation5 + $0xa0] ss:$20 sps:$4 sm:$0xff]  }
 0x142   :  { %5480 = vst [vmem:[#allocation18_spill] sm:$0xff] %v4620_v5  ;;  %1568 = vmatpush1.bf16.msra.mxu0 %v3986_v56 }
 0x143   :  { %1569 = vmatprep.subr.bf16.mxu0 %v3994_v20 }
 0x145   :  { %v4622_v6 = vpop.permute.xlu1 %751 }
 0x148   :  { %3823 = vmatmul.mubr.msk.bf16.gmra.mxu1 %vm378_vm1, %v286_v59 }
 0x149   :  { %3834 = vmatprep.mubr.msk.bf16.mxu1 %vm180_vm0, %v4487_v12  ;;  %v4624_v7 = vpop.permute.xlu1 %791 }
 0x14d   :  { %v4626_v8 = vpop.permute.xlu1 %625 }
 0x151   :  { %v4630_v10 = vpop.permute.xlu1 %667 }
 0x155   :  { %v4634_v12 = vpop.permute.xlu1 %755 }
 0x159   :  { %v4638_v14 = vpop.permute.xlu1 %799 }
 0x15a   :  { %5482 = vst [vmem:[#allocation20_spill] sm:$0xff] %v4638_v14 }
 0x15d   :  { %v4642_v16 = vpop.permute.xlu1 %671 }
 0x15e   :  { %5484 = vst [vmem:[#allocation22_spill] sm:$0xff] %v4642_v16 }
 0x161   :  { %v4648_v21 = vpop.permute.xlu1 %715 }
 0x162   :  { %5486 = vst [vmem:[#allocation24_spill] sm:$0xff] %v4648_v21 }
 0x165   :  { %v4663_v34 = vpop.permute.xlu1 %803 }
 0x166   :  { %5488 = vst [vmem:[#allocation26_spill] sm:$0xff] %v4663_v34  ;;  %v4000_v34 = vld [vmem:[#allocation5 + $0x54] ss:$20 sps:$4 sm:$0xff]  }
 0x169   :  { %v4692_v51 = vpop.permute.xlu1 %635 }
 0x16a   :  { %5493 = vst [vmem:[#allocation30_spill] sm:$0xff] %v4692_v51 }
 0x16d   :  { %v4717_v48 = vpop.permute.xlu1 %719 }
 0x16e   :  { %5496 = vst [vmem:[#allocation33_spill] sm:$0xff] %v4717_v48 }
 0x1e0   :  { %v421_v18 = vpop.f32.mrf.mxu1  ;;  %v4646_v19 = vpop.f32.mrf.mxu0 }
 0x1e1   :  { %v422_v27 = vadd.f32 %v421_v18, %v4687_v49  ;;  %v3992_v18 = vld [vmem:[#allocation5 + $0x78] ss:$20 sps:$4 sm:$0xff]  }
 0x1e2   :  { %v423_v22 = vpop.f32.mrf.mxu1  ;;  %v4650_v23 = vpop.f32.mrf.mxu0  ;;  %1570 = vmatpush1.bf16.msra.mxu0 %v3992_v18 }
 0x1e3   :  { %v424_v54 = vadd.f32 %v423_v22, %v4681_v44  ;;  %1571 = vmatprep.subr.bf16.mxu0 %v4000_v34 }
 0x1e4   :  { %v425_v25 = vpop.f32.mrf.mxu1  ;;  %v4654_v26 = vpop.f32.mrf.mxu0 }
 0x1e5   :  { %v678_v38 = vmul.f32 %v4604_v61, %v424_v54  ;;  %v426_v45 = vadd.f32 %v425_v25, %v4687_v49  ;;  %v638_v54 = vmul.f32 %v4640_v15, %v422_v27  ;;  %v495_v25 = vadd.f32 %v4646_v19, %v4707_v28  ;;  %v3998_v27 = vld [vmem:[#allocation5 + $0x50] ss:$20 sps:$4 sm:$0xff]  }
 0x1e6   :  { %v427_v31 = vpop.f32.mrf.mxu1  ;;  %v4658_v32 = vpop.f32.mrf.mxu0  ;;  %v499_v56 = vadd.f32 %v4654_v26, %v4707_v28  ;;  %v497_v19 = vadd.f32 %v4650_v23, %v4721_v50  ;;  %1572 = vmatpush1.bf16.msra.mxu0 %v3998_v27 }
 0x1e7   :  { %v428_v22 = vadd.f32 %v427_v31, %v4681_v44  ;;  %v686_v51 = vadd.f32 %v678_v38, %v638_v54  ;;  %v639_v14 = vmul.f32 %v4602_v60, %v426_v45  ;;  %v726_v26 = vmul.f32 %v4628_v9, %v495_v25  ;;  %v4745_v45 = vpop.permute.xlu1 %763  ;;  %v4767_v27 = vpop.permute.xlu0 %795 }
 0x1e8   :  { %v431_v36 = vpop.f32.mrf.mxu1  ;;  %v4665_v37 = vpop.f32.mrf.mxu0  ;;  %5498 = vst [vmem:[#allocation35_spill] sm:$0xff] %v4745_v45  ;;  %v727_v54 = vmul.f32 %v4610_v0, %v499_v56  ;;  %v774_v56 = vmul.f32 %v4616_v3, %v497_v19 }
 0x1e9   :  { %v432_v61 = vadd.f32 %v431_v36, %v4687_v49 }
 0x1ea   :  { %v433_v42 = vpop.f32.mrf.mxu1  ;;  %v4677_v43 = vpop.f32.mrf.mxu0 }
 0x1eb   :  { %v434_v39 = vadd.f32 %v433_v42, %v4681_v44  ;;  %v679_v42 = vmul.f32 %v4697_v55, %v428_v22  ;;  %v4006_v55 = vld [vmem:[#allocation5 + $0x2c] ss:$20 sps:$4 sm:$0xff]   ;;  %v640_v38 = vmul.f32 %v4606_v62, %v432_v61  ;;  %v501_v61 = vadd.f32 %v4658_v32, %v4721_v50 }
 0x1ec   :  { %v435_v46 = vpop.f32.mrf.mxu1  ;;  %v4683_v47 = vpop.f32.mrf.mxu0  ;;  %1573 = vmatprep.subr.bf16.mxu0 %v4006_v55 }
 0x1ed   :  { %v680_v20 = vmul.f32 %v4608_v63, %v434_v39  ;;  %v687_v15 = vadd.f32 %v679_v42, %v639_v14  ;;  %v505_v39 = vadd.f32 %v4665_v37, %v4707_v28  ;;  %v436_v23 = vadd.f32 %v435_v46, %v4687_v49  ;;  %v4004_v42 = vld [vmem:[#allocation5 + $0x28] ss:$20 sps:$4 sm:$0xff]  }
 0x1ee   :  { %v437_v52 = vpop.f32.mrf.mxu1  ;;  %v4694_v53 = vpop.f32.mrf.mxu0  ;;  %v4753_v63 = vsub.s32 4, %v4656_v29  ;;  %v734_v14 = vadd.f32 %v726_v26, %v686_v51  ;;  %v507_v37 = vadd.f32 %v4677_v43, %v4721_v50  ;;  %v4012_v29 = vld [vmem:[#allocation5 + $0x4] ss:$20 sps:$4 sm:$0xff]   ;;  %v509_v32 = vadd.f32 %v4683_v47, %v4707_v28  ;;  %1574 = vmatpush1.bf16.msra.mxu0 %v4004_v42 }
 0x1ef   :  { %v438_v36 = vadd.f32 %v437_v52, %v4681_v44  ;;  %v688_v25 = vadd.f32 %v680_v20, %v640_v38  ;;  %v735_v0 = vadd.f32 %v727_v54, %v687_v15  ;;  %v728_v51 = vmul.f32 %v4614_v2, %v505_v39  ;;  %v4781_v39 = vpop.permute.xlu1 %723  ;;  %v4010_v54 = vld [vmem:[#allocation5] ss:$20 sps:$4 sm:$0xff]   ;;  %1575 = vmatprep.subr.bf16.mxu0 %v4012_v29 }
 0x1f0   :  { %v441_v58 = vpop.f32.mrf.mxu1  ;;  %v4702_v59 = vpop.f32.mrf.mxu0  ;;  %v511_v43 = vadd.f32 %v4694_v53, %v4721_v50  ;;  %v641_v19 = vmul.f32 %v4612_v1, %v436_v23  ;;  %v4775_v15 = vrot.slane %v4675_v41, %v4753_v63  ;;  %v4777_v26 = vadd.f32 %v774_v56, %v734_v14  ;;  %5499 = vst [vmem:[#allocation36_spill] sm:$0xff] %v4781_v39  ;;  %v4018_v14 = vld [vmem:[#allocation5 + $0x25c] ss:$20 sps:$4 sm:$0xff]  }
 0x1f1   :  { %v681_v46 = vmul.f32 %v4715_v33, %v438_v36  ;;  %v775_v47 = vmul.f32 %v4652_v24, %v501_v61  ;;  %v736_v53 = vadd.f32 %v728_v51, %v688_v25  ;;  %v776_v38 = vmul.f32 %v4622_v6, %v507_v37 }
 0x1f2   :  { %v443_v30 = vpop.f32.mrf.mxu1  ;;  %v4710_v35 = vpop.f32.mrf.mxu0  ;;  %v729_v61 = vmul.f32 %v4632_v11, %v509_v32  ;;  %v777_v25 = vmul.f32 %v4634_v12, %v511_v43  ;;  %1576 = vmatpush1.bf16.msra.mxu0 %v4010_v54 }
 0x1f3   :  { %v444_v52 = vadd.f32 %v443_v30, %v4681_v44  ;;  %v442_v30 = vadd.f32 %v441_v58, %v4687_v49  ;;  %v515_v58 = vadd.f32 %v4702_v59, %v4707_v28  ;;  %v689_v23 = vadd.f32 %v681_v46, %v641_v19  ;;  %v4798_v32 = vpop.permute.xlu0 %807  ;;  %v4016_v19 = vld [vmem:[#allocation5 + $0x258] ss:$20 sps:$4 sm:$0xff]   ;;  %1577 = vmatprep.subr.bf16.mxu0 %v4018_v14 }
 0x1f4   :  { %v4723_v31 = vpop.f32.mrf.mxu1  ;;  %v4730_v48 = vpop.f32.mrf.mxu0  ;;  %v4790_v42 = vadd.f32 %v775_v47, %v735_v0  ;;  %5500 = vst [vmem:[#allocation37_spill] sm:$0xff] %v4798_v32 }
 0x1f5   :  { %v682_v55 = vmul.f32 %v4620_v5, %v444_v52  ;;  %v642_v59 = vmul.f32 %v4618_v4, %v442_v30  ;;  %v517_v52 = vadd.f32 %v4710_v35, %v4721_v50  ;;  %v730_v46 = vmul.f32 %v4636_v13, %v515_v58 }
 0x1f6   :  { %v447_v57 = vpop.f32.mrf.mxu1  ;;  %v4747_v18 = vpop.f32.mrf.mxu0  ;;  %v446_v35 = vadd.f32 %v4723_v31, %v4687_v49  ;;  %v784_v58 = vadd.f32 %v776_v38, %v736_v53  ;;  %1578 = vmatpush2.bf16.msra.mxu0 %v4016_v19  ;;  %v5506_v19 = vld [vmem:[#allocation33_spill] sm:$0xff] }
 0x1f7   :  { %v448_v41 = vadd.f32 %v447_v57, %v4681_v44  ;;  %v690_v30 = vadd.f32 %v682_v55, %v642_v59  ;;  %v519_v57 = vadd.f32 %v4730_v48, %v4707_v28  ;;  %v737_v55 = vadd.f32 %v729_v61, %v689_v23  ;;  %v4024_v59 = vld [vmem:[#allocation5 + $0x234] ss:$20 sps:$4 sm:$0xff]  }
 0x1f8   :  { %v451_v22 = vpop.f32.mrf.mxu1  ;;  %v524_v20 = vpop.f32.mrf.mxu0  ;;  %v778_v31 = vmul.f32 %v4670_v40, %v517_v52  ;;  %v643_v23 = vmul.f32 %v4626_v8, %v446_v35  ;;  %1579 = vmatprep.subr.bf16.mxu0 %v4024_v59 }
 0x1f9   :  { %v452_v51 = vadd.f32 %v451_v22, %v4687_v49  ;;  %v683_v47 = vmul.f32 %v4630_v10, %v448_v41  ;;  %v521_v22 = vadd.f32 %v4747_v18, %v4721_v50  ;;  %v738_v38 = vadd.f32 %v730_v46, %v690_v30  ;;  %v5502_v18 = vld [vmem:[#allocation23_spill] sm:$0xff] }
 0x1fa   :  { %v453_v34 = vpop.f32.mrf.mxu1  ;;  %v526_v56 = vpop.f32.mrf.mxu0  ;;  %v525_v52 = vadd.f32 %v524_v20, %v4707_v28  ;;  %v731_v61 = vmul.f32 %v4648_v21, %v519_v57  ;;  %v785_v30 = vadd.f32 %v777_v25, %v737_v55  ;;  %v5504_v21 = vld [vmem:[#allocation30_spill] sm:$0xff] }
 0x1fb   :  { %v454_v37 = vadd.f32 %v453_v34, %v4681_v44  ;;  %v5507_v25 = vld [vmem:[#allocation26_spill] sm:$0xff] }
 0x1fc   :  { %v455_v62 = vpop.f32.mrf.mxu1  ;;  %v528_v54 = vpop.f32.mrf.mxu0 }
 0x1fd   :  { %v529_v46 = vadd.f32 %v528_v54, %v4707_v28 }
 0x1fe   :  { %v457_v36 = vpop.f32.mrf.mxu1  ;;  %v530_v28 = vpop.f32.mrf.mxu0 }
 0x1ff   :  { %v458_v43 = vadd.f32 %v457_v36, %v4681_v44  ;;  %v684_v44 = vmul.f32 %v4642_v16, %v454_v37  ;;  %v4808_v36 = vpop.permute.xlu1 %767  ;;  %v5503_v16 = vld [vmem:[#allocation20_spill] sm:$0xff] }
 0x200   :  { %v3820_v5 = vpop.f32.mrf.mxu1  ;;  %5501 = vst [vmem:[#allocation38_spill] sm:$0xff] %v4808_v36 }
 0x201   :  { %v576_v34 = vadd.f32 %v3820_v5, %v4775_v15  ;;  %v456_v5 = vadd.f32 %v455_v62, %v4687_v49  ;;  %v685_v37 = vmul.f32 %v4736_v17, %v458_v43  ;;  %v4022_v62 = vld [vmem:[#allocation5 + $0x230] ss:$20 sps:$4 sm:$0xff]   ;;  %v691_v49 = vadd.f32 %v683_v47, %v643_v23 }
 0x202   :  { %v567_v29 = vpop.f32.mrf.mxu1  ;;  %v732_v47 = vmul.f32 %v5506_v19, %v525_v52  ;;  %v527_v23 = vadd.f32 %v526_v56, %v4721_v50  ;;  %1580 = vmatpush2.bf16.msra.mxu0 %v4022_v62  ;;  %v4036_v56 = vld [vmem:[#allocation5 + $0x1e4] ss:$20 sps:$4 sm:$0xff]  }
 0x203   :  { %v568_v0 = vadd.f32 %v567_v29, %v4775_v15  ;;  %v644_v29 = vmul.f32 %v5502_v18, %v452_v51  ;;  %v824_v40 = vmul.f32 %v5503_v16, %v576_v34  ;;  %v645_v51 = vmul.f32 %v5504_v21, %v456_v5  ;;  %v4823_v18 = vpop.permute.xlu0 %811 }
 0x204   :  { %v3821_v48 = vpop.f32.mrf.mxu1  ;;  %5505 = vst [vmem:[#allocation20_spill] sm:$0xff] %v4823_v18  ;;  %v786_v34 = vadd.f32 %v778_v31, %v738_v38  ;;  %v739_v31 = vadd.f32 %v731_v61, %v691_v49 }
 0x205   :  { %v822_v53 = vmul.f32 %v4624_v7, %v568_v0  ;;  %v579_v41 = vadd.f32 %v3821_v48, %v4775_v15  ;;  %v4030_v0 = vld [vmem:[#allocation5 + $0x20c] ss:$20 sps:$4 sm:$0xff]   ;;  %v779_v48 = vmul.f32 %v4745_v45, %v521_v22  ;;  %v692_v57 = vadd.f32 %v684_v44, %v644_v29  ;;  %v4832_v44 = vpop.permute.xlu1 %771 }
 0x206   :  { %v570_v14 = vpop.f32.mrf.mxu1  ;;  %v693_v22 = vadd.f32 %v685_v37, %v645_v51  ;;  %5508 = vst [vmem:[#allocation39_spill] sm:$0xff] %v4832_v44  ;;  %v4834_v5 = vadd.f32 %v824_v40, %v784_v58  ;;  %1581 = vmatprep.subr.bf16.mxu0 %v4030_v0  ;;  %v531_v37 = vadd.f32 %v530_v28, %v4721_v50  ;;  %v4034_v51 = vld [vmem:[#allocation5 + $0x1e0] ss:$20 sps:$4 sm:$0xff]  }
 0x207   :  { %v571_v35 = vadd.f32 %v570_v14, %v4775_v15  ;;  %v4826_v43 = vadd.f32 %v822_v53, %v4777_v26  ;;  %v825_v55 = vmul.f32 %v5507_v25, %v579_v41  ;;  %v4028_v26 = vld [vmem:[#allocation5 + $0x208] ss:$20 sps:$4 sm:$0xff]   ;;  %v733_v53 = vmul.f32 %v4781_v39, %v529_v46  ;;  %v4856_v0 = vpop.permute.xlu0 %815 }
 0x208   :  { %v3824_v20 = vpop.f32.mrf.mxu1  ;;  %v740_v29 = vadd.f32 %v732_v47, %v692_v57  ;;  %v856_v50 = vmul.f32 %v4834_v5, %v4834_v5  ;;  %5509 = vst [vmem:[#allocation40_spill] sm:$0xff] %v4856_v0  ;;  %1582 = vmatpush2.bf16.msra.mxu0 %v4028_v26  ;;  %v4112_v25 = vld [vmem:[#allocation7 + $0x54] ss:$20 sps:$4 sm:$0xff]  }
 0x209   :  { %v823_v54 = vmul.f32 %v4767_v27, %v571_v35  ;;  %v592_v52 = vadd.f32 %v3824_v20, %v4775_v15  ;;  %v854_v40 = vmul.f32 %v4826_v43, %v4826_v43  ;;  %v4846_v62 = vadd.f32 %v825_v55, %v785_v30  ;;  %v4858_v57 = vpop.permute.xlu1 %819  ;;  %1583 = vmatprep.subr.bf16.mxu0 %v4036_v56 }
 0x20a   :  { %v583_v59 = vpop.f32.mrf.mxu1  ;;  %v780_v35 = vmul.f32 %v4808_v36, %v527_v23  ;;  %v741_v20 = vadd.f32 %v733_v53, %v693_v22  ;;  %5510 = vst [vmem:[#allocation41_spill] sm:$0xff] %v4858_v57  ;;  %v787_v23 = vadd.f32 %v779_v48, %v739_v31 }
 0x20b   :  { %v584_v14 = vadd.f32 %v583_v59, %v4775_v15  ;;  %v4839_v38 = vadd.f32 %v823_v54, %v4790_v42  ;;  %v828_v55 = vmul.f32 %v4856_v0, %v592_v52  ;;  %v4042_v59 = vld [vmem:[#allocation5 + $0x1bc] ss:$20 sps:$4 sm:$0xff]  }
 0x20c   :  { %v3825_v41 = vpop.f32.mrf.mxu1  ;;  %v788_v22 = vadd.f32 %v780_v35, %v740_v29  ;;  %1584 = vmatpush2.bf16.msra.mxu0 %v4034_v51  ;;  %v5520_v0 = vld [vmem:[#allocation32_spill] sm:$0xff] }
 0x20d   :  { %v826_v58 = vmul.f32 %v4798_v32, %v584_v14  ;;  %v840_v61 = vadd.f32 %v4839_v38, %v4826_v43  ;;  %v855_v42 = vmul.f32 %v4839_v38, %v4839_v38  ;;  %v595_v49 = vadd.f32 %v3825_v41, %v4775_v15  ;;  %1585 = vmatprep.subr.bf16.mxu0 %v4042_v59 }
 0x20e   :  { %v586_v46 = vpop.f32.mrf.mxu1  ;;  %v781_v14 = vmul.f32 %v4832_v44, %v531_v37  ;;  %v836_v56 = vadd.f32 %v828_v55, %v788_v22  ;;  %v4048_v37 = vld [vmem:[#allocation5 + $0x194] ss:$20 sps:$4 sm:$0xff]  }
 0x20f   :  { %v587_v30 = vadd.f32 %v586_v46, %v4775_v15  ;;  %v841_v47 = vadd.f32 %v840_v61, %v4834_v5  ;;  %v862_v28 = vadd.f32 %v855_v42, %v854_v40  ;;  %v4863_v54 = vadd.f32 %v826_v58, %v786_v34  ;;  %v4040_v34 = vld [vmem:[#allocation5 + $0x1b8] ss:$20 sps:$4 sm:$0xff]  }
 0x210   :  { %v857_v15 = vmul.f32 %v4846_v62, %v4846_v62  ;;  %v829_v40 = vmul.f32 %v4858_v57, %v595_v49  ;;  %v789_v61 = vadd.f32 %v781_v14, %v741_v20  ;;  %1586 = vmatpush2.bf16.msra.mxu0 %v4040_v34  ;;  %v860_v49 = vmul.f32 %v836_v56, %v836_v56  ;;  %v5519_v57 = vld [vmem:[#allocation14_spill] sm:$0xff] }
 0x211   :  { %v827_v53 = vmul.f32 %v4823_v18, %v587_v30  ;;  %v863_v26 = vadd.f32 %v862_v28, %v856_v50  ;;  %v842_v41 = vadd.f32 %v841_v47, %v4846_v62  ;;  %v858_v31 = vmul.f32 %v4863_v54, %v4863_v54  ;;  %v4046_v50 = vld [vmem:[#allocation5 + $0x190] ss:$20 sps:$4 sm:$0xff]   ;;  %1587 = vmatprep.subr.bf16.mxu0 %v4048_v37 }
 0x212   :  { %v837_v46 = vadd.f32 %v829_v40, %v789_v61 }
 0x213   :  { %v835_v52 = vadd.f32 %v827_v53, %v787_v23  ;;  %v843_v48 = vadd.f32 %v842_v41, %v4863_v54  ;;  %v864_v29 = vadd.f32 %v863_v26, %v857_v15 }
 0x214   :  { %v861_v51 = vmul.f32 %v837_v46, %v837_v46  ;;  %1588 = vmatpush2.bf16.msra.mxu0 %v4046_v50 }
 0x215   :  { %v859_v58 = vmul.f32 %v835_v52, %v835_v52  ;;  %v865_v42 = vadd.f32 %v864_v29, %v858_v31  ;;  %v844_v35 = vadd.f32 %v843_v48, %v835_v52 }
 0x217   :  { %v845_v20 = vadd.f32 %v844_v35, %v836_v56  ;;  %v866_v30 = vadd.f32 %v865_v42, %v859_v58 }
 0x219   :  { %v846_v47 = vadd.f32 %v845_v20, %v837_v46  ;;  %v867_v28 = vadd.f32 %v866_v30, %v860_v49 }
 0x21b   :  { %v847_v55 = vrot.slane %v846_v47, 4  ;;  %v868_v23 = vadd.f32 %v867_v28, %v861_v51 }
 0x21d   :  { %v848_v22 = vadd.f32 %v847_v55, %v846_v47  ;;  %v869_v14 = vrot.slane %v868_v23, 4  ;;  %v3468_v47 = vld [vmem:[%s5387_s9] ss:$0 sm:$0xff] }
 0x21f   :  { %v849_v59 = vrot.slane %v848_v22, 2  ;;  %v870_v53 = vadd.f32 %v869_v14, %v868_v23 }
 0x221   :  { %v850_v15 = vadd.f32 %v849_v59, %v848_v22  ;;  %v871_v26 = vrot.slane %v870_v53, 2 }
 0x223   :  { %v851_v41 = vrot.slane %v850_v15, 1  ;;  %v872_v40 = vadd.f32 %v871_v26, %v870_v53 }
 0x225   :  { %v852_v61 = vadd.f32 %v851_v41, %v850_v15  ;;  %v873_v34 = vrot.slane %v872_v40, 1 }
 0x227   :  { %v853_v48 = vmul.f32 0.015625, %v852_v61  ;;  %v874_v31 = vadd.f32 %v873_v34, %v872_v40 }
 0x229   :  { %v875_v29 = vmul.f32 0.015625, %v874_v31  ;;  %v876_v37 = vmul.f32 %v853_v48, %v853_v48  ;;  %v884_v50 = vsub.f32 %v835_v52, %v853_v48  ;;  %v885_v49 = vsub.f32 %v836_v56, %v853_v48 }
 0x22a   :  { %v886_v20 = vsub.f32 %v837_v46, %v853_v48  ;;  %v879_v30 = vsub.f32 %v4826_v43, %v853_v48  ;;  %v880_v28 = vsub.f32 %v4839_v38, %v853_v48  ;;  %v883_v55 = vsub.f32 %v4863_v54, %v853_v48  ;;  %v3469_v43 = vld [vmem:[%s5388_s10] ss:$0 sm:$0xff] }
 0x22b   :  { %v877_v58 = vsub.f32 %v875_v29, %v876_v37  ;;  %v881_v23 = vsub.f32 %v4834_v5, %v853_v48  ;;  %v882_v22 = vsub.f32 %v4846_v62, %v853_v48 }
 0x22d   :  { %v878_v42 = vmax.f32 %v877_v58, 0.0 }
 0x22f   :  { %v887_v35 = vadd.f32 1e-05, %v878_v42 }
 0x231   :  { %4208 = vrsqrt.f32 %v887_v35 }
 0x23e   :  { %v4209_v51 = vpop.eup %4208 }
 0x23f   :  { %v894_v14 = vmul.f32 %v4209_v51, %v884_v50  ;;  %v895_v59 = vmul.f32 %v4209_v51, %v885_v49  ;;  %v896_v52 = vmul.f32 %v4209_v51, %v886_v20  ;;  %v889_v56 = vmul.f32 %v4209_v51, %v879_v30 }
 0x240   :  { %v890_v46 = vmul.f32 %v4209_v51, %v880_v28  ;;  %v893_v53 = vmul.f32 %v4209_v51, %v883_v55  ;;  %v891_v15 = vmul.f32 %v4209_v51, %v881_v23  ;;  %v892_v26 = vmul.f32 %v4209_v51, %v882_v22 }
 0x241   :  { %v908_v41 = vmul.f32 %v3468_v47, %v894_v14  ;;  %v909_v38 = vmul.f32 %v3468_v47, %v895_v59  ;;  %v910_v40 = vmul.f32 %v3468_v47, %v896_v52  ;;  %v903_v54 = vmul.f32 %v3468_v47, %v889_v56 }
 0x242   :  { %v904_v61 = vmul.f32 %v3468_v47, %v890_v46  ;;  %v907_v5 = vmul.f32 %v3468_v47, %v893_v53  ;;  %v905_v34 = vmul.f32 %v3468_v47, %v891_v15  ;;  %v906_v62 = vmul.f32 %v3468_v47, %v892_v26 }
 0x243   :  { %v922_v48 = vadd.f32 %v3469_v43, %v908_v41  ;;  %v923_v31 = vadd.f32 %v3469_v43, %v909_v38  ;;  %v924_v29 = vadd.f32 %v3469_v43, %v910_v40  ;;  %v917_v37 = vadd.f32 %v3469_v43, %v903_v54  ;;  %v3973_v40 = vld [vmem:[#allocation5 + $0x124] ss:$20 sps:$4 sm:$0xff]   ;;  %v3971_v54 = vld [vmem:[#allocation5 + $0x120] ss:$20 sps:$4 sm:$0xff]  }
 0x244   :  { %v918_v58 = vadd.f32 %v3469_v43, %v904_v61  ;;  %v921_v42 = vadd.f32 %v3469_v43, %v907_v5  ;;  %v919_v35 = vadd.f32 %v3469_v43, %v905_v34  ;;  %v920_v50 = vadd.f32 %v3469_v43, %v906_v62  ;;  %v3979_v61 = vld [vmem:[#allocation5 + $0xfc] ss:$20 sps:$4 sm:$0xff]   ;;  %v4902_v5 = vld [vmem:[#allocation3 + $0x8] sm:$0xff]  }
 0x245   :  { %vm931_vm3 = vcmp.ge.f32.partialorder %v923_v31, 0.0  ;;  %vm932_vm4 = vcmp.ge.f32.partialorder %v924_v29, 0.0  ;;  %v939_v49 = vmul.f32 0.01, %v923_v31  ;;  %v940_v20 = vmul.f32 0.01, %v924_v29 }
 0x246   :  { %vm925_vm5 = vcmp.ge.f32.partialorder %v917_v37, 0.0  ;;  %vm926_vm6 = vcmp.ge.f32.partialorder %v918_v58, 0.0  ;;  %v933_v30 = vmul.f32 0.01, %v917_v37  ;;  %v934_v51 = vmul.f32 0.01, %v918_v58 }
 0x247   :  { %v947_v28 = vsel %vm931_vm3, %v923_v31, %v939_v49  ;;  %v948_v55 = vsel %vm932_vm4, %v924_v29, %v940_v20  ;;  %vm929_vm7 = vcmp.ge.f32.partialorder %v921_v42, 0.0  ;;  %vm930_vm8 = vcmp.ge.f32.partialorder %v922_v48, 0.0  ;;  %5511 = vst [vmem:[#allocation42_spill] sm:$0xff] %v4902_v5  ;;  %v4906_v34 = vld [vmem:[#allocation3 + $0x10] sm:$0xff]   ;;  %v3977_v62 = vld [vmem:[#allocation5 + $0xf8] ss:$20 sps:$4 sm:$0xff]  }
 0x248   :  { %v4885_v47 = vpack.c.bf16 %v948_v55, %v947_v28  ;;  %v941_v23 = vsel %vm925_vm5, %v917_v37, %v933_v30  ;;  %v942_v22 = vsel %vm926_vm6, %v918_v58, %v934_v51  ;;  %v937_v14 = vmul.f32 0.01, %v921_v42  ;;  %5512 = vst [vmem:[#allocation43_spill] sm:$0xff] %v4906_v34  ;;  %v3983_v31 = vld [vmem:[#allocation5 + $0xd0] ss:$20 sps:$4 sm:$0xff]   ;;  %v4910_v37 = vld [vmem:[#allocation3 + $0x18] sm:$0xff]  }
 0x249   :  { %v4887_v59 = vpack.c.bf16 %v942_v22, %v941_v23  ;;  %v938_v52 = vmul.f32 0.01, %v922_v48  ;;  %vm927_vm9 = vcmp.ge.f32.partialorder %v919_v35, 0.0  ;;  %vm928_vm10 = vcmp.ge.f32.partialorder %v920_v50, 0.0  ;;  %v3991_v29 = vld [vmem:[#allocation5 + $0xac] ss:$20 sps:$4 sm:$0xff]  }
 0x24a   :  { %3826 = vmatprep.subr.bf16.mxu1 %v4885_v47  ;;  %v945_v56 = vsel %vm929_vm7, %v921_v42, %v937_v14  ;;  %v935_v43 = vmul.f32 0.01, %v919_v35  ;;  %v936_v46 = vmul.f32 0.01, %v920_v50  ;;  %5513 = vst [vmem:[#allocation44_spill] sm:$0xff] %v4910_v37 }
 0x24b   :  { %1593 = vmatprep.mubr.bf16.mxu0 %v4887_v59  ;;  %3827 = vmatpush3.bf16.msra.mxu1 %v4885_v47  ;;  %v946_v53 = vsel %vm930_vm8, %v922_v48, %v938_v52  ;;  %v3985_v48 = vld [vmem:[#allocation5 + $0xd4] ss:$20 sps:$4 sm:$0xff]   ;;  %v3997_v42 = vld [vmem:[#allocation5 + $0x84] ss:$20 sps:$4 sm:$0xff]   ;;  %v4015_v51 = vld [vmem:[#allocation5 + $0xc] ss:$20 sps:$4 sm:$0xff]  }
 0x24c   :  { %v4892_v15 = vpack.c.bf16 %v946_v53, %v945_v56  ;;  %v943_v26 = vsel %vm927_vm9, %v919_v35, %v935_v43  ;;  %v944_v41 = vsel %vm928_vm10, %v920_v50, %v936_v46  ;;  %v3989_v58 = vld [vmem:[#allocation5 + $0xa8] ss:$20 sps:$4 sm:$0xff]   ;;  %v3995_v35 = vld [vmem:[#allocation5 + $0x80] ss:$20 sps:$4 sm:$0xff]   ;;  %v4001_v49 = vld [vmem:[#allocation5 + $0x58] ss:$20 sps:$4 sm:$0xff]  }
 0x24d   :  { %v4895_v38 = vpack.c.bf16 %v944_v41, %v943_v26  ;;  %v4003_v50 = vld [vmem:[#allocation5 + $0x5c] ss:$20 sps:$4 sm:$0xff]   ;;  %v4009_v20 = vld [vmem:[#allocation5 + $0x34] ss:$20 sps:$4 sm:$0xff]   ;;  %v4021_v55 = vld [vmem:[#allocation5 + $0x264] ss:$20 sps:$4 sm:$0xff]  }
 0x24e   :  { %3828 = vmatprep.subr.bf16.mxu1 %v4892_v15  ;;  %v4007_v30 = vld [vmem:[#allocation5 + $0x30] ss:$20 sps:$4 sm:$0xff]   ;;  %v4013_v28 = vld [vmem:[#allocation5 + $0x8] ss:$20 sps:$4 sm:$0xff]   ;;  %v4019_v23 = vld [vmem:[#allocation5 + $0x260] ss:$20 sps:$4 sm:$0xff]  }
 0x24f   :  { %3829 = vmatpush3.bf16.msra.mxu1 %v4892_v15  ;;  %v4027_v22 = vld [vmem:[#allocation5 + $0x23c] ss:$20 sps:$4 sm:$0xff]   ;;  %v4025_v14 = vld [vmem:[#allocation5 + $0x238] ss:$20 sps:$4 sm:$0xff]   ;;  %v4033_v52 = vld [vmem:[#allocation5 + $0x214] ss:$20 sps:$4 sm:$0xff]  }
 0x250   :  { %3830 = vmatprep.subr.bf16.mxu1 %v4895_v38  ;;  %v4031_v56 = vld [vmem:[#allocation5 + $0x210] ss:$20 sps:$4 sm:$0xff]   ;;  %v4039_v43 = vld [vmem:[#allocation5 + $0x1ec] ss:$20 sps:$4 sm:$0xff]   ;;  %v4037_v46 = vld [vmem:[#allocation5 + $0x1e8] ss:$20 sps:$4 sm:$0xff]  }
 0x251   :  { %v4045_v53 = vld [vmem:[#allocation5 + $0x1c4] ss:$20 sps:$4 sm:$0xff]   ;;  %v4043_v26 = vld [vmem:[#allocation5 + $0x1c0] ss:$20 sps:$4 sm:$0xff]   ;;  %v4051_v41 = vld [vmem:[#allocation5 + $0x19c] ss:$20 sps:$4 sm:$0xff]  }
 0x253   :  { %3831 = vmatpush3.bf16.msra.mxu1 %v4895_v38 }
 0x254   :  { %3832 = vmatprep.subr.bf16.mxu1 %v4887_v59 }
 0x257   :  { %3833 = vmatpush3.bf16.msra.mxu1 %v4887_v59 }
 0x258   :  { %1634 = vmatprep.subr.bf16.mxu1 %v3973_v40  ;;  %v4049_v40 = vld [vmem:[#allocation5 + $0x198] ss:$20 sps:$4 sm:$0xff]  }
 0x25a   :  { %3835 = vmatmul.mubr.msk.bf16.vlgmr.msra.gmra.mxu1 %vm180_vm0, %v4902_v5 }
 0x25b   :  { %3838 = vmatprep.mubr.msk.bf16.mxu1 %vm180_vm0, %v4906_v34  ;;  %1635 = vmatpush1.bf16.msra.mxu1 %v3971_v54  ;;  %v4052_v54 = vld [vmem:[#allocation5 + $0x168] ss:$20 sps:$4 sm:$0xff]  }
 0x25c   :  { %1636 = vmatprep.subr.bf16.mxu1 %v3979_v61  ;;  %v4054_v61 = vld [vmem:[#allocation5 + $0x16c] ss:$20 sps:$4 sm:$0xff]  }
 0x25d   :  { %1589 = vmatprep.subr.bf16.mxu0 %v4054_v61  ;;  %v4073_v61 = vld [vmem:[#allocation5 + $0x88] ss:$20 sps:$4 sm:$0xff]  }
 0x25e   :  { %1590 = vmatpush2.bf16.msra.mxu0 %v4052_v54 }
 0x25f   :  { %1637 = vmatpush1.bf16.msra.mxu1 %v3977_v62  ;;  %v4055_v62 = vld [vmem:[#allocation5 + $0x170] ss:$20 sps:$4 sm:$0xff]  }
 0x260   :  { %1638 = vmatprep.subr.bf16.mxu1 %v3985_v48  ;;  %v4057_v48 = vld [vmem:[#allocation5 + $0x174] ss:$20 sps:$4 sm:$0xff]  }
 0x262   :  { %3839 = vmatmul.mubr.msk.bf16.gmra.mxu1 %vm180_vm0, %v4910_v37  ;;  %v4100_v37 = vld [vmem:[#allocation7 + $0xa4] ss:$20 sps:$4 sm:$0xff]  }
 0x263   :  { %1666 = vmatprep.mubr.bf16.mxu1 %v4887_v59  ;;  %1639 = vmatpush1.bf16.msra.mxu1 %v3983_v31  ;;  %v4058_v31 = vld [vmem:[#allocation5 + $0x140] ss:$20 sps:$4 sm:$0xff]  }
 0x264   :  { %1640 = vmatprep.subr.bf16.mxu1 %v3991_v29  ;;  %v4060_v29 = vld [vmem:[#allocation5 + $0x144] ss:$20 sps:$4 sm:$0xff]  }
 0x265   :  { %1591 = vmatprep.subr.bf16.mxu0 %v4060_v29 }
 0x266   :  { %1592 = vmatpush2.bf16.msra.mxu0 %v4058_v31  ;;  %v4076_v31 = vld [vmem:[#allocation5 + $0x178] ss:$20 sps:$4 sm:$0xff]  }
 0x267   :  { %1641 = vmatpush1.bf16.msra.mxu1 %v3989_v58  ;;  %v4061_v58 = vld [vmem:[#allocation5 + $0x148] ss:$20 sps:$4 sm:$0xff]  }
 0x268   :  { %1642 = vmatprep.subr.bf16.mxu1 %v3997_v42  ;;  %v4063_v42 = vld [vmem:[#allocation5 + $0x14c] ss:$20 sps:$4 sm:$0xff]  }
 0x26b   :  { %1643 = vmatpush1.bf16.msra.mxu1 %v3995_v35  ;;  %v4064_v35 = vld [vmem:[#allocation5 + $0x268] ss:$20 sps:$4 sm:$0xff]  }
 0x26c   :  { %1644 = vmatprep.subr.bf16.mxu1 %v4003_v50  ;;  %3686 = vmatprep.subr.bf16.mxu0 %v4064_v35  ;;  %v4219_v35 = vld [vmem:[#allocation3] sm:$0xff]  }
 0x26f   :  { %1645 = vmatpush1.bf16.msra.mxu1 %v4001_v49 }
 0x270   :  { %1646 = vmatprep.subr.bf16.mxu1 %v4009_v20 }
 0x273   :  { %1647 = vmatpush1.bf16.msra.mxu1 %v4007_v30 }
 0x274   :  { %1648 = vmatprep.subr.bf16.mxu1 %v4015_v51 }
 0x277   :  { %1649 = vmatpush1.bf16.msra.mxu1 %v4013_v28  ;;  %v4065_v28 = vld [vmem:[#allocation5 + $0x128] ss:$20 sps:$4 sm:$0xff]  }
 0x278   :  { %1650 = vmatprep.subr.bf16.mxu1 %v4021_v55 }
 0x27b   :  { %1651 = vmatpush2.bf16.msra.mxu1 %v4019_v23  ;;  %v4066_v23 = vld [vmem:[#allocation5 + $0x240] ss:$20 sps:$4 sm:$0xff]  }
 0x27c   :  { %1652 = vmatprep.subr.bf16.mxu1 %v4027_v22  ;;  %v4067_v22 = vld [vmem:[#allocation5 + $0x100] ss:$20 sps:$4 sm:$0xff]  }
 0x27f   :  { %1653 = vmatpush2.bf16.msra.mxu1 %v4025_v14 }
 0x280   :  { %1654 = vmatprep.subr.bf16.mxu1 %v4033_v52  ;;  %v4068_v52 = vld [vmem:[#allocation5 + $0x218] ss:$20 sps:$4 sm:$0xff]  }
 0x283   :  { %1655 = vmatpush2.bf16.msra.mxu1 %v4031_v56 }
 0x284   :  { %1656 = vmatprep.subr.bf16.mxu1 %v4039_v43  ;;  %v4069_v43 = vld [vmem:[#allocation5 + $0xd8] ss:$20 sps:$4 sm:$0xff]  }
 0x287   :  { %1657 = vmatpush2.bf16.msra.mxu1 %v4037_v46 }
 0x288   :  { %1658 = vmatprep.subr.bf16.mxu1 %v4045_v53  ;;  %v4070_v53 = vld [vmem:[#allocation5 + $0x1f0] ss:$20 sps:$4 sm:$0xff]  }
 0x28b   :  { %1659 = vmatpush2.bf16.msra.mxu1 %v4043_v26  ;;  %v4071_v26 = vld [vmem:[#allocation5 + $0xb0] ss:$20 sps:$4 sm:$0xff]  }
 0x28c   :  { %1660 = vmatprep.subr.bf16.mxu1 %v4051_v41 }
 0x28f   :  { %1661 = vmatpush2.bf16.msra.mxu1 %v4049_v40  ;;  %v4072_v40 = vld [vmem:[#allocation5 + $0x1c8] ss:$20 sps:$4 sm:$0xff]  }
 0x290   :  { %1662 = vmatprep.subr.bf16.mxu1 %v4057_v48  ;;  %v4075_v48 = vld [vmem:[#allocation5 + $0x60] ss:$20 sps:$4 sm:$0xff]  }
 0x293   :  { %1663 = vmatpush2.bf16.msra.mxu1 %v4055_v62  ;;  %v4074_v62 = vld [vmem:[#allocation5 + $0x1a0] ss:$20 sps:$4 sm:$0xff]  }
 0x294   :  { %1664 = vmatprep.subr.bf16.mxu1 %v4063_v42  ;;  %v4078_v42 = vld [vmem:[#allocation5 + $0x150] ss:$20 sps:$4 sm:$0xff]  }
 0x297   :  { %1665 = vmatpush2.bf16.msra.mxu1 %v4061_v58  ;;  %v4077_v58 = vld [vmem:[#allocation5 + $0x38] ss:$20 sps:$4 sm:$0xff]  }
 0x31a   :  { %v3836_v50 = vpop.f32.mrf.mxu1 }
 0x31c   :  { %v987_v49 = vpop.f32.mrf.mxu1 }
 0x31e   :  { %v3837_v20 = vpop.f32.mrf.mxu1 }
 0x31f   :  { %v1019_v56 = vpack.c.bf16 %v3837_v20, %v3836_v50  ;;  %v4079_v50 = vld [vmem:[#allocation5 + $0x10] ss:$20 sps:$4 sm:$0xff]  }
 0x320   :  { %v990_v30 = vpop.f32.mrf.mxu1 }
 0x321   :  { %v1018_v51 = vpack.c.bf16 %v990_v30, %v987_v49 }
 0x322   :  { %v3840_v55 = vpop.f32.mrf.mxu1 }
 0x323   :  { %1594 = vmatmul.mubr.bf16.vlgmr.msra.gmra.mxu0 %v1018_v51  ;;  %1667 = vmatmul.mubr.bf16.vlgmr.msra.gmra.mxu1 %v1018_v51 }
 0x324   :  { %1603 = vmatprep.mubr.bf16.mxu0 %v4895_v38  ;;  %1676 = vmatprep.mubr.bf16.mxu1 %v4895_v38  ;;  %v1003_v14 = vpop.f32.mrf.mxu1 }
 0x325   :  { %3687 = vmatpush3.bf16.msra.mxu0 %v4065_v28 }
 0x326   :  { %3688 = vmatprep.subr.bf16.mxu0 %v4066_v23  ;;  %v3841_v46 = vpop.f32.mrf.mxu1 }
 0x327   :  { %v1021_v29 = vpack.c.bf16 %v3841_v46, %v3840_v55  ;;  %v4080_v46 = vld [vmem:[#allocation7 + $0x118] ss:$20 sps:$4 sm:$0xff]  }
 0x328   :  { %v1006_v41 = vpop.f32.mrf.mxu1 }
 0x329   :  { %3689 = vmatpush3.bf16.msra.mxu0 %v4067_v22  ;;  %v1020_v54 = vpack.c.bf16 %v1006_v41, %v1003_v14  ;;  %v4937_v41 = vld [vmem:[%s5514_s7] sm:$0x1f] }
 0x32a   :  { %3690 = vmatprep.subr.bf16.mxu0 %v4068_v52  ;;  %v4971_v39 = vrot.slane %v4937_v41, %v5520_v0  ;;  %v4104_v0 = vld [vmem:[#allocation7 + $0x78] ss:$20 sps:$4 sm:$0xff]  }
 0x32b   :  { %1604 = vmatmul.mubr.bf16.gmra.mxu0 %v1019_v56  ;;  %1677 = vmatmul.mubr.bf16.gmra.mxu1 %v1019_v56 }
 0x32c   :  { %1613 = vmatprep.mubr.bf16.mxu0 %v4892_v15  ;;  %1686 = vmatprep.mubr.bf16.mxu1 %v4892_v15 }
 0x32d   :  { %3691 = vmatpush3.bf16.msra.mxu0 %v4069_v43 }
 0x32e   :  { %3692 = vmatprep.subr.bf16.mxu0 %v4070_v53  ;;  %v4082_v53 = vld [vmem:[#allocation7 + $0x11c] ss:$20 sps:$4 sm:$0xff]  }
 0x331   :  { %3693 = vmatpush3.bf16.msra.mxu0 %v4071_v26  ;;  %v4088_v26 = vld [vmem:[#allocation7 + $0xf4] ss:$20 sps:$4 sm:$0xff]  }
 0x332   :  { %3694 = vmatprep.subr.bf16.mxu0 %v4072_v40 }
 0x333   :  { %1614 = vmatmul.mubr.bf16.gmra.mxu0 %v1020_v54  ;;  %1687 = vmatmul.mubr.bf16.gmra.mxu1 %v1020_v54 }
 0x334   :  { %1623 = vmatprep.mubr.bf16.mxu0 %v4885_v47  ;;  %1696 = vmatprep.mubr.bf16.mxu1 %v4885_v47 }
 0x335   :  { %3695 = vmatpush3.bf16.msra.mxu0 %v4073_v61 }
 0x336   :  { %3696 = vmatprep.subr.bf16.mxu0 %v4074_v62  ;;  %v4086_v62 = vld [vmem:[#allocation7 + $0xf0] ss:$20 sps:$4 sm:$0xff]  }
 0x339   :  { %3697 = vmatpush3.bf16.msra.mxu0 %v4075_v48 }
 0x33a   :  { %3698 = vmatprep.subr.bf16.mxu0 %v4076_v31 }
 0x33b   :  { %1624 = vmatmul.mubr.bf16.gmra.mxu0 %v1021_v29  ;;  %1697 = vmatmul.mubr.bf16.gmra.mxu1 %v1021_v29 }
 0x33c   :  { %1739 = vmatprep.mubr.bf16.mxu0 %v4887_v59  ;;  %3850 = vmatprep.mubr.msk.bf16.mxu1 %vm180_vm0, %v4219_v35 }
 0x33d   :  { %3699 = vmatpush3.bf16.msra.mxu0 %v4077_v58  ;;  %v5516_v58 = vld [vmem:[#allocation27_spill] sm:$0xff] }
 0x33e   :  { %3700 = vmatprep.subr.bf16.mxu0 %v4078_v42  ;;  %v4951_v42 = vrot.slane %v4937_v41, %v5516_v58 }
 0x341   :  { %3701 = vmatpush3.bf16.msra.mxu0 %v4079_v50 }
 0x342   :  { %2567 = vmatprep.subr.bf16.mxu0 %v4082_v53  ;;  %v4092_v53 = vld [vmem:[#allocation7 + $0xc8] ss:$20 sps:$4 sm:$0xff]  }
 0x344   :  { %1740 = vmatmul.mubr.bf16.vlgmr.msra.gmra.mxu0 %v1018_v51 }
 0x345   :  { %1747 = vmatprep.mubr.bf16.mxu0 %v4895_v38  ;;  %2568 = vmatpush1.bf16.msra.mxu0 %v4080_v46 }
 0x346   :  { %2569 = vmatprep.subr.bf16.mxu0 %v4088_v26  ;;  %v5517_v26 = vld [vmem:[#allocation29_spill] sm:$0xff] }
 0x347   :  { %v4963_v5 = vrot.slane %v4937_v41, %v5517_v26  ;;  %v5521_v26 = vld [vmem:[#allocation21_spill] sm:$0xff] }
 0x349   :  { %2570 = vmatpush1.bf16.msra.mxu0 %v4086_v62  ;;  %v4098_v62 = vld [vmem:[#allocation7 + $0xa0] ss:$20 sps:$4 sm:$0xff]  }
 0x34c   :  { %1748 = vmatmul.mubr.bf16.gmra.mxu0 %v1019_v56 }
 0x34d   :  { %1755 = vmatprep.mubr.bf16.mxu0 %v4892_v15 }
 0x354   :  { %1756 = vmatmul.mubr.bf16.gmra.mxu0 %v1020_v54  ;;  %v5515_v54 = vld [vmem:[#allocation25_spill] sm:$0xff] }
 0x355   :  { %1763 = vmatprep.mubr.bf16.mxu0 %v4885_v47  ;;  %v4943_v61 = vrot.slane %v4937_v41, %v5515_v54 }
 0x35c   :  { %1764 = vmatmul.mubr.bf16.gmra.mxu0 %v1021_v29  ;;  %v4094_v29 = vld [vmem:[#allocation7 + $0xcc] ss:$20 sps:$4 sm:$0xff]  }
 0x35d   :  { %2571 = vmatprep.subr.bf16.mxu0 %v4094_v29 }
 0x35e   :  { %2572 = vmatpush1.bf16.msra.mxu0 %v4092_v53 }
 0x35f   :  { %2573 = vmatprep.subr.bf16.mxu0 %v4100_v37 }
 0x362   :  { %2574 = vmatpush1.bf16.msra.mxu0 %v4098_v62 }
 0x3e3   :  { %v1595_v49 = vpop.f32.mrf.mxu0  ;;  %v1668_v20 = vpop.f32.mrf.mxu1 }
 0x3e4   :  { %v1596_v34 = vadd.f32 %v1595_v49, %v4951_v42  ;;  %v4106_v49 = vld [vmem:[#allocation7 + $0x7c] ss:$20 sps:$4 sm:$0xff]   ;;  %v1669_v21 = vadd.f32 %v1668_v20, %v4963_v5 }
 0x3e5   :  { %v1597_v59 = vpop.f32.mrf.mxu0  ;;  %v1670_v30 = vpop.f32.mrf.mxu1  ;;  %2575 = vmatprep.subr.bf16.mxu0 %v4106_v49  ;;  %v4110_v49 = vld [vmem:[#allocation7 + $0x50] ss:$20 sps:$4 sm:$0xff]  }
 0x3e6   :  { %v1598_v50 = vadd.f32 %v1597_v59, %v4943_v61  ;;  %v1772_v36 = vmul.f32 %v1596_v34, %v5521_v26  ;;  %v1671_v45 = vadd.f32 %v1670_v30, %v4971_v39  ;;  %v1796_v34 = vmul.f32 %v1669_v21, %v4628_v9  ;;  %2576 = vmatpush1.bf16.msra.mxu0 %v4104_v0 }
 0x3e7   :  { %v1599_v28 = vpop.f32.mrf.mxu0  ;;  %v1672_v55 = vpop.f32.mrf.mxu1  ;;  %2577 = vmatprep.subr.bf16.mxu0 %v4112_v25  ;;  %v5005_v25 = vrot.slane %v4937_v41, %v4753_v63 }
 0x3e8   :  { %v1780_v44 = vmul.f32 %v1598_v50, %v5519_v57  ;;  %v1600_v50 = vadd.f32 %v1599_v28, %v4951_v42  ;;  %v1812_v21 = vmul.f32 %v1671_v45, %v4616_v3 }
 0x3e9   :  { %v1601_v23 = vpop.f32.mrf.mxu0  ;;  %v1674_v14 = vpop.f32.mrf.mxu1 }
 0x3ea   :  { %v1602_v59 = vadd.f32 %v1601_v23, %v4943_v61  ;;  %v1788_v57 = vadd.f32 %v1780_v44, %v1772_v36  ;;  %v5522_v23 = vld [vmem:[#allocation31_spill] sm:$0xff]  ;;  %v1773_v20 = vmul.f32 %v1600_v50, %v4602_v60  ;;  %v1673_v36 = vadd.f32 %v1672_v55, %v4963_v5  ;;  %v4118_v55 = vld [vmem:[#allocation7 + $0x2c] ss:$20 sps:$4 sm:$0xff]   ;;  %2578 = vmatpush1.bf16.msra.mxu0 %v4110_v49 }
 0x3eb   :  { %v1605_v22 = vpop.f32.mrf.mxu0  ;;  %v4926_v43 = vpop.f32.mrf.mxu1  ;;  %2579 = vmatprep.subr.bf16.mxu0 %v4118_v55 }
 0x3ec   :  { %v1781_v53 = vmul.f32 %v1602_v59, %v5522_v23  ;;  %v1606_v44 = vadd.f32 %v1605_v22, %v4951_v42  ;;  %v1804_v62 = vadd.f32 %v1796_v34, %v1788_v57  ;;  %v5523_v23 = vld [vmem:[#allocation16_spill] sm:$0xff]  ;;  %v5524_v22 = vld [vmem:[#allocation17_spill] sm:$0xff]  ;;  %v1679_v57 = vadd.f32 %v4926_v43, %v4963_v5 }
 0x3ed   :  { %v1607_v52 = vpop.f32.mrf.mxu0  ;;  %v4930_v15 = vpop.f32.mrf.mxu1  ;;  %v1797_v9 = vmul.f32 %v1673_v36, %v5524_v22 }
 0x3ee   :  { %v1608_v32 = vadd.f32 %v1607_v52, %v4943_v61  ;;  %v1675_v52 = vadd.f32 %v1674_v14, %v4971_v39  ;;  %v1789_v30 = vadd.f32 %v1781_v53, %v1773_v20  ;;  %v5007_v53 = vadd.f32 %v1812_v21, %v1804_v62  ;;  %v4124_v62 = vld [vmem:[#allocation7 + $0x4] ss:$20 sps:$4 sm:$0xff]  }
 0x3ef   :  { %v1609_v51 = vpop.f32.mrf.mxu0  ;;  %v4945_v48 = vpop.f32.mrf.mxu1 }
 0x3f0   :  { %v1610_v59 = vadd.f32 %v1609_v51, %v4951_v42  ;;  %v1813_v0 = vmul.f32 %v1675_v52, %v4652_v24  ;;  %v1805_v34 = vadd.f32 %v1797_v9, %v1789_v30  ;;  %v1798_v9 = vmul.f32 %v1679_v57, %v4614_v2 }
 0x3f1   :  { %v1611_v38 = vpop.f32.mrf.mxu0  ;;  %v4956_v54 = vpop.f32.mrf.mxu1 }
 0x3f2   :  { %v1612_v17 = vadd.f32 %v1611_v38, %v4943_v61  ;;  %v1782_v38 = vmul.f32 %v1608_v32, %v5523_v23  ;;  %v1681_v32 = vadd.f32 %v4930_v15, %v4971_v39  ;;  %v1775_v45 = vmul.f32 %v1610_v59, %v4612_v1  ;;  %v4116_v15 = vld [vmem:[#allocation7 + $0x28] ss:$20 sps:$4 sm:$0xff]  }
 0x3f3   :  { %v4928_v56 = vpop.f32.mrf.mxu0  ;;  %v4973_v29 = vpop.f32.mrf.mxu1  ;;  %v1685_v52 = vadd.f32 %v4956_v54, %v4971_v39  ;;  %2580 = vmatpush1.bf16.msra.mxu0 %v4116_v15 }
 0x3f4   :  { %v1783_v50 = vmul.f32 %v1612_v17, %v4715_v33  ;;  %v1683_v17 = vadd.f32 %v4945_v48, %v4963_v5  ;;  %v1616_v30 = vadd.f32 %v4928_v56, %v4951_v42  ;;  %v4122_v56 = vld [vmem:[#allocation7] ss:$20 sps:$4 sm:$0xff]   ;;  %2581 = vmatprep.subr.bf16.mxu0 %v4124_v62 }
 0x3f5   :  { %v4932_v47 = vpop.f32.mrf.mxu0  ;;  %v1690_v37 = vpop.f32.mrf.mxu1 }
 0x3f6   :  { %v1618_v59 = vadd.f32 %v4932_v47, %v4943_v61  ;;  %v1799_v54 = vmul.f32 %v1683_v17, %v4632_v11  ;;  %v1689_v47 = vadd.f32 %v4973_v29, %v4963_v5 }
 0x3f7   :  { %v4939_v40 = vpop.f32.mrf.mxu0  ;;  %v1692_v60 = vpop.f32.mrf.mxu1  ;;  %2582 = vmatpush1.bf16.msra.mxu0 %v4122_v56  ;;  %v5529_v56 = vld [vmem:[#allocation24_spill] sm:$0xff] }
 0x3f9   :  { %v4947_v31 = vpop.f32.mrf.mxu0  ;;  %v1694_v41 = vpop.f32.mrf.mxu1 }
 0x3fa   :  { %v1622_v48 = vadd.f32 %v4947_v31, %v4943_v61  ;;  %v1620_v31 = vadd.f32 %v4939_v40, %v4951_v42  ;;  %v4130_v40 = vld [vmem:[#allocation7 + $0x25c] ss:$20 sps:$4 sm:$0xff]  }
 0x3fb   :  { %v4953_v35 = vpop.f32.mrf.mxu0  ;;  %v1698_v17 = vpop.f32.mrf.mxu1  ;;  %2583 = vmatprep.subr.bf16.mxu0 %v4130_v40 }
 0x3fc   :  { %v1785_v29 = vmul.f32 %v1622_v48, %v4630_v10  ;;  %v1777_v15 = vmul.f32 %v1620_v31, %v4626_v8  ;;  %v5527_v48 = vld [vmem:[#allocation28_spill] sm:$0xff] }
 0x3fd   :  { %v4958_v46 = vpop.f32.mrf.mxu0 }
 0x3ff   :  { %v4965_v58 = vpop.f32.mrf.mxu0 }
 0x400   :  { %5518 = vst [vmem:[#allocation45_spill] sm:$0xff] %v4965_v58  ;;  %v5525_v58 = vld [vmem:[#allocation15_spill] sm:$0xff] }
 0x401   :  { %v4975_v18 = vpop.f32.mrf.mxu0  ;;  %v1774_v14 = vmul.f32 %v1606_v44, %v5525_v58  ;;  %v1791_v44 = vadd.f32 %v1783_v50, %v1775_v45  ;;  %v1821_v50 = vadd.f32 %v1813_v0, %v1805_v34  ;;  %v1776_v0 = vmul.f32 %v1616_v30, %v4618_v4 }
 0x403   :  { %v1790_v20 = vadd.f32 %v1782_v38, %v1774_v14  ;;  %v1691_v14 = vadd.f32 %v1690_v37, %v4971_v39  ;;  %v1628_v37 = vadd.f32 %v4958_v46, %v4943_v61 }
 0x404   :  { %v3702_v19 = vpop.f32.mrf.mxu0 }
 0x405   :  { %v1806_v55 = vadd.f32 %v1798_v9, %v1790_v20  ;;  %v1816_v62 = vmul.f32 %v1691_v14, %v5527_v48  ;;  %v1626_v9 = vadd.f32 %v4953_v35, %v4951_v42 }
 0x406   :  { %v3703_v28 = vpop.f32.mrf.mxu0 }
 0x407   :  { %v3704_v38 = vadd.f32 %v3703_v28, %v3702_v19  ;;  %v1807_v19 = vadd.f32 %v1799_v54, %v1791_v44  ;;  %v1815_v28 = vmul.f32 %v1685_v52, %v4634_v12  ;;  %v1693_v44 = vadd.f32 %v1692_v60, %v4963_v5  ;;  %v4136_v60 = vld [vmem:[#allocation7 + $0x234] ss:$20 sps:$4 sm:$0xff]  }
 0x408   :  { %v3705_v26 = vpop.f32.mrf.mxu0 }
 0x409   :  { %v1742_v34 = vadd.f32 %v3704_v38, %v5005_v25  ;;  %v4128_v38 = vld [vmem:[#allocation7 + $0x258] ss:$20 sps:$4 sm:$0xff]  }
 0x40a   :  { %v3706_v51 = vpop.f32.mrf.mxu0  ;;  %2584 = vmatpush2.bf16.msra.mxu0 %v4128_v38  ;;  %v5534_v38 = vld [vmem:[#allocation35_spill] sm:$0xff] }
 0x40b   :  { %v3707_v43 = vadd.f32 %v3706_v51, %v3705_v26  ;;  %v1814_v26 = vmul.f32 %v1681_v32, %v4622_v6  ;;  %v5526_v51 = vld [vmem:[#allocation18_spill] sm:$0xff]  ;;  %v1828_v35 = vmul.f32 %v1742_v34, %v4624_v7  ;;  %2585 = vmatprep.subr.bf16.mxu0 %v4136_v60 }
 0x40c   :  { %v3708_v36 = vpop.f32.mrf.mxu0  ;;  %v1784_v45 = vmul.f32 %v1618_v59, %v5526_v51 }
 0x40d   :  { %v1745_v57 = vadd.f32 %v3707_v43, %v5005_v25  ;;  %v1822_v59 = vadd.f32 %v1814_v26, %v1806_v55  ;;  %v1632_v55 = vadd.f32 %v4975_v18, %v4943_v61  ;;  %v5532_v18 = vld [vmem:[#allocation26_spill] sm:$0xff] }
 0x40e   :  { %v3709_v49 = vpop.f32.mrf.mxu0  ;;  %v1792_v54 = vadd.f32 %v1784_v45, %v1776_v0  ;;  %v5531_v0 = vld [vmem:[#allocation45_spill] sm:$0xff] }
 0x40f   :  { %v3710_v21 = vadd.f32 %v3709_v49, %v3708_v36  ;;  %v1800_v36 = vmul.f32 %v1689_v47, %v4636_v13  ;;  %v1829_v46 = vmul.f32 %v1745_v57, %v4767_v27  ;;  %v1823_v49 = vadd.f32 %v1815_v28, %v1807_v19  ;;  %v1700_v47 = vpop.f32.mrf.mxu1 }
 0x410   :  { %v3711_v32 = vpop.f32.mrf.mxu0  ;;  %v1695_v19 = vadd.f32 %v1694_v41, %v4971_v39  ;;  %v1699_v28 = vadd.f32 %v1698_v17, %v4963_v5 }
 0x411   :  { %v1750_v20 = vadd.f32 %v3710_v21, %v5005_v25  ;;  %v1793_v21 = vadd.f32 %v1785_v29, %v1777_v15  ;;  %v5530_v29 = vld [vmem:[#allocation23_spill] sm:$0xff]  ;;  %v5053_v15 = vadd.f32 %v1829_v46, %v1821_v50  ;;  %v1702_v41 = vpop.f32.mrf.mxu1 }
 0x412   :  { %v3712_v43 = vpop.f32.mrf.mxu0  ;;  %v1778_v40 = vmul.f32 %v1626_v9, %v5530_v29  ;;  %v1703_v60 = vadd.f32 %v1702_v41, %v4963_v5  ;;  %v5540_v41 = vld [vmem:[#allocation36_spill] sm:$0xff] }
 0x413   :  { %v3713_v52 = vadd.f32 %v3712_v43, %v3711_v32  ;;  %v5528_v32 = vld [vmem:[#allocation22_spill] sm:$0xff]  ;;  %v1830_v14 = vmul.f32 %v1750_v20, %v5503_v16  ;;  %v1801_v43 = vmul.f32 %v1693_v44, %v5529_v56  ;;  %v4134_v20 = vld [vmem:[#allocation7 + $0x230] ss:$20 sps:$4 sm:$0xff]   ;;  %v1701_v44 = vadd.f32 %v1700_v47, %v4971_v39 }
 0x414   :  { %v3714_v30 = vpop.f32.mrf.mxu0  ;;  %v1786_v26 = vmul.f32 %v1628_v37, %v5528_v32  ;;  %v1630_v37 = vadd.f32 %v5531_v0, %v4951_v42  ;;  %v5060_v42 = vadd.f32 %v1828_v35, %v5007_v53  ;;  %v5537_v0 = vld [vmem:[#allocation30_spill] sm:$0xff]  ;;  %2586 = vmatpush2.bf16.msra.mxu0 %v4134_v20  ;;  %v5539_v20 = vld [vmem:[#allocation20_spill] sm:$0xff] }
 0x415   :  { %v1753_v31 = vadd.f32 %v3713_v52, %v5005_v25  ;;  %v1808_v52 = vadd.f32 %v1800_v36, %v1792_v54  ;;  %v1809_v32 = vadd.f32 %v1801_v43, %v1793_v21  ;;  %v5062_v50 = vadd.f32 %v1830_v14, %v1822_v59  ;;  %v5535_v36 = vld [vmem:[#allocation33_spill] sm:$0xff]  ;;  %v4140_v59 = vld [vmem:[#allocation7 + $0x208] ss:$20 sps:$4 sm:$0xff]  }
 0x416   :  { %v3715_v57 = vpop.f32.mrf.mxu0  ;;  %v1794_v9 = vadd.f32 %v1786_v26, %v1778_v40  ;;  %v1802_v54 = vmul.f32 %v1699_v28, %v5535_v36  ;;  %v5536_v21 = vld [vmem:[#allocation37_spill] sm:$0xff]  ;;  %v1861_v26 = vmul.f32 %v5053_v15, %v5053_v15  ;;  %v1704_v28 = vpop.f32.mrf.mxu1  ;;  %v1860_v5 = vmul.f32 %v5060_v42, %v5060_v42 }
 0x417   :  { %v3716_v45 = vadd.f32 %v3715_v57, %v3714_v30  ;;  %v1831_v61 = vmul.f32 %v1753_v31, %v5532_v18  ;;  %v4142_v30 = vld [vmem:[#allocation7 + $0x20c] ss:$20 sps:$4 sm:$0xff]   ;;  %v1817_v31 = vmul.f32 %v1695_v19, %v5534_v38  ;;  %v1824_v35 = vadd.f32 %v1816_v62, %v1808_v52 }
 0x418   :  { %v3717_v34 = vpop.f32.mrf.mxu0  ;;  %v5533_v57 = vld [vmem:[#allocation34_spill] sm:$0xff]  ;;  %2587 = vmatprep.subr.bf16.mxu0 %v4142_v30  ;;  %v1846_v62 = vadd.f32 %v5053_v15, %v5060_v42  ;;  %v1803_v30 = vmul.f32 %v1703_v60, %v5540_v41  ;;  %v5542_v41 = vld [vmem:[#allocation39_spill] sm:$0xff] }
 0x419   :  { %v1758_v17 = vadd.f32 %v3716_v45, %v5005_v25  ;;  %v1787_v29 = vmul.f32 %v1632_v55, %v5533_v57  ;;  %v1779_v45 = vmul.f32 %v1630_v37, %v5537_v0  ;;  %v5071_v55 = vadd.f32 %v1831_v61, %v1823_v49  ;;  %v5538_v19 = vld [vmem:[#allocation38_spill] sm:$0xff]  ;;  %2588 = vmatpush2.bf16.msra.mxu0 %v4140_v59 }
 0x41a   :  { %v3718_v46 = vpop.f32.mrf.mxu0  ;;  %v1825_v14 = vadd.f32 %v1817_v31, %v1809_v32  ;;  %v1818_v40 = vmul.f32 %v1701_v44, %v5538_v19  ;;  %v1810_v37 = vadd.f32 %v1802_v54, %v1794_v9  ;;  %v1862_v49 = vmul.f32 %v5062_v50, %v5062_v50 }
 0x41b   :  { %v1832_v47 = vmul.f32 %v1758_v17, %v5536_v21  ;;  %v3719_v43 = vadd.f32 %v3718_v46, %v3717_v34  ;;  %v4148_v34 = vld [vmem:[#allocation7 + $0x1e4] ss:$20 sps:$4 sm:$0xff]   ;;  %v1795_v46 = vadd.f32 %v1787_v29, %v1779_v45  ;;  %v1705_v9 = vadd.f32 %v1704_v28, %v4971_v39 }
 0x41c   :  { %v3720_v53 = vpop.f32.mrf.mxu0  ;;  %v1868_v29 = vadd.f32 %v1861_v26, %v1860_v5  ;;  %v1863_v31 = vmul.f32 %v5071_v55, %v5071_v55  ;;  %v1847_v45 = vadd.f32 %v1846_v62, %v5062_v50  ;;  %2589 = vmatprep.subr.bf16.mxu0 %v4148_v34  ;;  %v5541_v28 = vld [vmem:[#allocation40_spill] sm:$0xff] }
 0x41d   :  { %v1761_v17 = vadd.f32 %v3719_v43, %v5005_v25  ;;  %v5081_v32 = vadd.f32 %v1832_v47, %v1824_v35  ;;  %v4146_v43 = vld [vmem:[#allocation7 + $0x1e0] ss:$20 sps:$4 sm:$0xff]   ;;  %v4154_v35 = vld [vmem:[#allocation7 + $0x1bc] ss:$20 sps:$4 sm:$0xff]   ;;  %v1819_v62 = vmul.f32 %v1705_v9, %v5542_v41 }
 0x41e   :  { %v3721_v61 = vpop.f32.mrf.mxu0  ;;  %v1869_v60 = vadd.f32 %v1868_v29, %v1862_v49  ;;  %v1848_v39 = vadd.f32 %v1847_v45, %v5071_v55  ;;  %2590 = vmatpush2.bf16.msra.mxu0 %v4146_v43  ;;  %v4160_v49 = vld [vmem:[#allocation7 + $0x194] ss:$20 sps:$4 sm:$0xff]   ;;  %v5543_v45 = vld [vmem:[#allocation41_spill] sm:$0xff] }
 0x41f   :  { %v1833_v52 = vmul.f32 %v1761_v17, %v5539_v20  ;;  %v3722_v44 = vadd.f32 %v3721_v61, %v3720_v53  ;;  %v1826_v53 = vadd.f32 %v1818_v40, %v1810_v37  ;;  %v1811_v17 = vadd.f32 %v1803_v30, %v1795_v46  ;;  %2591 = vmatprep.subr.bf16.mxu0 %v4154_v35 }
 0x420   :  { %v3723_v54 = vpop.f32.mrf.mxu0  ;;  %v1864_v26 = vmul.f32 %v5081_v32, %v5081_v32  ;;  %v1849_v34 = vadd.f32 %v1848_v39, %v5081_v32 }
 0x421   :  { %v5089_v19 = vadd.f32 %v1833_v52, %v1825_v14  ;;  %v1766_v47 = vadd.f32 %v3722_v44, %v5005_v25  ;;  %v1870_v14 = vadd.f32 %v1869_v60, %v1863_v31  ;;  %v4152_v52 = vld [vmem:[#allocation7 + $0x1b8] ss:$20 sps:$4 sm:$0xff]   ;;  %v1827_v44 = vadd.f32 %v1819_v62, %v1811_v17  ;;  %v4158_v31 = vld [vmem:[#allocation7 + $0x190] ss:$20 sps:$4 sm:$0xff]  }
 0x422   :  { %v3724_v61 = vpop.f32.mrf.mxu0  ;;  %2592 = vmatpush2.bf16.msra.mxu0 %v4152_v52 }
 0x423   :  { %v1834_v59 = vmul.f32 %v1766_v47, %v5541_v28  ;;  %v3725_v5 = vadd.f32 %v3724_v61, %v3723_v54  ;;  %v1865_v40 = vmul.f32 %v5089_v19, %v5089_v19  ;;  %v1871_v30 = vadd.f32 %v1870_v14, %v1864_v26  ;;  %2593 = vmatprep.subr.bf16.mxu0 %v4160_v49  ;;  %v5552_v28 = vld [vmem:[#allocation32_spill] sm:$0xff] }
 0x424   :  { %v1850_v29 = vadd.f32 %v1849_v34, %v5089_v19 }
 0x425   :  { %v1842_v37 = vadd.f32 %v1834_v59, %v1826_v53  ;;  %v1769_v46 = vadd.f32 %v3725_v5, %v5005_v25  ;;  %v1872_v43 = vadd.f32 %v1871_v30, %v1865_v40 }
 0x426   :  { %2594 = vmatpush2.bf16.msra.mxu0 %v4158_v31 }
 0x427   :  { %v1866_v54 = vmul.f32 %v1842_v37, %v1842_v37  ;;  %v1835_v9 = vmul.f32 %v1769_v46, %v5543_v45  ;;  %v1851_v47 = vadd.f32 %v1850_v29, %v1842_v37 }
 0x429   :  { %v1843_v60 = vadd.f32 %v1835_v9, %v1827_v44  ;;  %v1873_v61 = vadd.f32 %v1872_v43, %v1866_v54 }
 0x42b   :  { %v1852_v39 = vadd.f32 %v1851_v47, %v1843_v60  ;;  %v1867_v53 = vmul.f32 %v1843_v60, %v1843_v60 }
 0x42d   :  { %v1853_v25 = vrot.slane %v1852_v39, 4  ;;  %v1874_v35 = vadd.f32 %v1873_v61, %v1867_v53  ;;  %v3554_v53 = vld [vmem:[%s5389_s11] ss:$0 sm:$0xff] }
 0x42f   :  { %v1854_v59 = vadd.f32 %v1853_v25, %v1852_v39  ;;  %v1875_v17 = vrot.slane %v1874_v35, 4 }
 0x431   :  { %v1855_v26 = vrot.slane %v1854_v59, 2  ;;  %v1876_v5 = vadd.f32 %v1875_v17, %v1874_v35 }
 0x433   :  { %v1856_v62 = vadd.f32 %v1855_v26, %v1854_v59  ;;  %v1877_v14 = vrot.slane %v1876_v5, 2 }
 0x435   :  { %v1857_v34 = vrot.slane %v1856_v62, 1  ;;  %v1878_v46 = vadd.f32 %v1877_v14, %v1876_v5 }
 0x437   :  { %v1858_v52 = vadd.f32 %v1857_v34, %v1856_v62  ;;  %v1879_v45 = vrot.slane %v1878_v46, 1 }
 0x439   :  { %v1859_v40 = vmul.f32 0.015625, %v1858_v52  ;;  %v1880_v30 = vadd.f32 %v1879_v45, %v1878_v46 }
 0x43b   :  { %v1881_v44 = vmul.f32 0.015625, %v1880_v30  ;;  %v1882_v49 = vmul.f32 %v1859_v40, %v1859_v40  ;;  %v1892_v31 = vsub.f32 %v1843_v60, %v1859_v40  ;;  %v1891_v43 = vsub.f32 %v1842_v37, %v1859_v40 }
 0x43c   :  { %v1885_v47 = vsub.f32 %v5060_v42, %v1859_v40  ;;  %v1886_v61 = vsub.f32 %v5053_v15, %v1859_v40  ;;  %v1889_v25 = vsub.f32 %v5081_v32, %v1859_v40  ;;  %v1890_v45 = vsub.f32 %v5089_v19, %v1859_v40  ;;  %v3555_v15 = vld [vmem:[%s5390_s12] ss:$0 sm:$0xff] }
 0x43d   :  { %v1883_v29 = vsub.f32 %v1881_v44, %v1882_v49  ;;  %v1887_v35 = vsub.f32 %v5062_v50, %v1859_v40  ;;  %v1888_v59 = vsub.f32 %v5071_v55, %v1859_v40 }
 0x43f   :  { %v1884_v54 = vmax.f32 %v1883_v29, 0.0 }
 0x441   :  { %v1893_v9 = vadd.f32 1e-05, %v1884_v54 }
 0x443   :  { %4210 = vrsqrt.f32 %v1893_v9 }
 0x450   :  { %v4211_v39 = vpop.eup %4210 }
 0x451   :  { %v1902_v17 = vmul.f32 %v4211_v39, %v1892_v31  ;;  %v1901_v60 = vmul.f32 %v4211_v39, %v1891_v43  ;;  %v1895_v37 = vmul.f32 %v4211_v39, %v1885_v47  ;;  %v1896_v26 = vmul.f32 %v4211_v39, %v1886_v61 }
 0x452   :  { %v1899_v42 = vmul.f32 %v4211_v39, %v1889_v25  ;;  %v1900_v5 = vmul.f32 %v4211_v39, %v1890_v45  ;;  %v1897_v62 = vmul.f32 %v4211_v39, %v1887_v35  ;;  %v1898_v14 = vmul.f32 %v4211_v39, %v1888_v59 }
 0x453   :  { %v1916_v34 = vmul.f32 %v3554_v53, %v1902_v17  ;;  %v1915_v32 = vmul.f32 %v3554_v53, %v1901_v60  ;;  %v1909_v46 = vmul.f32 %v3554_v53, %v1895_v37  ;;  %v1910_v19 = vmul.f32 %v3554_v53, %v1896_v26 }
 0x454   :  { %v1913_v52 = vmul.f32 %v3554_v53, %v1899_v42  ;;  %v1914_v50 = vmul.f32 %v3554_v53, %v1900_v5  ;;  %v1911_v30 = vmul.f32 %v3554_v53, %v1897_v62  ;;  %v1912_v55 = vmul.f32 %v3554_v53, %v1898_v14 }
 0x455   :  { %v1930_v40 = vadd.f32 %v3555_v15, %v1916_v34  ;;  %v1929_v44 = vadd.f32 %v3555_v15, %v1915_v32  ;;  %v1923_v49 = vadd.f32 %v3555_v15, %v1909_v46  ;;  %v1924_v29 = vadd.f32 %v3555_v15, %v1910_v19  ;;  %v4085_v19 = vld [vmem:[#allocation7 + $0x124] ss:$20 sps:$4 sm:$0xff]  }
 0x456   :  { %v1927_v54 = vadd.f32 %v3555_v15, %v1913_v52  ;;  %v1928_v9 = vadd.f32 %v3555_v15, %v1914_v50  ;;  %v1925_v31 = vadd.f32 %v3555_v15, %v1911_v30  ;;  %v1926_v43 = vadd.f32 %v3555_v15, %v1912_v55  ;;  %v4083_v52 = vld [vmem:[#allocation7 + $0x120] ss:$20 sps:$4 sm:$0xff]   ;;  %v4091_v50 = vld [vmem:[#allocation7 + $0xfc] ss:$20 sps:$4 sm:$0xff]   ;;  %v5544_v30 = vld [vmem:[#allocation42_spill] sm:$0xff] }
 0x457   :  { %vm1937_vm11 = vcmp.ge.f32.partialorder %v1929_v44, 0.0  ;;  %vm1938_vm12 = vcmp.ge.f32.partialorder %v1930_v40, 0.0  ;;  %v1945_v47 = vmul.f32 0.01, %v1929_v44  ;;  %v1946_v61 = vmul.f32 0.01, %v1930_v40 }
 0x458   :  { %vm1931_vm13 = vcmp.ge.f32.partialorder %v1923_v49, 0.0  ;;  %vm1932_vm14 = vcmp.ge.f32.partialorder %v1924_v29, 0.0  ;;  %v1939_v39 = vmul.f32 0.01, %v1923_v49  ;;  %v1940_v25 = vmul.f32 0.01, %v1924_v29 }
 0x459   :  { %v1953_v45 = vsel %vm1937_vm11, %v1929_v44, %v1945_v47  ;;  %v1954_v35 = vsel %vm1938_vm12, %v1930_v40, %v1946_v61  ;;  %vm1935_vm15 = vcmp.ge.f32.partialorder %v1927_v54, 0.0  ;;  %vm1936_vm1 = vcmp.ge.f32.partialorder %v1928_v9, 0.0  ;;  %v5545_v55 = vld [vmem:[#allocation43_spill] sm:$0xff]  ;;  %v4089_v40 = vld [vmem:[#allocation7 + $0xf8] ss:$20 sps:$4 sm:$0xff]  }
 0x45a   :  { %v5115_v53 = vpack.c.bf16 %v1954_v35, %v1953_v45  ;;  %v1947_v59 = vsel %vm1931_vm13, %v1923_v49, %v1939_v39  ;;  %v1948_v17 = vsel %vm1932_vm14, %v1924_v29, %v1940_v25  ;;  %v1943_v60 = vmul.f32 0.01, %v1927_v54  ;;  %v4097_v44 = vld [vmem:[#allocation7 + $0xd4] ss:$20 sps:$4 sm:$0xff]   ;;  %v4095_v49 = vld [vmem:[#allocation7 + $0xd0] ss:$20 sps:$4 sm:$0xff]  }
 0x45b   :  { %v5117_v37 = vpack.c.bf16 %v1948_v17, %v1947_v59  ;;  %v1944_v26 = vmul.f32 0.01, %v1928_v9  ;;  %vm1933_vm2 = vcmp.ge.f32.partialorder %v1925_v31, 0.0  ;;  %vm1934_vm3 = vcmp.ge.f32.partialorder %v1926_v43, 0.0  ;;  %v4103_v29 = vld [vmem:[#allocation7 + $0xac] ss:$20 sps:$4 sm:$0xff]  }
 0x45c   :  { %3842 = vmatprep.subr.bf16.mxu1 %v5115_v53  ;;  %v1951_v15 = vsel %vm1935_vm15, %v1927_v54, %v1943_v60  ;;  %v1941_v42 = vmul.f32 0.01, %v1925_v31  ;;  %v1942_v5 = vmul.f32 0.01, %v1926_v43  ;;  %v5546_v54 = vld [vmem:[#allocation44_spill] sm:$0xff] }
 0x45d   :  { %2599 = vmatprep.mubr.bf16.mxu0 %v5117_v37  ;;  %3843 = vmatpush3.bf16.msra.mxu1 %v5115_v53  ;;  %v1952_v62 = vsel %vm1936_vm1, %v1928_v9, %v1944_v26  ;;  %v4101_v9 = vld [vmem:[#allocation7 + $0xa8] ss:$20 sps:$4 sm:$0xff]   ;;  %v4113_v61 = vld [vmem:[#allocation7 + $0x58] ss:$20 sps:$4 sm:$0xff]   ;;  %v4119_v25 = vld [vmem:[#allocation7 + $0x30] ss:$20 sps:$4 sm:$0xff]  }
 0x45e   :  { %v5122_v14 = vpack.c.bf16 %v1952_v62, %v1951_v15  ;;  %v1949_v34 = vsel %vm1933_vm2, %v1925_v31, %v1941_v42  ;;  %v1950_v32 = vsel %vm1934_vm3, %v1926_v43, %v1942_v5  ;;  %v4109_v31 = vld [vmem:[#allocation7 + $0x84] ss:$20 sps:$4 sm:$0xff]   ;;  %v4107_v43 = vld [vmem:[#allocation7 + $0x80] ss:$20 sps:$4 sm:$0xff]   ;;  %v4115_v47 = vld [vmem:[#allocation7 + $0x5c] ss:$20 sps:$4 sm:$0xff]  }
 0x45f   :  { %v5125_v46 = vpack.c.bf16 %v1950_v32, %v1949_v34  ;;  %v4121_v39 = vld [vmem:[#allocation7 + $0x34] ss:$20 sps:$4 sm:$0xff]   ;;  %v4127_v45 = vld [vmem:[#allocation7 + $0xc] ss:$20 sps:$4 sm:$0xff]   ;;  %v4133_v59 = vld [vmem:[#allocation7 + $0x264] ss:$20 sps:$4 sm:$0xff]  }
 0x460   :  { %3844 = vmatprep.subr.bf16.mxu1 %v5122_v14  ;;  %v4125_v35 = vld [vmem:[#allocation7 + $0x8] ss:$20 sps:$4 sm:$0xff]   ;;  %v4131_v17 = vld [vmem:[#allocation7 + $0x260] ss:$20 sps:$4 sm:$0xff]   ;;  %v4137_v26 = vld [vmem:[#allocation7 + $0x238] ss:$20 sps:$4 sm:$0xff]  }
 0x461   :  { %3845 = vmatpush3.bf16.msra.mxu1 %v5122_v14  ;;  %v4139_v60 = vld [vmem:[#allocation7 + $0x23c] ss:$20 sps:$4 sm:$0xff]   ;;  %v4145_v15 = vld [vmem:[#allocation7 + $0x214] ss:$20 sps:$4 sm:$0xff]   ;;  %v4151_v5 = vld [vmem:[#allocation7 + $0x1ec] ss:$20 sps:$4 sm:$0xff]  }
 0x462   :  { %3846 = vmatprep.subr.bf16.mxu1 %v5125_v46  ;;  %v4143_v42 = vld [vmem:[#allocation7 + $0x210] ss:$20 sps:$4 sm:$0xff]   ;;  %v4149_v62 = vld [vmem:[#allocation7 + $0x1e8] ss:$20 sps:$4 sm:$0xff]   ;;  %v4155_v32 = vld [vmem:[#allocation7 + $0x1c0] ss:$20 sps:$4 sm:$0xff]  }
 0x463   :  { %v4157_v34 = vld [vmem:[#allocation7 + $0x1c4] ss:$20 sps:$4 sm:$0xff]  }
 0x465   :  { %3847 = vmatpush3.bf16.msra.mxu1 %v5125_v46 }
 0x466   :  { %3848 = vmatprep.subr.bf16.mxu1 %v5117_v37 }
 0x469   :  { %3849 = vmatpush3.bf16.msra.mxu1 %v5117_v37 }
 0x46a   :  { %2640 = vmatprep.subr.bf16.mxu1 %v4085_v19  ;;  %v4163_v19 = vld [vmem:[#allocation7 + $0x19c] ss:$20 sps:$4 sm:$0xff]  }
 0x46c   :  { %3851 = vmatmul.mubr.msk.bf16.vlgmr.msra.gmra.mxu1 %vm180_vm0, %v5544_v30  ;;  %v4166_v30 = vld [vmem:[#allocation7 + $0x16c] ss:$20 sps:$4 sm:$0xff]  }
 0x46d   :  { %3854 = vmatprep.mubr.msk.bf16.mxu1 %vm180_vm0, %v5545_v55  ;;  %2641 = vmatpush1.bf16.msra.mxu1 %v4083_v52  ;;  %v4161_v52 = vld [vmem:[#allocation7 + $0x198] ss:$20 sps:$4 sm:$0xff]   ;;  %v4167_v55 = vld [vmem:[#allocation7 + $0x170] ss:$20 sps:$4 sm:$0xff]  }
 0x46e   :  { %2642 = vmatprep.subr.bf16.mxu1 %v4091_v50  ;;  %v4164_v50 = vld [vmem:[#allocation7 + $0x168] ss:$20 sps:$4 sm:$0xff]   ;;  %2595 = vmatprep.subr.bf16.mxu0 %v4166_v30  ;;  %v4187_v30 = vld [vmem:[#allocation7 + $0x60] ss:$20 sps:$4 sm:$0xff]  }
 0x46f   :  { %2596 = vmatpush2.bf16.msra.mxu0 %v4164_v50  ;;  %v4186_v50 = vld [vmem:[#allocation7 + $0x1a0] ss:$20 sps:$4 sm:$0xff]  }
 0x471   :  { %2643 = vmatpush1.bf16.msra.mxu1 %v4089_v40  ;;  %v4169_v40 = vld [vmem:[#allocation7 + $0x174] ss:$20 sps:$4 sm:$0xff]  }
 0x472   :  { %2644 = vmatprep.subr.bf16.mxu1 %v4097_v44  ;;  %v4170_v44 = vld [vmem:[#allocation7 + $0x140] ss:$20 sps:$4 sm:$0xff]  }
 0x474   :  { %3855 = vmatmul.mubr.msk.bf16.gmra.mxu1 %vm180_vm0, %v5546_v54  ;;  %v4175_v54 = vld [vmem:[#allocation7 + $0x14c] ss:$20 sps:$4 sm:$0xff]  }
 0x475   :  { %2672 = vmatprep.mubr.bf16.mxu1 %v5117_v37  ;;  %2645 = vmatpush1.bf16.msra.mxu1 %v4095_v49  ;;  %v4172_v49 = vld [vmem:[#allocation7 + $0x144] ss:$20 sps:$4 sm:$0xff]  }
 0x476   :  { %2646 = vmatprep.subr.bf16.mxu1 %v4103_v29  ;;  %v4173_v29 = vld [vmem:[#allocation7 + $0x148] ss:$20 sps:$4 sm:$0xff]   ;;  %2597 = vmatprep.subr.bf16.mxu0 %v4172_v49  ;;  %v4190_v49 = vld [vmem:[#allocation7 + $0x150] ss:$20 sps:$4 sm:$0xff]  }
 0x477   :  { %2598 = vmatpush2.bf16.msra.mxu0 %v4170_v44  ;;  %v4189_v44 = vld [vmem:[#allocation7 + $0x38] ss:$20 sps:$4 sm:$0xff]  }
 0x479   :  { %2647 = vmatpush1.bf16.msra.mxu1 %v4101_v9  ;;  %v4176_v9 = vld [vmem:[#allocation7 + $0x268] ss:$20 sps:$4 sm:$0xff]  }
 0x47a   :  { %2648 = vmatprep.subr.bf16.mxu1 %v4109_v31  ;;  %3734 = vmatprep.subr.bf16.mxu0 %v4176_v9  ;;  %v4197_v9 = vld [vmem:[%s5391_s13 + $0x10] sm:$0xff]  }
 0x47d   :  { %2649 = vmatpush1.bf16.msra.mxu1 %v4107_v43 }
 0x47e   :  { %2650 = vmatprep.subr.bf16.mxu1 %v4115_v47 }
 0x481   :  { %2651 = vmatpush1.bf16.msra.mxu1 %v4113_v61 }
 0x482   :  { %2652 = vmatprep.subr.bf16.mxu1 %v4121_v39 }
 0x485   :  { %2653 = vmatpush1.bf16.msra.mxu1 %v4119_v25  ;;  %v4177_v25 = vld [vmem:[#allocation7 + $0x128] ss:$20 sps:$4 sm:$0xff]  }
 0x486   :  { %2654 = vmatprep.subr.bf16.mxu1 %v4127_v45  ;;  %v4178_v45 = vld [vmem:[#allocation7 + $0x240] ss:$20 sps:$4 sm:$0xff]  }
 0x489   :  { %2655 = vmatpush1.bf16.msra.mxu1 %v4125_v35 }
 0x48a   :  { %2656 = vmatprep.subr.bf16.mxu1 %v4133_v59  ;;  %v4179_v59 = vld [vmem:[#allocation7 + $0x100] ss:$20 sps:$4 sm:$0xff]  }
 0x48d   :  { %2657 = vmatpush2.bf16.msra.mxu1 %v4131_v17  ;;  %v4180_v17 = vld [vmem:[#allocation7 + $0x218] ss:$20 sps:$4 sm:$0xff]  }
 0x48e   :  { %2658 = vmatprep.subr.bf16.mxu1 %v4139_v60 }
 0x491   :  { %2659 = vmatpush2.bf16.msra.mxu1 %v4137_v26 }
 0x492   :  { %2660 = vmatprep.subr.bf16.mxu1 %v4145_v15  ;;  %v4181_v15 = vld [vmem:[#allocation7 + $0xd8] ss:$20 sps:$4 sm:$0xff]  }
 0x495   :  { %2661 = vmatpush2.bf16.msra.mxu1 %v4143_v42 }
 0x496   :  { %2662 = vmatprep.subr.bf16.mxu1 %v4151_v5  ;;  %v4182_v5 = vld [vmem:[#allocation7 + $0x1f0] ss:$20 sps:$4 sm:$0xff]  }
 0x499   :  { %2663 = vmatpush2.bf16.msra.mxu1 %v4149_v62  ;;  %v4183_v62 = vld [vmem:[#allocation7 + $0xb0] ss:$20 sps:$4 sm:$0xff]  }
 0x49a   :  { %2664 = vmatprep.subr.bf16.mxu1 %v4157_v34 }
 0x49d   :  { %2665 = vmatpush2.bf16.msra.mxu1 %v4155_v32  ;;  %v4184_v32 = vld [vmem:[#allocation7 + $0x1c8] ss:$20 sps:$4 sm:$0xff]  }
 0x49e   :  { %2666 = vmatprep.subr.bf16.mxu1 %v4163_v19 }
 0x4a1   :  { %2667 = vmatpush2.bf16.msra.mxu1 %v4161_v52  ;;  %v4185_v52 = vld [vmem:[#allocation7 + $0x88] ss:$20 sps:$4 sm:$0xff]  }
 0x4a2   :  { %2668 = vmatprep.subr.bf16.mxu1 %v4169_v40 }
 0x4a5   :  { %2669 = vmatpush2.bf16.msra.mxu1 %v4167_v55  ;;  %v4188_v55 = vld [vmem:[#allocation7 + $0x178] ss:$20 sps:$4 sm:$0xff]  }
 0x4a6   :  { %2670 = vmatprep.subr.bf16.mxu1 %v4175_v54  ;;  %v4192_v54 = vld [vmem:[%s5391_s13 + $0x38] sm:$0xff]  }
 0x4a9   :  { %2671 = vmatpush2.bf16.msra.mxu1 %v4173_v29  ;;  %v4191_v29 = vld [vmem:[#allocation7 + $0x10] ss:$20 sps:$4 sm:$0xff]  }
 0x4aa   :  { %3858 = vmatprep.subr.bf16.mxu1 %v4192_v54 }
 0x52c   :  { %v3852_v31 = vpop.f32.mrf.mxu1 }
 0x52e   :  { %v1993_v43 = vpop.f32.mrf.mxu1 }
 0x530   :  { %v3853_v47 = vpop.f32.mrf.mxu1 }
 0x531   :  { %v2025_v26 = vpack.c.bf16 %v3853_v47, %v3852_v31  ;;  %v4198_v31 = vld [vmem:[%s5391_s13 + $0x8] sm:$0xff]  }
 0x532   :  { %v1996_v61 = vpop.f32.mrf.mxu1 }
 0x533   :  { %v2024_v39 = vpack.c.bf16 %v1996_v61, %v1993_v43  ;;  %v4199_v43 = vld [vmem:[%s5391_s13] sm:$0xff]  }
 0x534   :  { %v3856_v35 = vpop.f32.mrf.mxu1 }
 0x535   :  { %2600 = vmatmul.mubr.bf16.vlgmr.msra.gmra.mxu0 %v2024_v39  ;;  %2673 = vmatmul.mubr.bf16.vlgmr.msra.gmra.mxu1 %v2024_v39 }
 0x536   :  { %2609 = vmatprep.mubr.bf16.mxu0 %v5125_v46  ;;  %2682 = vmatprep.mubr.bf16.mxu1 %v5125_v46  ;;  %v2009_v60 = vpop.f32.mrf.mxu1 }
 0x537   :  { %3735 = vmatpush3.bf16.msra.mxu0 %v4177_v25  ;;  %3859 = vmatpush3.bf16.msra.mxu1 %v4192_v54 }
 0x538   :  { %3736 = vmatprep.subr.bf16.mxu0 %v4178_v45  ;;  %v3857_v42 = vpop.f32.mrf.mxu1 }
 0x539   :  { %v2027_v40 = vpack.c.bf16 %v3857_v42, %v3856_v35 }
 0x53a   :  { %v2012_v34 = vpop.f32.mrf.mxu1 }
 0x53b   :  { %3737 = vmatpush3.bf16.msra.mxu0 %v4179_v59  ;;  %v2026_v19 = vpack.c.bf16 %v2012_v34, %v2009_v60  ;;  %v2124_v34 = vld [vmem:[%s5386_s8] sm:$0x1f] }
 0x53c   :  { %3738 = vmatprep.subr.bf16.mxu0 %v4180_v17  ;;  %v5200_v20 = vrot.slane %v2124_v34, %v5552_v28  ;;  %v5556_v28 = vld [vmem:[#allocation13_spill] sm:$0xff] }
 0x53d   :  { %2610 = vmatmul.mubr.bf16.gmra.mxu0 %v2025_v26  ;;  %2683 = vmatmul.mubr.bf16.gmra.mxu1 %v2025_v26 }
 0x53e   :  { %2619 = vmatprep.mubr.bf16.mxu0 %v5122_v14  ;;  %2692 = vmatprep.mubr.bf16.mxu1 %v5122_v14 }
 0x53f   :  { %3739 = vmatpush3.bf16.msra.mxu0 %v4181_v15 }
 0x540   :  { %3740 = vmatprep.subr.bf16.mxu0 %v4182_v5 }
 0x543   :  { %3741 = vmatpush3.bf16.msra.mxu0 %v4183_v62 }
 0x544   :  { %3742 = vmatprep.subr.bf16.mxu0 %v4184_v32  ;;  %v5547_v32 = vld [vmem:[#allocation25_spill] sm:$0xff] }
 0x545   :  { %2620 = vmatmul.mubr.bf16.gmra.mxu0 %v2026_v19  ;;  %2693 = vmatmul.mubr.bf16.gmra.mxu1 %v2026_v19 }
 0x546   :  { %2629 = vmatprep.mubr.bf16.mxu0 %v5115_v53  ;;  %2702 = vmatprep.mubr.bf16.mxu1 %v5115_v53 }
 0x547   :  { %3743 = vmatpush3.bf16.msra.mxu0 %v4185_v52 }
 0x548   :  { %3744 = vmatprep.subr.bf16.mxu0 %v4186_v50 }
 0x54b   :  { %3745 = vmatpush3.bf16.msra.mxu0 %v4187_v30  ;;  %v5548_v30 = vld [vmem:[#allocation27_spill] sm:$0xff] }
 0x54c   :  { %3746 = vmatprep.subr.bf16.mxu0 %v4188_v55  ;;  %v5180_v55 = vrot.slane %v2124_v34, %v5548_v30  ;;  %v5551_v30 = vld [vmem:[#allocation21_spill] sm:$0xff] }
 0x54d   :  { %2630 = vmatmul.mubr.bf16.gmra.mxu0 %v2027_v40  ;;  %2703 = vmatmul.mubr.bf16.gmra.mxu1 %v2027_v40 }
 0x54e   :  { %2745 = vmatprep.mubr.bf16.mxu0 %v5117_v37  ;;  %v4193_v37 = vld [vmem:[%s5391_s13 + $0x30] sm:$0xff]  }
 0x54f   :  { %3747 = vmatpush3.bf16.msra.mxu0 %v4189_v44  ;;  %3860 = vmatprep.subr.bf16.mxu1 %v4193_v37 }
 0x550   :  { %3748 = vmatprep.subr.bf16.mxu0 %v4190_v49  ;;  %3861 = vmatpush3.bf16.msra.mxu1 %v4193_v37  ;;  %v5549_v37 = vld [vmem:[#allocation29_spill] sm:$0xff] }
 0x553   :  { %3749 = vmatpush3.bf16.msra.mxu0 %v4191_v29 }
 0x556   :  { %2746 = vmatmul.mubr.bf16.vlgmr.msra.gmra.mxu0 %v2024_v39 }
 0x557   :  { %2753 = vmatprep.mubr.bf16.mxu0 %v5125_v46  ;;  %v4196_v46 = vld [vmem:[%s5391_s13 + $0x18] sm:$0xff]  }
 0x55e   :  { %2754 = vmatmul.mubr.bf16.gmra.mxu0 %v2025_v26 }
 0x55f   :  { %2761 = vmatprep.mubr.bf16.mxu0 %v5122_v14  ;;  %v4194_v14 = vld [vmem:[%s5391_s13 + $0x28] sm:$0xff]  }
 0x560   :  { %3862 = vmatprep.subr.bf16.mxu1 %v4194_v14 }
 0x561   :  { %3863 = vmatpush3.bf16.msra.mxu1 %v4194_v14  ;;  %v5189_v14 = vrot.slane %v2124_v34, %v5549_v37 }
 0x566   :  { %2762 = vmatmul.mubr.bf16.gmra.mxu0 %v2026_v19  ;;  %v5177_v19 = vrot.slane %v2124_v34, %v5547_v32 }
 0x567   :  { %2769 = vmatprep.mubr.bf16.mxu0 %v5115_v53  ;;  %v4195_v53 = vld [vmem:[%s5391_s13 + $0x20] sm:$0xff]  }
 0x568   :  { %3864 = vmatprep.subr.bf16.mxu1 %v4195_v53 }
 0x569   :  { %3865 = vmatpush3.bf16.msra.mxu1 %v4195_v53 }
 0x56a   :  { %3866 = vmatprep.subr.bf16.mxu1 %v4196_v46 }
 0x56d   :  { %3867 = vmatpush3.bf16.msra.mxu1 %v4196_v46  ;;  %v5550_v46 = vld [vmem:[#allocation14_spill] sm:$0xff] }
 0x56e   :  { %2770 = vmatmul.mubr.bf16.gmra.mxu0 %v2027_v40  ;;  %3868 = vmatprep.subr.bf16.mxu1 %v4197_v9 }
 0x571   :  { %3869 = vmatpush3.bf16.msra.mxu1 %v4197_v9 }
 0x572   :  { %3870 = vmatprep.subr.bf16.mxu1 %v4198_v31 }
 0x575   :  { %3871 = vmatpush3.bf16.msra.mxu1 %v4198_v31 }
 0x576   :  { %3872 = vmatprep.subr.bf16.mxu1 %v4199_v43 }
 0x579   :  { %3873 = vmatpush3.bf16.msra.mxu1 %v4199_v43 }
 0x5f5   :  { %v2601_v47 = vpop.f32.mrf.mxu0  ;;  %v2674_v61 = vpop.f32.mrf.mxu1 }
 0x5f6   :  { %v2602_v54 = vadd.f32 %v2601_v47, %v5180_v55 }
 0x5f7   :  { %v2603_v39 = vpop.f32.mrf.mxu0  ;;  %v2676_v25 = vpop.f32.mrf.mxu1 }
 0x5f8   :  { %v2604_v44 = vadd.f32 %v2603_v39, %v5177_v19  ;;  %v2778_v41 = vmul.f32 %v2602_v54, %v5551_v30  ;;  %v2675_v39 = vadd.f32 %v2674_v61, %v5189_v14  ;;  %v5555_v54 = vld [vmem:[#allocation19_spill] sm:$0xff]  ;;  %v2677_v61 = vadd.f32 %v2676_v25, %v5200_v20 }
 0x5f9   :  { %v2605_v45 = vpop.f32.mrf.mxu0  ;;  %v2678_v35 = vpop.f32.mrf.mxu1 }
 0x5fa   :  { %v2786_v9 = vmul.f32 %v2604_v44, %v5550_v46  ;;  %v2606_v47 = vadd.f32 %v2605_v45, %v5180_v55  ;;  %v5554_v44 = vld [vmem:[#allocation31_spill] sm:$0xff]  ;;  %v2802_v30 = vmul.f32 %v2675_v39, %v5555_v54  ;;  %v2679_v45 = vadd.f32 %v2678_v35, %v5189_v14 }
 0x5fb   :  { %v2607_v59 = vpop.f32.mrf.mxu0  ;;  %v2680_v60 = vpop.f32.mrf.mxu1 }
 0x5fc   :  { %v2608_v31 = vadd.f32 %v2607_v59, %v5177_v19  ;;  %v2794_v36 = vadd.f32 %v2786_v9, %v2778_v41  ;;  %v2779_v38 = vmul.f32 %v2606_v47, %v5556_v28 }
 0x5fd   :  { %v2611_v17 = vpop.f32.mrf.mxu0  ;;  %v2684_v42 = vpop.f32.mrf.mxu1 }
 0x5fe   :  { %v2787_v46 = vmul.f32 %v2608_v31, %v5554_v44  ;;  %v2612_v57 = vadd.f32 %v2611_v17, %v5180_v55  ;;  %v2810_v31 = vadd.f32 %v2802_v30, %v2794_v36  ;;  %v5218_v17 = vrot.slane %v2124_v34, %v4753_v63 }
 0x5ff   :  { %v2613_v26 = vpop.f32.mrf.mxu0  ;;  %v2686_v52 = vpop.f32.mrf.mxu1  ;;  %v2685_v25 = vadd.f32 %v2684_v42, %v5189_v14 }
 0x600   :  { %v2614_v0 = vadd.f32 %v2613_v26, %v5177_v19  ;;  %v2795_v44 = vadd.f32 %v2787_v46, %v2779_v38  ;;  %v2780_v39 = vmul.f32 %v2612_v57, %v5525_v58  ;;  %v2687_v57 = vadd.f32 %v2686_v52, %v5200_v20 }
 0x601   :  { %v2615_v15 = vpop.f32.mrf.mxu0  ;;  %v2688_v49 = vpop.f32.mrf.mxu1 }
 0x602   :  { %v2788_v26 = vmul.f32 %v2614_v0, %v5523_v23  ;;  %v2616_v47 = vadd.f32 %v2615_v15, %v5180_v55  ;;  %v2803_v23 = vmul.f32 %v2679_v45, %v5524_v22  ;;  %v2689_v54 = vadd.f32 %v2688_v49, %v5189_v14 }
 0x603   :  { %v2617_v5 = vpop.f32.mrf.mxu0  ;;  %v2690_v43 = vpop.f32.mrf.mxu1 }
 0x604   :  { %v2618_v41 = vadd.f32 %v2617_v5, %v5177_v19  ;;  %v2796_v36 = vadd.f32 %v2788_v26, %v2780_v39  ;;  %v2811_v58 = vadd.f32 %v2803_v23, %v2795_v44  ;;  %v2781_v22 = vmul.f32 %v2616_v47, %v4612_v1 }
 0x605   :  { %v2621_v62 = vpop.f32.mrf.mxu0  ;;  %v2694_v59 = vpop.f32.mrf.mxu1  ;;  %v2820_v1 = vmul.f32 %v2687_v57, %v4622_v6 }
 0x606   :  { %v2789_v38 = vmul.f32 %v2618_v41, %v4715_v33  ;;  %v2691_v33 = vadd.f32 %v2690_v43, %v5200_v20 }
 0x607   :  { %v2623_v50 = vpop.f32.mrf.mxu0  ;;  %v2696_v18 = vpop.f32.mrf.mxu1 }
 0x608   :  { %v2624_v63 = vadd.f32 %v2623_v50, %v5177_v19  ;;  %v2695_v50 = vadd.f32 %v2694_v59, %v5189_v14  ;;  %v2797_v28 = vadd.f32 %v2789_v38, %v2781_v22  ;;  %v2697_v59 = vadd.f32 %v2696_v18, %v5200_v20 }
 0x609   :  { %v5182_v40 = vpop.f32.mrf.mxu0  ;;  %v2698_v42 = vpop.f32.mrf.mxu1 }
 0x60a   :  { %v2790_v45 = vmul.f32 %v2624_v63, %v5526_v51  ;;  %v2821_v51 = vmul.f32 %v2691_v33, %v4634_v12  ;;  %v2806_v44 = vmul.f32 %v2695_v50, %v4636_v13  ;;  %v2699_v18 = vadd.f32 %v2698_v42, %v5189_v14  ;;  %v5558_v50 = vld [vmem:[#allocation26_spill] sm:$0xff] }
 0x60b   :  { %v5185_v29 = vpop.f32.mrf.mxu0  ;;  %v2700_v41 = vpop.f32.mrf.mxu1  ;;  %v2822_v12 = vmul.f32 %v2697_v59, %v5527_v48  ;;  %v5562_v59 = vld [vmem:[#allocation34_spill] sm:$0xff] }
 0x60c   :  { %v2807_v33 = vmul.f32 %v2699_v18, %v5529_v56 }
 0x60d   :  { %v5191_v53 = vpop.f32.mrf.mxu0 }
 0x60e   :  { %v2632_v48 = vadd.f32 %v5191_v53, %v5180_v55 }
 0x60f   :  { %v5195_v32 = vpop.f32.mrf.mxu0 }
 0x611   :  { %v5203_v37 = vpop.f32.mrf.mxu0 }
 0x612   :  { %5553 = vst [vmem:[#allocation16_spill] sm:$0xff] %v5203_v37  ;;  %v2681_v37 = vadd.f32 %v2680_v60, %v5200_v20  ;;  %v2818_v60 = vmul.f32 %v2677_v61, %v4616_v3  ;;  %v2804_v3 = vmul.f32 %v2685_v25, %v4614_v2 }
 0x613   :  { %v5207_v21 = vpop.f32.mrf.mxu0 }
 0x614   :  { %v2819_v5 = vmul.f32 %v2681_v37, %v4652_v24  ;;  %v2826_v46 = vadd.f32 %v2818_v60, %v2810_v31  ;;  %v2622_v24 = vadd.f32 %v2621_v62, %v5180_v55  ;;  %v2812_v52 = vadd.f32 %v2804_v3, %v2796_v36  ;;  %v2704_v60 = vpop.f32.mrf.mxu1 }
 0x616   :  { %v3750_v9 = vpop.f32.mrf.mxu0  ;;  %v2827_v2 = vadd.f32 %v2819_v5, %v2811_v58  ;;  %v2782_v43 = vmul.f32 %v2622_v24, %v4618_v4  ;;  %v2828_v25 = vadd.f32 %v2820_v1, %v2812_v52 }
 0x618   :  { %v3751_v35 = vpop.f32.mrf.mxu0 }
 0x619   :  { %v3752_v0 = vadd.f32 %v3751_v35, %v3750_v9  ;;  %v2805_v9 = vmul.f32 %v2689_v54, %v4632_v11  ;;  %v2798_v35 = vadd.f32 %v2790_v45, %v2782_v43  ;;  %v2626_v11 = vadd.f32 %v5182_v40, %v5180_v55 }
 0x61a   :  { %v3753_v34 = vpop.f32.mrf.mxu0  ;;  %v2638_v54 = vadd.f32 %v5207_v21, %v5177_v19 }
 0x61b   :  { %v2748_v15 = vadd.f32 %v3752_v0, %v5218_v17  ;;  %v2813_v47 = vadd.f32 %v2805_v9, %v2797_v28  ;;  %v2814_v63 = vadd.f32 %v2806_v44, %v2798_v35  ;;  %v5560_v28 = vld [vmem:[#allocation23_spill] sm:$0xff]  ;;  %v5563_v44 = vld [vmem:[#allocation37_spill] sm:$0xff]  ;;  %v5565_v35 = vld [vmem:[#allocation30_spill] sm:$0xff] }
 0x61c   :  { %v3754_v37 = vpop.f32.mrf.mxu0  ;;  %v2784_v45 = vmul.f32 %v2632_v48, %v5560_v28 }
 0x61d   :  { %v2834_v30 = vmul.f32 %v2748_v15, %v4624_v7  ;;  %v3755_v61 = vadd.f32 %v3754_v37, %v3753_v34  ;;  %v2628_v7 = vadd.f32 %v5185_v29, %v5177_v19  ;;  %v2783_v34 = vmul.f32 %v2626_v11, %v4626_v8 }
 0x61e   :  { %v3756_v26 = vpop.f32.mrf.mxu0  ;;  %v2829_v37 = vadd.f32 %v2821_v51, %v2813_v47  ;;  %v2830_v21 = vadd.f32 %v2822_v12, %v2814_v63 }
 0x61f   :  { %v2842_v49 = vadd.f32 %v2834_v30, %v2826_v46  ;;  %v2751_v62 = vadd.f32 %v3755_v61, %v5218_v17  ;;  %v2791_v13 = vmul.f32 %v2628_v7, %v4630_v10  ;;  %v2701_v46 = vadd.f32 %v2700_v41, %v5200_v20  ;;  %v2706_v10 = vpop.f32.mrf.mxu1  ;;  %v5559_v61 = vld [vmem:[#allocation35_spill] sm:$0xff] }
 0x620   :  { %v3757_v31 = vpop.f32.mrf.mxu0  ;;  %v2793_v7 = vmul.f32 %v2638_v54, %v5562_v59  ;;  %v2707_v47 = vadd.f32 %v2706_v10, %v5200_v20  ;;  %v5569_v54 = vld [vmem:[#allocation40_spill] sm:$0xff]  ;;  %v4205_v59 = vld [vmem:[#allocation8 + $0x10] sm:$0xff]  }
 0x621   :  { %v2835_v6 = vmul.f32 %v2751_v62, %v4767_v27  ;;  %v3758_v39 = vadd.f32 %v3757_v31, %v3756_v26  ;;  %v2858_v0 = vmul.f32 0.01, %v2842_v49  ;;  %v2634_v27 = vadd.f32 %v5195_v32, %v5177_v19  ;;  %v2708_v19 = vpop.f32.mrf.mxu1 }
 0x622   :  { %v3759_v4 = vpop.f32.mrf.mxu0  ;;  %vm2850_vm0 = vcmp.ge.f32.partialorder %v2842_v49, 0.0  ;;  %v2799_v3 = vadd.f32 %v2791_v13, %v2783_v34  ;;  %v2823_v52 = vmul.f32 %v2701_v46, %v5559_v61  ;;  %v2705_v26 = vadd.f32 %v2704_v60, %v5189_v14  ;;  %v5567_v46 = vld [vmem:[#allocation38_spill] sm:$0xff] }
 0x623   :  { %v2843_v23 = vadd.f32 %v2835_v6, %v2827_v2  ;;  %v2756_v29 = vadd.f32 %v3758_v39, %v5218_v17  ;;  %v2866_v42 = vsel %vm2850_vm0, %v2842_v49, %v2858_v0  ;;  %v5561_v2 = vld [vmem:[#allocation16_spill] sm:$0xff]  ;;  %v2710_v60 = vpop.f32.mrf.mxu1  ;;  %v2824_v48 = vmul.f32 %v2707_v47, %v5567_v46 }
 0x624   :  { %v3760_v5 = vpop.f32.mrf.mxu0  ;;  %v2636_v1 = vadd.f32 %v5561_v2, %v5180_v55  ;;  %v2815_v9 = vadd.f32 %v2807_v33, %v2799_v3  ;;  %v5564_v55 = vld [vmem:[#allocation33_spill] sm:$0xff]  ;;  %v5570_v33 = vld [vmem:[#allocation39_spill] sm:$0xff] }
 0x625   :  { %v2836_v36 = vmul.f32 %v2756_v29, %v5503_v16  ;;  %v3761_v40 = vadd.f32 %v3760_v5, %v3759_v4  ;;  %vm2851_vm4 = vcmp.ge.f32.partialorder %v2843_v23, 0.0  ;;  %v2859_v38 = vmul.f32 0.01, %v2843_v23  ;;  %v5557_v16 = vld [vmem:[#allocation22_spill] sm:$0xff] }
 0x626   :  { %v3762_v58 = vpop.f32.mrf.mxu0  ;;  %v2792_v22 = vmul.f32 %v2634_v27, %v5557_v16  ;;  %v2785_v11 = vmul.f32 %v2636_v1, %v5565_v35  ;;  %v2709_v4 = vadd.f32 %v2708_v19, %v5189_v14  ;;  %v2711_v14 = vadd.f32 %v2710_v60, %v5200_v20 }
 0x627   :  { %v2844_v57 = vadd.f32 %v2836_v36, %v2828_v25  ;;  %v2759_v32 = vadd.f32 %v3761_v40, %v5218_v17  ;;  %v2867_v15 = vsel %vm2851_vm4, %v2843_v23, %v2859_v38  ;;  %v2808_v25 = vmul.f32 %v2705_v26, %v5564_v55  ;;  %v5566_v38 = vld [vmem:[#allocation20_spill] sm:$0xff] }
 0x628   :  { %v3763_v24 = vpop.f32.mrf.mxu0  ;;  %v2874_v8 = vpack.c.bf16 %v2867_v15, %v2866_v42  ;;  %v2800_v43 = vadd.f32 %v2792_v22, %v2784_v45  ;;  %v2801_v27 = vadd.f32 %v2793_v7, %v2785_v11  ;;  %v2831_v40 = vadd.f32 %v2823_v52, %v2815_v9  ;;  %v5571_v45 = vld [vmem:[#allocation41_spill] sm:$0xff]  ;;  %v4206_v7 = vld [vmem:[#allocation8 + $0x8] sm:$0xff]  }
 0x629   :  { %v2837_v53 = vmul.f32 %v2759_v32, %v5558_v50  ;;  %v3764_v30 = vadd.f32 %v3763_v24, %v3762_v58  ;;  %v2860_v49 = vmul.f32 0.01, %v2844_v57  ;;  %vm2852_vm5 = vcmp.ge.f32.partialorder %v2844_v57, 0.0  ;;  %v5568_v58 = vld [vmem:[#allocation36_spill] sm:$0xff]  ;;  %v4203_v9 = vld [vmem:[#allocation8 + $0x20] sm:$0xff]  }
 0x62a   :  { %v3765_v41 = vpop.f32.mrf.mxu0  ;;  %3874 = vmatprep.mubr.bf16.mxu1 %v2874_v8  ;;  %v2816_v13 = vadd.f32 %v2808_v25, %v2800_v43  ;;  %v2809_v10 = vmul.f32 %v2709_v4, %v5568_v58  ;;  %v2825_v50 = vmul.f32 %v2711_v14, %v5570_v33  ;;  %v4204_v43 = vld [vmem:[#allocation8 + $0x18] sm:$0xff]  }
 0x62b   :  { %v2845_v62 = vadd.f32 %v2837_v53, %v2829_v37  ;;  %v2764_v56 = vadd.f32 %v3764_v30, %v5218_v17  ;;  %v2868_v23 = vsel %vm2852_vm5, %v2844_v57, %v2860_v49 }
 0x62c   :  { %v3766_v31 = vpop.f32.mrf.mxu0  ;;  %v2832_v3 = vadd.f32 %v2824_v48, %v2816_v13  ;;  %v2817_v16 = vadd.f32 %v2809_v10, %v2801_v27 }
 0x62d   :  { %vm2853_vm6 = vcmp.ge.f32.partialorder %v2845_v62, 0.0  ;;  %v2861_v51 = vmul.f32 0.01, %v2845_v62  ;;  %v2838_v6 = vmul.f32 %v2764_v56, %v5563_v44  ;;  %v3767_v39 = vadd.f32 %v3766_v31, %v3765_v41  ;;  %v4202_v56 = vld [vmem:[#allocation8 + $0x28] sm:$0xff]   ;;  %v4207_v31 = vld [vmem:[#allocation8] sm:$0xff]  }
 0x62e   :  { %v3768_v18 = vpop.f32.mrf.mxu0  ;;  %v2833_v28 = vadd.f32 %v2825_v50, %v2817_v16 }
 0x62f   :  { %v2869_v29 = vsel %vm2853_vm6, %v2845_v62, %v2861_v51  ;;  %v2846_v0 = vadd.f32 %v2838_v6, %v2830_v21  ;;  %v2767_v12 = vadd.f32 %v3767_v39, %v5218_v17  ;;  %v4200_v62 = vld [vmem:[#allocation8 + $0x38] sm:$0xff]  }
 0x630   :  { %v3769_v5 = vpop.f32.mrf.mxu0  ;;  %v2875_v36 = vpack.c.bf16 %v2869_v29, %v2868_v23  ;;  %3882 = vmatprep.subr.bf16.mxu0 %v4200_v62  ;;  %v3640_v39 = vld [vmem:[%s5392_s14] ss:$0 sm:$0xff] }
 0x631   :  { %v2839_v63 = vmul.f32 %v2767_v12, %v5566_v38  ;;  %v3770_v34 = vadd.f32 %v3769_v5, %v3768_v18  ;;  %v2862_v15 = vmul.f32 0.01, %v2846_v0  ;;  %vm2854_vm7 = vcmp.ge.f32.partialorder %v2846_v0, 0.0  ;;  %3883 = vmatpush3.bf16.msra.mxu0 %v4200_v62 }
 0x632   :  { %v3771_v32 = vpop.f32.mrf.mxu0  ;;  %3875 = vmatmul.mubr.bf16.vlgmr.msra.gmra.mxu1 %v2875_v36 }
 0x633   :  { %v2847_v57 = vadd.f32 %v2839_v63, %v2831_v40  ;;  %v2772_v42 = vadd.f32 %v3770_v34, %v5218_v17  ;;  %v2870_v30 = vsel %vm2854_vm7, %v2846_v0, %v2862_v15 }
 0x634   :  { %v3772_v22 = vpop.f32.mrf.mxu0 }
 0x635   :  { %v2840_v24 = vmul.f32 %v2772_v42, %v5569_v54  ;;  %v3773_v8 = vadd.f32 %v3772_v22, %v3771_v32  ;;  %vm2855_vm8 = vcmp.ge.f32.partialorder %v2847_v57, 0.0  ;;  %v2863_v37 = vmul.f32 0.01, %v2847_v57 }
 0x637   :  { %v2848_v53 = vadd.f32 %v2840_v24, %v2832_v3  ;;  %v2775_v20 = vadd.f32 %v3773_v8, %v5218_v17  ;;  %v2871_v61 = vsel %vm2855_vm8, %v2847_v57, %v2863_v37  ;;  %v4201_v17 = vld [vmem:[#allocation8 + $0x30] sm:$0xff]  }
 0x638   :  { %v2876_v52 = vpack.c.bf16 %v2871_v61, %v2870_v30  ;;  %3884 = vmatprep.subr.bf16.mxu0 %v4201_v17 }
 0x639   :  { %v2841_v26 = vmul.f32 %v2775_v20, %v5571_v45  ;;  %v2864_v1 = vmul.f32 0.01, %v2848_v53  ;;  %vm2856_vm9 = vcmp.ge.f32.partialorder %v2848_v53, 0.0  ;;  %3885 = vmatpush3.bf16.msra.mxu0 %v4201_v17 }
 0x63a   :  { %3878 = vmatprep.mubr.bf16.mxu1 %v2876_v52  ;;  %3886 = vmatprep.subr.bf16.mxu0 %v4202_v56 }
 0x63b   :  { %v2849_v2 = vadd.f32 %v2841_v26, %v2833_v28  ;;  %v2872_v21 = vsel %vm2856_vm9, %v2848_v53, %v2864_v1 }
 0x63d   :  { %vm2857_vm10 = vcmp.ge.f32.partialorder %v2849_v2, 0.0  ;;  %v2865_v41 = vmul.f32 0.01, %v2849_v2  ;;  %3887 = vmatpush3.bf16.msra.mxu0 %v4202_v56 }
 0x63e   :  { %3888 = vmatprep.subr.bf16.mxu0 %v4203_v9 }
 0x63f   :  { %v2873_v19 = vsel %vm2857_vm10, %v2849_v2, %v2865_v41 }
 0x640   :  { %v2877_v49 = vpack.c.bf16 %v2873_v19, %v2872_v21 }
 0x641   :  { %3889 = vmatpush3.bf16.msra.mxu0 %v4203_v9 }
 0x642   :  { %3879 = vmatmul.mubr.bf16.gmra.mxu1 %v2877_v49  ;;  %3890 = vmatprep.subr.bf16.mxu0 %v4204_v43 }
 0x645   :  { %3891 = vmatpush3.bf16.msra.mxu0 %v4204_v43 }
 0x646   :  { %3892 = vmatprep.subr.bf16.mxu0 %v4205_v59 }
 0x649   :  { %3893 = vmatpush3.bf16.msra.mxu0 %v4205_v59 }
 0x64a   :  { %3894 = vmatprep.subr.bf16.mxu0 %v4206_v7 }
 0x64d   :  { %3895 = vmatpush3.bf16.msra.mxu0 %v4206_v7  ;;  %v3649_v7 = vld [vmem:[%s5393_s15] ss:$0 sm:$0xff] }
 0x64e   :  { %3896 = vmatprep.subr.bf16.mxu0 %v4207_v31 }
 0x651   :  { %3897 = vmatpush3.bf16.msra.mxu0 %v4207_v31 }
 0x6f2   :  { %v3876_v51 = vpop.f32.mrf.mxu1 }
 0x6f3   :  { %v5298_v11 = vadd.f32 %v3876_v51, %v3640_v39 }
 0x6f4   :  { %v2983_v44 = vpop.f32.mrf.mxu1 }
 0x6f5   :  { %v5294_v47 = vadd.f32 %v3640_v39, %v2983_v44  ;;  %v3032_v29 = vmul.f32 %v5298_v11, %v5298_v11 }
 0x6f6   :  { %v3877_v6 = vpop.f32.mrf.mxu1 }
 0x6f7   :  { %v3030_v4 = vmul.f32 %v5294_v47, %v5294_v47  ;;  %v2995_v0 = vadd.f32 %v3877_v6, %v3640_v39 }
 0x6f8   :  { %v2986_v55 = vpop.f32.mrf.mxu1 }
 0x6f9   :  { %v5292_v25 = vadd.f32 %v3640_v39, %v2986_v55  ;;  %v3033_v40 = vmul.f32 %v2995_v0, %v2995_v0 }
 0x6fb   :  { %v3031_v35 = vmul.f32 %v5292_v25, %v5292_v25  ;;  %v3016_v18 = vadd.f32 %v5292_v25, %v5294_v47 }
 0x6fd   :  { %v3038_v60 = vadd.f32 %v3031_v35, %v3030_v4  ;;  %v3017_v12 = vadd.f32 %v3016_v18, %v5298_v11 }
 0x6ff   :  { %v3039_v27 = vadd.f32 %v3038_v60, %v3032_v29  ;;  %v3018_v38 = vadd.f32 %v3017_v12, %v2995_v0 }
 0x701   :  { %v3040_v58 = vadd.f32 %v3039_v27, %v3033_v40 }
 0x702   :  { %v3880_v23 = vpop.f32.mrf.mxu1 }
 0x703   :  { %v3008_v46 = vadd.f32 %v3880_v23, %v3640_v39 }
 0x704   :  { %v2999_v13 = vpop.f32.mrf.mxu1 }
 0x705   :  { %v3000_v5 = vadd.f32 %v3640_v39, %v2999_v13  ;;  %v3036_v15 = vmul.f32 %v3008_v46, %v3008_v46 }
 0x706   :  { %v3881_v36 = vpop.f32.mrf.mxu1 }
 0x707   :  { %v3034_v63 = vmul.f32 %v3000_v5, %v3000_v5  ;;  %v3019_v48 = vadd.f32 %v3018_v38, %v3000_v5  ;;  %v3011_v32 = vadd.f32 %v3881_v36, %v3640_v39 }
 0x708   :  { %v3002_v34 = vpop.f32.mrf.mxu1 }
 0x709   :  { %v3003_v10 = vadd.f32 %v3640_v39, %v3002_v34  ;;  %v3041_v14 = vadd.f32 %v3040_v58, %v3034_v63  ;;  %v3037_v22 = vmul.f32 %v3011_v32, %v3011_v32 }
 0x70b   :  { %v3020_v57 = vadd.f32 %v3019_v48, %v3003_v10  ;;  %v3035_v42 = vmul.f32 %v3003_v10, %v3003_v10 }
 0x70d   :  { %v3021_v3 = vadd.f32 %v3020_v57, %v3008_v46  ;;  %v3042_v16 = vadd.f32 %v3041_v14, %v3035_v42 }
 0x70f   :  { %v3022_v54 = vadd.f32 %v3021_v3, %v3011_v32  ;;  %v3043_v24 = vadd.f32 %v3042_v16, %v3036_v15 }
 0x711   :  { %v3023_v8 = vrot.slane %v3022_v54, 4  ;;  %v3044_v37 = vadd.f32 %v3043_v24, %v3037_v22 }
 0x713   :  { %v3024_v33 = vadd.f32 %v3023_v8, %v3022_v54  ;;  %v3045_v50 = vrot.slane %v3044_v37, 4 }
 0x715   :  { %v3025_v53 = vrot.slane %v3024_v33, 2  ;;  %v3046_v20 = vadd.f32 %v3045_v50, %v3044_v37 }
 0x717   :  { %v3026_v30 = vadd.f32 %v3025_v53, %v3024_v33  ;;  %v3047_v61 = vrot.slane %v3046_v20, 2 }
 0x719   :  { %v3027_v52 = vrot.slane %v3026_v30, 1  ;;  %v3048_v28 = vadd.f32 %v3047_v61, %v3046_v20 }
 0x71b   :  { %v3028_v45 = vadd.f32 %v3027_v52, %v3026_v30  ;;  %v3049_v26 = vrot.slane %v3048_v28, 1 }
 0x71d   :  { %v3029_v2 = vmul.f32 0.015625, %v3028_v45  ;;  %v3050_v1 = vadd.f32 %v3049_v26, %v3048_v28 }
 0x71f   :  { %v3051_v41 = vmul.f32 0.015625, %v3050_v1  ;;  %v3052_v21 = vmul.f32 %v3029_v2, %v3029_v2  ;;  %v3060_v17 = vsub.f32 %v3003_v10, %v3029_v2  ;;  %v3055_v56 = vsub.f32 %v5294_v47, %v3029_v2  ;;  %v3650_v47 = vld [vmem:[%s5394_s16] ss:$0 sm:$0xff] }
 0x720   :  { %v3056_v9 = vsub.f32 %v5292_v25, %v3029_v2  ;;  %v3057_v43 = vsub.f32 %v5298_v11, %v3029_v2  ;;  %v3058_v31 = vsub.f32 %v2995_v0, %v3029_v2  ;;  %v3059_v51 = vsub.f32 %v3000_v5, %v3029_v2 }
 0x721   :  { %v3053_v19 = vsub.f32 %v3051_v41, %v3052_v21  ;;  %v3061_v44 = vsub.f32 %v3008_v46, %v3029_v2  ;;  %v3062_v6 = vsub.f32 %v3011_v32, %v3029_v2  ;;  %v3651_v2 = vld [vmem:[%s5396_s18] ss:$0 sm:$0xff] }
 0x723   :  { %v3054_v49 = vmax.f32 %v3053_v19, 0.0 }
 0x725   :  { %v3063_v62 = vadd.f32 1e-05, %v3054_v49 }
 0x727   :  { %4212 = vrsqrt.f32 %v3063_v62 }
 0x734   :  { %v4213_v59 = vpop.eup %4212 }
 0x735   :  { %v3070_v39 = vmul.f32 %v4213_v59, %v3060_v17  ;;  %v3065_v55 = vmul.f32 %v4213_v59, %v3055_v56  ;;  %v3066_v35 = vmul.f32 %v4213_v59, %v3056_v9  ;;  %v3067_v4 = vmul.f32 %v4213_v59, %v3057_v43 }
 0x736   :  { %v3068_v25 = vmul.f32 %v4213_v59, %v3058_v31  ;;  %v3069_v18 = vmul.f32 %v4213_v59, %v3059_v51  ;;  %v3071_v11 = vmul.f32 %v4213_v59, %v3061_v44  ;;  %v3072_v60 = vmul.f32 %v4213_v59, %v3062_v6 }
 0x737   :  { %v3084_v23 = vmul.f32 %v3649_v7, %v3070_v39  ;;  %v3079_v29 = vmul.f32 %v3649_v7, %v3065_v55  ;;  %v3080_v12 = vmul.f32 %v3649_v7, %v3066_v35  ;;  %v3081_v13 = vmul.f32 %v3649_v7, %v3067_v4 }
 0x738   :  { %v3082_v0 = vmul.f32 %v3649_v7, %v3068_v25  ;;  %v3083_v27 = vmul.f32 %v3649_v7, %v3069_v18  ;;  %v3085_v5 = vmul.f32 %v3649_v7, %v3071_v11  ;;  %v3086_v36 = vmul.f32 %v3649_v7, %v3072_v60 }
 0x739   :  { %v3093_v40 = vadd.f32 %v3650_v47, %v3079_v29  ;;  %v3094_v38 = vadd.f32 %v3650_v47, %v3080_v12  ;;  %v3095_v63 = vadd.f32 %v3650_v47, %v3081_v13  ;;  %v3098_v34 = vadd.f32 %v3650_v47, %v3084_v23 }
 0x73a   :  { %v3096_v46 = vadd.f32 %v3650_v47, %v3082_v0  ;;  %v3097_v48 = vadd.f32 %v3650_v47, %v3083_v27  ;;  %v3099_v58 = vadd.f32 %v3650_v47, %v3085_v5  ;;  %v3100_v10 = vadd.f32 %v3650_v47, %v3086_v36 }
 0x73b   :  { %vm3101_vm11 = vcmp.ge.f32.partialorder %v3093_v40, 0.0  ;;  %vm3102_vm12 = vcmp.ge.f32.partialorder %v3094_v38, 0.0  ;;  %v3109_v14 = vmul.f32 0.01, %v3093_v40  ;;  %v3110_v32 = vmul.f32 0.01, %v3094_v38 }
 0x73c   :  { %vm3103_vm13 = vcmp.ge.f32.partialorder %v3095_v63, 0.0  ;;  %vm3104_vm14 = vcmp.ge.f32.partialorder %v3096_v46, 0.0  ;;  %v3111_v57 = vmul.f32 0.01, %v3095_v63  ;;  %v3112_v42 = vmul.f32 0.01, %v3096_v46 }
 0x73d   :  { %v3117_v15 = vsel %vm3101_vm11, %v3093_v40, %v3109_v14  ;;  %v3118_v3 = vsel %vm3102_vm12, %v3094_v38, %v3110_v32  ;;  %vm3105_vm15 = vcmp.ge.f32.partialorder %v3097_v48, 0.0  ;;  %vm3106_vm1 = vcmp.ge.f32.partialorder %v3098_v34, 0.0 }
 0x73e   :  { %v3125_v16 = vpack.c.bf16 %v3118_v3, %v3117_v15  ;;  %v3119_v22 = vsel %vm3103_vm13, %v3095_v63, %v3111_v57  ;;  %v3120_v54 = vsel %vm3104_vm14, %v3096_v46, %v3112_v42  ;;  %v3113_v24 = vmul.f32 0.01, %v3097_v48 }
 0x73f   :  { %v3126_v8 = vpack.c.bf16 %v3120_v54, %v3119_v22  ;;  %v3114_v37 = vmul.f32 0.01, %v3098_v34  ;;  %v3115_v50 = vmul.f32 0.01, %v3099_v58  ;;  %v3116_v53 = vmul.f32 0.01, %v3100_v10 }
 0x740   :  { %3898 = vmatprep.mubr.bf16.mxu0 %v3125_v16  ;;  %v3121_v33 = vsel %vm3105_vm15, %v3097_v48, %v3113_v24  ;;  %vm3107_vm2 = vcmp.ge.f32.partialorder %v3099_v58, 0.0  ;;  %vm3108_vm3 = vcmp.ge.f32.partialorder %v3100_v10, 0.0  ;;  %vm3422_vm11 = vcmask 7168  }
 0x741   :  { %3899 = vmatmul.mubr.bf16.vlgmr.msra.gmra.mxu0 %v3126_v8  ;;  %v3122_v20 = vsel %vm3106_vm1, %v3098_v34, %v3114_v37  ;;  %v3123_v61 = vsel %vm3107_vm2, %v3099_v58, %v3115_v50  ;;  %v3124_v52 = vsel %vm3108_vm3, %v3100_v10, %v3116_v53 }
 0x742   :  { %v3127_v30 = vpack.c.bf16 %v3122_v20, %v3121_v33  ;;  %v3128_v28 = vpack.c.bf16 %v3124_v52, %v3123_v61  ;;  %v3660_v52 = vld [vmem:[%s5397_s19] ss:$0 sm:$0xff] }
 0x744   :  { %3902 = vmatprep.mubr.bf16.mxu0 %v3127_v30 }
 0x749   :  { %3903 = vmatmul.mubr.bf16.gmra.mxu0 %v3128_v28 }
 0x801   :  { %v3900_v45 = vpop.f32.mrf.mxu0 }
 0x802   :  { %v5321_v19 = vadd.f32 %v3900_v45, %v3651_v2 }
 0x803   :  { %v3234_v26 = vpop.f32.mrf.mxu0 }
 0x804   :  { %v5319_v41 = vadd.f32 %v3651_v2, %v3234_v26  ;;  %v3283_v7 = vmul.f32 %v5321_v19, %v5321_v19 }
 0x805   :  { %v3901_v1 = vpop.f32.mrf.mxu0 }
 0x806   :  { %v3281_v17 = vmul.f32 %v5319_v41, %v5319_v41  ;;  %v5325_v56 = vadd.f32 %v3901_v1, %v3651_v2 }
 0x807   :  { %v3237_v21 = vpop.f32.mrf.mxu0 }
 0x808   :  { %v3238_v49 = vadd.f32 %v3651_v2, %v3237_v21  ;;  %v3284_v39 = vmul.f32 %v5325_v56, %v5325_v56 }
 0x809   :  { %v3904_v62 = vpop.f32.mrf.mxu0 }
 0x80a   :  { %v3267_v9 = vadd.f32 %v3238_v49, %v5319_v41  ;;  %v3282_v43 = vmul.f32 %v3238_v49, %v3238_v49  ;;  %v3259_v4 = vadd.f32 %v3904_v62, %v3651_v2 }
 0x80b   :  { %v3250_v59 = vpop.f32.mrf.mxu0 }
 0x80c   :  { %v3268_v31 = vadd.f32 %v3267_v9, %v5321_v19  ;;  %v3289_v51 = vadd.f32 %v3282_v43, %v3281_v17  ;;  %v3251_v44 = vadd.f32 %v3651_v2, %v3250_v59  ;;  %v3287_v0 = vmul.f32 %v3259_v4, %v3259_v4 }
 0x80d   :  { %v3905_v6 = vpop.f32.mrf.mxu0 }
 0x80e   :  { %v3290_v55 = vadd.f32 %v3289_v51, %v3283_v7  ;;  %v3269_v35 = vadd.f32 %v3268_v31, %v5325_v56  ;;  %v3285_v18 = vmul.f32 %v3251_v44, %v3251_v44  ;;  %v3262_v29 = vadd.f32 %v3905_v6, %v3651_v2 }
 0x80f   :  { %v3253_v47 = vpop.f32.mrf.mxu0 }
 0x810   :  { %v3270_v25 = vadd.f32 %v3269_v35, %v3251_v44  ;;  %v3291_v11 = vadd.f32 %v3290_v55, %v3284_v39  ;;  %v3254_v60 = vadd.f32 %v3651_v2, %v3253_v47  ;;  %v3288_v36 = vmul.f32 %v3262_v29, %v3262_v29  ;;  %v3662_v35 = vld [vmem:[%s5399_s21] ss:$0 sm:$0xff] }
 0x812   :  { %v3292_v23 = vadd.f32 %v3291_v11, %v3285_v18  ;;  %v3271_v12 = vadd.f32 %v3270_v25, %v3254_v60  ;;  %v3286_v13 = vmul.f32 %v3254_v60, %v3254_v60 }
 0x814   :  { %v3272_v27 = vadd.f32 %v3271_v12, %v3259_v4  ;;  %v3293_v5 = vadd.f32 %v3292_v23, %v3286_v13 }
 0x816   :  { %v3273_v40 = vadd.f32 %v3272_v27, %v3262_v29  ;;  %v3294_v38 = vadd.f32 %v3293_v5, %v3287_v0 }
 0x818   :  { %v3274_v63 = vrot.slane %v3273_v40, 4  ;;  %v3295_v34 = vadd.f32 %v3294_v38, %v3288_v36 }
 0x81a   :  { %v3275_v46 = vadd.f32 %v3274_v63, %v3273_v40  ;;  %v3296_v48 = vrot.slane %v3295_v34, 4 }
 0x81c   :  { %v3276_v58 = vrot.slane %v3275_v46, 2  ;;  %v3297_v10 = vadd.f32 %v3296_v48, %v3295_v34 }
 0x81e   :  { %v3277_v14 = vadd.f32 %v3276_v58, %v3275_v46  ;;  %v3298_v32 = vrot.slane %v3297_v10, 2 }
 0x820   :  { %v3278_v57 = vrot.slane %v3277_v14, 1  ;;  %v3299_v42 = vadd.f32 %v3298_v32, %v3297_v10 }
 0x822   :  { %v3279_v15 = vadd.f32 %v3278_v57, %v3277_v14  ;;  %v3300_v3 = vrot.slane %v3299_v42, 1 }
 0x824   :  { %v3280_v16 = vmul.f32 0.015625, %v3279_v15  ;;  %v3301_v22 = vadd.f32 %v3300_v3, %v3299_v42 }
 0x826   :  { %v3302_v54 = vmul.f32 0.015625, %v3301_v22  ;;  %v3303_v24 = vmul.f32 %v3280_v16, %v3280_v16  ;;  %v3307_v50 = vsub.f32 %v3238_v49, %v3280_v16  ;;  %v3306_v53 = vsub.f32 %v5319_v41, %v3280_v16  ;;  %v3661_v41 = vld [vmem:[%s5398_s20] ss:$0 sm:$0xff] }
 0x827   :  { %v3310_v20 = vsub.f32 %v3251_v44, %v3280_v16  ;;  %v3311_v61 = vsub.f32 %v3254_v60, %v3280_v16  ;;  %v3308_v28 = vsub.f32 %v5321_v19, %v3280_v16  ;;  %v3312_v45 = vsub.f32 %v3259_v4, %v3280_v16 }
 0x828   :  { %v3304_v8 = vsub.f32 %v3302_v54, %v3303_v24  ;;  %v3309_v26 = vsub.f32 %v5325_v56, %v3280_v16  ;;  %v3313_v31 = vsub.f32 %v3262_v29, %v3280_v16  ;;  %v3663_v24 = vld [vmem:[#allocation2] ss:$0 sm:$0xff] }
 0x82a   :  { %v3305_v37 = vmax.f32 %v3304_v8, 0.0 }
 0x82c   :  { %v3314_v33 = vadd.f32 1e-05, %v3305_v37 }
 0x82e   :  { %4214 = vrsqrt.f32 %v3314_v33 }
 0x83b   :  { %v4215_v30 = vpop.eup %4214 }
 0x83c   :  { %v3317_v2 = vmul.f32 %v4215_v30, %v3307_v50  ;;  %v3316_v1 = vmul.f32 %v4215_v30, %v3306_v53  ;;  %v3320_v21 = vmul.f32 %v4215_v30, %v3310_v20  ;;  %v3321_v62 = vmul.f32 %v4215_v30, %v3311_v61 }
 0x83d   :  { %v3318_v49 = vmul.f32 %v4215_v30, %v3308_v28  ;;  %v3322_v17 = vmul.f32 %v4215_v30, %v3312_v45  ;;  %v3319_v9 = vmul.f32 %v4215_v30, %v3309_v26  ;;  %v3323_v55 = vmul.f32 %v4215_v30, %v3313_v31 }
 0x83e   :  { %v3331_v43 = vmul.f32 %v3660_v52, %v3317_v2  ;;  %v3330_v59 = vmul.f32 %v3660_v52, %v3316_v1  ;;  %v3334_v7 = vmul.f32 %v3660_v52, %v3320_v21  ;;  %v3335_v18 = vmul.f32 %v3660_v52, %v3321_v62 }
 0x83f   :  { %v3332_v51 = vmul.f32 %v3660_v52, %v3318_v49  ;;  %v3336_v19 = vmul.f32 %v3660_v52, %v3322_v17  ;;  %v3333_v44 = vmul.f32 %v3660_v52, %v3319_v9  ;;  %v3337_v5 = vmul.f32 %v3660_v52, %v3323_v55 }
 0x840   :  { %v3345_v6 = vadd.f32 %v3661_v41, %v3331_v43  ;;  %v3344_v56 = vadd.f32 %v3661_v41, %v3330_v59  ;;  %v3348_v39 = vadd.f32 %v3661_v41, %v3334_v7  ;;  %v3349_v63 = vadd.f32 %v3661_v41, %v3335_v18 }
 0x841   :  { %v3346_v4 = vadd.f32 %v3661_v41, %v3332_v51  ;;  %v3350_v47 = vadd.f32 %v3661_v41, %v3336_v19  ;;  %v3347_v25 = vadd.f32 %v3661_v41, %v3333_v44  ;;  %v3351_v32 = vadd.f32 %v3661_v41, %v3337_v5 }
 0x842   :  { %vm3353_vm0 = vcmp.ge.f32.partialorder %v3345_v6, 0.0  ;;  %v3361_v11 = vmul.f32 0.01, %v3345_v6  ;;  %vm3352_vm4 = vcmp.ge.f32.partialorder %v3344_v56, 0.0  ;;  %v3360_v60 = vmul.f32 0.01, %v3344_v56 }
 0x843   :  { %vm3356_vm5 = vcmp.ge.f32.partialorder %v3348_v39, 0.0  ;;  %v3364_v23 = vmul.f32 0.01, %v3348_v39  ;;  %vm3354_vm6 = vcmp.ge.f32.partialorder %v3346_v4, 0.0  ;;  %v3362_v29 = vmul.f32 0.01, %v3346_v4 }
 0x844   :  { %v3369_v12 = vsel %vm3353_vm0, %v3345_v6, %v3361_v11  ;;  %v3368_v13 = vsel %vm3352_vm4, %v3344_v56, %v3360_v60  ;;  %v3366_v38 = vmul.f32 0.01, %v3350_v47  ;;  %vm3358_vm7 = vcmp.ge.f32.partialorder %v3350_v47, 0.0 }
 0x845   :  { %v3384_v0 = vmul.f32 %v3662_v35, %v3369_v12  ;;  %v3383_v27 = vmul.f32 %v3662_v35, %v3368_v13  ;;  %v3372_v36 = vsel %vm3356_vm5, %v3348_v39, %v3364_v23  ;;  %v3370_v40 = vsel %vm3354_vm6, %v3346_v4, %v3362_v29 }
 0x846   :  { %vm3355_vm8 = vcmp.ge.f32.partialorder %v3347_v25, 0.0  ;;  %v3363_v34 = vmul.f32 0.01, %v3347_v25  ;;  %v3387_v46 = vmul.f32 %v3662_v35, %v3372_v36  ;;  %v3385_v48 = vmul.f32 %v3662_v35, %v3370_v40 }
 0x847   :  { %3393 = vadd.xlane.f32.xlu1 %v3384_v0  ;;  %3391 = vadd.xlane.f32.xlu0 %v3383_v27  ;;  %v3374_v58 = vsel %vm3358_vm7, %v3350_v47, %v3366_v38  ;;  %v3365_v14 = vmul.f32 0.01, %v3349_v63  ;;  %vm3357_vm9 = vcmp.ge.f32.partialorder %v3349_v63, 0.0  ;;  %v3367_v3 = vmul.f32 0.01, %v3351_v32 }
 0x848   :  { %v3371_v10 = vsel %vm3355_vm8, %v3347_v25, %v3363_v34  ;;  %v3389_v57 = vmul.f32 %v3662_v35, %v3374_v58  ;;  %vm3359_vm10 = vcmp.ge.f32.partialorder %v3351_v32, 0.0 }
 0x849   :  { %v3386_v42 = vmul.f32 %v3662_v35, %v3371_v10  ;;  %v3373_v15 = vsel %vm3357_vm9, %v3349_v63, %v3365_v14  ;;  %v3375_v22 = vsel %vm3359_vm10, %v3351_v32, %v3367_v3 }
 0x84a   :  { %v3388_v16 = vmul.f32 %v3662_v35, %v3373_v15  ;;  %v3390_v54 = vmul.f32 %v3662_v35, %v3375_v22 }
 0x84b   :  { %3399 = vadd.xlane.f32.xlu1 %v3387_v46  ;;  %3395 = vadd.xlane.f32.xlu0 %v3385_v48 }
 0x84f   :  { %3403 = vadd.xlane.f32.xlu1 %v3389_v57  ;;  %3397 = vadd.xlane.f32.xlu0 %v3386_v42 }
 0x853   :  { %3401 = vadd.xlane.f32.xlu0 %v3388_v16 }
 0x857   :  { %3405 = vadd.xlane.f32.xlu0 %v3390_v54 }
 0x8d0   :  { %v3394_v8 = vpop.xlane.xlu1 %3393  ;;  %v3392_v37 = vpop.xlane.xlu0 %3391 }
 0x8d1   :  { %v3415_v33 = vadd.f32 %v3663_v24, %v3394_v8  ;;  %v3414_v50 = vadd.f32 %v3663_v24, %v3392_v37 }
 0x8d3   :  { %3424 = vst.msk [vmem:[%s5401_s23 + $0x8] sm:$0xff] %vm3422_vm11, %v3415_v33  ;;  %3423 = vst.msk [vmem:[%s5401_s23] sm:$0xff] %vm3422_vm11, %v3414_v50 }
 0x8d4   :  { %v3400_v53 = vpop.xlane.xlu1 %3399  ;;  %v3396_v20 = vpop.xlane.xlu0 %3395 }
 0x8d5   :  { %v3418_v30 = vadd.f32 %v3663_v24, %v3400_v53  ;;  %v3416_v61 = vadd.f32 %v3663_v24, %v3396_v20 }
 0x8d7   :  { %3427 = vst.msk [vmem:[%s5401_s23 + $0x20] sm:$0xff] %vm3422_vm11, %v3418_v30  ;;  %3425 = vst.msk [vmem:[%s5401_s23 + $0x10] sm:$0xff] %vm3422_vm11, %v3416_v61 }
 0x8d8   :  { %v3404_v52 = vpop.xlane.xlu1 %3403  ;;  %v3398_v28 = vpop.xlane.xlu0 %3397 }
 0x8d9   :  { %v3420_v45 = vadd.f32 %v3663_v24, %v3404_v52  ;;  %v3417_v26 = vadd.f32 %v3663_v24, %v3398_v28 }
 0x8db   :  { %3429 = vst.msk [vmem:[%s5401_s23 + $0x30] sm:$0xff] %vm3422_vm11, %v3420_v45  ;;  %3426 = vst.msk [vmem:[%s5401_s23 + $0x18] sm:$0xff] %vm3422_vm11, %v3417_v26 }
 0x8dc   :  { %v3402_v2 = vpop.xlane.xlu0 %3401 }
 0x8dd   :  { %v3419_v1 = vadd.f32 %v3663_v24, %v3402_v2 }
 0x8df   :  { %3428 = vst.msk [vmem:[%s5401_s23 + $0x28] sm:$0xff] %vm3422_vm11, %v3419_v1 }
 0x8e0   :  { %v3406_v21 = vpop.xlane.xlu0 %3405 }
 0x8e1   :  { %v3421_v62 = vadd.f32 %v3663_v24, %v3406_v21 }
 0x8e3   :  { %3430 = vst.msk [vmem:[%s5401_s23 + $0x38] sm:$0xff] %vm3422_vm11, %v3421_v62 }
 0x8e4   :  { %3435 = vsyncpa [#allocation4], 1 }
 0x8e5   :  { %3436 = vsyncpa [#allocation6], 1 }
 0x8e6   :  { %3437 = vsyncpa [#allocation9], 1 }

</bundles_post_ra>
